<compile_context>
chip_gen: v7x
topology: tpu7x:2x2x1
jax: 0.10.0
libtpu: 0.0.40
codegen_flags: <defaults>
</compile_context>

<pallas_src>
import functools

import jax
import jax.numpy as jnp
from jax import lax
from jax.experimental import pallas as pl
from jax.experimental.pallas import tpu as pltpu

KSIZE = 7
PAD = 3  # padding = 3 for kernel_size 7


def _spatial_attention_kernel(w_ref, mask_ref, x_ref, o_ref,
                              sum_ref, max_ref, buf_ref, *, C, W):
    """Grid = (N, num_C_chunks); one image per index on axis 0.

    w_ref   : SMEM (2*K*K,) f32        flattened conv weight (out=1, in=2, K, K)
    mask_ref: VMEM (K, L) f32          per-dx column-validity masks
    x_ref   : VMEM (C_CHUNK, H*W) f32  lane-dense channel chunk of one image
    o_ref   : VMEM (1, H*W) f32        lane-dense attention map of one image
    sum_ref : VMEM (1, H*W) f32        running channel sum   (scratch)
    max_ref : VMEM (1, H*W) f32        running channel max   (scratch)
    buf_ref : VMEM (2, L) f32          flat zero-tailed [avg, max] maps (scratch)
    """
    c_idx = pl.program_id(1)
    last = pl.num_programs(1) - 1
    HW = x_ref.shape[-1]
    L = buf_ref.shape[-1]

    # ---- Phase 1: chunked channel reduction (HBM-bound, lane-dense) --------
    x = x_ref[...].astype(jnp.float32)                 # (C_CHUNK, HW)
    part_sum = jnp.sum(x, axis=0, keepdims=True)       # (1, HW)
    part_max = jnp.max(x, axis=0, keepdims=True)       # (1, HW)

    @pl.when(c_idx == 0)
    def _init():
        sum_ref[...] = part_sum
        max_ref[...] = part_max

    @pl.when(c_idx > 0)
    def _accumulate():
        sum_ref[...] = sum_ref[...] + part_sum
        max_ref[...] = jnp.maximum(max_ref[...], part_max)

    # ---- Phase 2: 7x7 conv + sigmoid, once per image (last chunk) ----------
    @pl.when(c_idx == last)
    def _conv():
        # Flat buffers: image data in [0, HW), zeros in [HW, L).  The zero
        # tail absorbs every row-out-of-bounds tap through roll wrap-around.
        buf_ref[...] = jnp.zeros(buf_ref.shape, jnp.float32)
        buf_ref[0:1, 0:HW] = sum_ref[...] * jnp.float32(1.0 / C)   # channel mean
        buf_ref[1:2, 0:HW] = max_ref[...]                          # channel max
        avg_map = buf_ref[0:1, :]                                  # (1, L)
        max_map = buf_ref[1:2, :]                                  # (1, L)

        # Hoist the 2*49 SMEM scalar weight loads out of the MAC loop.
        wv = [w_ref[i] for i in range(2 * KSIZE * KSIZE)]

        acc = jnp.zeros((1, L), jnp.float32)
        for dx in range(KSIZE):
            col_mask = mask_ref[dx:dx + 1, :]                      # (1, L)
            inner = jnp.zeros((1, L), jnp.float32)
            for c_in, base in ((0, avg_map), (1, max_map)):
                for dy in range(KSIZE):
                    # Tap (dy, dx) of flat output position k reads flat
                    # position k + s0 (wrapping into the zero tail when the
                    # row is out of bounds).
                    s0 = (dy - PAD) * W + (dx - PAD)
                    shift = (-s0) % L
                    shifted = base if shift == 0 else pltpu.roll(
                        base, shift=shift, axis=1)
                    inner = inner + shifted * wv[
                        c_in * KSIZE * KSIZE + dy * KSIZE + dx]
            acc = acc + inner * col_mask      # one mask apply per dx (7 total)

        o_ref[...] = jax.nn.sigmoid(acc[:, 0:HW]).astype(o_ref.dtype)


def _pick_c_chunk(C, HW, budget_bytes=8 * 1024 * 1024):
    """Largest channel chunk (C itself, or a multiple of 8 dividing C) whose
    (chunk, H*W) f32 block stays within `budget_bytes` per pipeline buffer."""
    if C * HW * 4 <= budget_bytes:
        return C
    max_rows = max(8, budget_bytes // (HW * 4))
    divisors = [d for d in range(8, int(min(C, max_rows)) + 1, 8) if C % d == 0]
    return max(divisors) if divisors else C


def spatial_attention(x, conv_weight, *, c_chunk=None):
    """x: (N, C, H, W) f32; conv_weight: (1, 2, K, K) f32 -> (N, 1, H, W) f32."""
    N, C, H, W = x.shape
    HW = H * W

    if c_chunk is None:
        c_chunk = _pick_c_chunk(C, HW)
    assert C % c_chunk == 0, "c_chunk must divide C"
    n_chunks = C // c_chunk

    # Flat conv buffer: data [0, HW) + zero tail of >= 6*W, rounded up to a
    # multiple of 128 lanes.
    L = ((HW + 6 * W + 127) // 128) * 128

    # Lane-dense views (free reshape: contiguous NCHW -> NC(HW)).
    x_flat = x.reshape(N, C, HW).astype(jnp.float32)
    w_flat = conv_weight.reshape(-1).astype(jnp.float32)            # (2*K*K,)

    # Per-dx column-validity masks over flattened positions: the column of
    # flat output position k is (k mod W).  Computed once outside the kernel.
    col = jnp.arange(L, dtype=jnp.int32) % W
    offs = jnp.arange(KSIZE, dtype=jnp.int32)[:, None] - PAD        # (K, 1)
    col_masks = (((col[None, :] + offs) >= 0) &
                 ((col[None, :] + offs) < W)).astype(jnp.float32)   # (K, L)

    kernel = functools.partial(_spatial_attention_kernel, C=C, W=W)

    out_flat = pl.pallas_call(
        kernel,
        out_shape=jax.ShapeDtypeStruct((N, 1, HW), jnp.float32),
        grid_spec=pltpu.PrefetchScalarGridSpec(
            num_scalar_prefetch=0,
            grid=(N, n_chunks),
            in_specs=[
                pl.BlockSpec(memory_space=pltpu.SMEM),                  # weights
                pl.BlockSpec((KSIZE, L), lambda n, c: (0, 0)),          # col masks
                pl.BlockSpec((pl.Squeezed(), c_chunk, HW),
                             lambda n, c: (n, c, 0)),                   # x chunk
            ],
            out_specs=pl.BlockSpec((pl.Squeezed(), 1, HW),
                                   lambda n, c: (n, 0, 0)),
            scratch_shapes=[
                pltpu.VMEM((1, HW), jnp.float32),   # running channel sum
                pltpu.VMEM((1, HW), jnp.float32),   # running channel max
                pltpu.VMEM((2, L), jnp.float32),    # flat zero-tailed maps
            ],
        ),
        compiler_params=pltpu.CompilerParams(
            dimension_semantics=("parallel", "arbitrary"),
            # Explicit scoped-VMEM budget: safe on v5e/v6e (128 MiB physical)
            # and leaves headroom on v7x (64 MiB physical); block sizes above
            # are derived to keep double-buffered inputs well inside it.
            vmem_limit_bytes=32 * 1024 * 1024,
        ),
    )(w_flat, col_masks, x_flat)

    return out_flat.reshape(N, 1, H, W)


def spatial_attention_ref(x, conv_weight):
    """Pure-JAX reference (mirrors the PyTorch forward)."""
    avg = jnp.mean(x, axis=1, keepdims=True)
    mx = jnp.max(x, axis=1, keepdims=True)
    cat = jnp.concatenate([avg, mx], axis=1)          # (N, 2, H, W)
    y = lax.conv_general_dilated(
        cat, conv_weight,
        window_strides=(1, 1),
        padding=((PAD, PAD), (PAD, PAD)),
        dimension_numbers=("NCHW", "OIHW", "NCHW"),
    )
    return jax.nn.sigmoid(y)


if __name__ == "__main__":
    key = jax.random.PRNGKey(0)
    kx, kw, kx2 = jax.random.split(key, 3)

    # Primary shape (matches the CBAM SpatialAttention usage in the UNet).
    N, C, H, W = 2, 4, 16, 16
    x = jax.random.normal(kx, (N, C, H, W), dtype=jnp.float32)
    conv_weight = 0.1 * jax.random.normal(kw, (1, 2, KSIZE, KSIZE),
                                          dtype=jnp.float32)

    out = jax.block_until_ready(spatial_attention(x, conv_weight))
    ref = spatial_attention_ref(x, conv_weight)
    assert out.shape == (N, 1, H, W)
    assert jnp.allclose(out, ref, atol=2e-5, rtol=2e-5), "mismatch vs reference"

    # Second shape exercising the chunked channel reduction (grid axis 1 > 1).
    x2 = jax.random.normal(kx2, (1, 16, 8, 8), dtype=jnp.float32)
    out2 = jax.block_until_ready(spatial_attention(x2, conv_weight, c_chunk=8))
    ref2 = spatial_attention_ref(x2, conv_weight)
    assert jnp.allclose(out2, ref2, atol=2e-5, rtol=2e-5), "mismatch (chunked)"

    print("KERNEL_OK")
</pallas_src>

<mosaic_0001>
module attributes {stable_mosaic.version = 11 : i64} {
  func.func @_spatial_attention_kernel(%arg0: i32, %arg1: i32, %arg2: memref<98xf32, #tpu.memory_space<smem>>, %arg3: memref<7x384xf32, #tpu.memory_space<vmem>>, %arg4: memref<1x4x256xf32, #tpu.memory_space<vmem>>, %arg5: memref<1x1x256xf32, #tpu.memory_space<vmem>>, %arg6: memref<1x256xf32, #tpu.memory_space<vmem>>, %arg7: memref<1x256xf32, #tpu.memory_space<vmem>>, %arg8: memref<2x384xf32, #tpu.memory_space<vmem>>) attributes {dimension_semantics = [#tpu.dimension_semantics<parallel>, #tpu.dimension_semantics<arbitrary>], iteration_bounds = array<i64: 2, 1>, scalar_prefetch = 0 : i64, scratch_operands = 3 : i64, tpu.core_type = #tpu.core_type<tc>, window_params = [{transform_indices = @transform_0, window_bounds = array<i64: 98>}, {pipeline_mode = #tpu.pipeline_mode<synchronous>, transform_indices = @transform_1, window_bounds = array<i64: 7, 384>}, {transform_indices = @transform_2, window_bounds = array<i64: 1, 4, 256>}, {transform_indices = @transform_3, window_bounds = array<i64: 1, 1, 256>}]} {
    %c0 = arith.constant 0 : index
    %c0_0 = arith.constant 0 : index
    %c0_1 = arith.constant 0 : index
    %0 = vector.load %arg4[%c0, %c0_0, %c0_1] : memref<1x4x256xf32, #tpu.memory_space<vmem>>, vector<1x4x256xf32>
    %1 = vector.shape_cast %0 : vector<1x4x256xf32> to vector<4x256xf32>
    %cst = arith.constant dense<0.000000e+00> : vector<256xf32>
    %2 = vector.multi_reduction <add>, %1, %cst [0] : vector<4x256xf32> to vector<256xf32>
    %3 = vector.shape_cast %2 : vector<256xf32> to vector<1x256xf32>
    %cst_2 = arith.constant dense<0xFF800000> : vector<256xf32>
    %4 = vector.multi_reduction <maximumf>, %1, %cst_2 [0] : vector<4x256xf32> to vector<256xf32>
    %5 = vector.shape_cast %4 : vector<256xf32> to vector<1x256xf32>
    %c0_i32 = arith.constant 0 : i32
    %6 = arith.cmpi eq, %arg1, %c0_i32 : i32
    %7 = arith.extui %6 : i1 to i32
    %c0_i32_3 = arith.constant 0 : i32
    %8 = arith.cmpi ne, %7, %c0_i32_3 : i32
    scf.if %8 {
      %c0_8 = arith.constant 0 : index
      %c0_9 = arith.constant 0 : index
      %15 = vector.load %arg6[%c0_8, %c0_9] : memref<1x256xf32, #tpu.memory_space<vmem>>, vector<1x256xf32>
      tpu.vector_store %arg6[%c0_8, %c0_9], %3 {strides = array<i32>} : memref<1x256xf32, #tpu.memory_space<vmem>>, vector<1x256xf32>,
      %c0_10 = arith.constant 0 : index
      %c0_11 = arith.constant 0 : index
      %16 = vector.load %arg7[%c0_10, %c0_11] : memref<1x256xf32, #tpu.memory_space<vmem>>, vector<1x256xf32>
      tpu.vector_store %arg7[%c0_10, %c0_11], %5 {strides = array<i32>} : memref<1x256xf32, #tpu.memory_space<vmem>>, vector<1x256xf32>,
    } else {
    }
    %c0_i32_4 = arith.constant 0 : i32
    %9 = arith.cmpi sgt, %arg1, %c0_i32_4 : i32
    %10 = arith.extui %9 : i1 to i32
    %c0_i32_5 = arith.constant 0 : i32
    %11 = arith.cmpi ne, %10, %c0_i32_5 : i32
    scf.if %11 {
      %c0_8 = arith.constant 0 : index
      %c0_9 = arith.constant 0 : index
      %15 = vector.load %arg6[%c0_8, %c0_9] : memref<1x256xf32, #tpu.memory_space<vmem>>, vector<1x256xf32>
      %16 = arith.addf %15, %3 : vector<1x256xf32>
      %c0_10 = arith.constant 0 : index
      %c0_11 = arith.constant 0 : index
      %17 = vector.load %arg6[%c0_10, %c0_11] : memref<1x256xf32, #tpu.memory_space<vmem>>, vector<1x256xf32>
      tpu.vector_store %arg6[%c0_10, %c0_11], %16 {strides = array<i32>} : memref<1x256xf32, #tpu.memory_space<vmem>>, vector<1x256xf32>,
      %c0_12 = arith.constant 0 : index
      %c0_13 = arith.constant 0 : index
      %18 = vector.load %arg7[%c0_12, %c0_13] : memref<1x256xf32, #tpu.memory_space<vmem>>, vector<1x256xf32>
      %19 = arith.maximumf %18, %5 : vector<1x256xf32>
      %c0_14 = arith.constant 0 : index
      %c0_15 = arith.constant 0 : index
      %20 = vector.load %arg7[%c0_14, %c0_15] : memref<1x256xf32, #tpu.memory_space<vmem>>, vector<1x256xf32>
      tpu.vector_store %arg7[%c0_14, %c0_15], %19 {strides = array<i32>} : memref<1x256xf32, #tpu.memory_space<vmem>>, vector<1x256xf32>,
    } else {
    }
    %c0_i32_6 = arith.constant 0 : i32
    %12 = arith.cmpi eq, %arg1, %c0_i32_6 : i32
    %13 = arith.extui %12 : i1 to i32
    %c0_i32_7 = arith.constant 0 : i32
    %14 = arith.cmpi ne, %13, %c0_i32_7 : i32
    scf.if %14 {
      %cst_8 = arith.constant 0.000000e+00 : f32
      %15 = vector.broadcast %cst_8 : f32 to vector<2x384xf32>
      %c0_9 = arith.constant 0 : index
      %c0_10 = arith.constant 0 : index
      %16 = vector.load %arg8[%c0_9, %c0_10] : memref<2x384xf32, #tpu.memory_space<vmem>>, vector<2x384xf32>
      tpu.vector_store %arg8[%c0_9, %c0_10], %15 {strides = array<i32>} : memref<2x384xf32, #tpu.memory_space<vmem>>, vector<2x384xf32>,
      %c0_11 = arith.constant 0 : index
      %c0_12 = arith.constant 0 : index
      %17 = vector.load %arg6[%c0_11, %c0_12] : memref<1x256xf32, #tpu.memory_space<vmem>>, vector<1x256xf32>
      %cst_13 = arith.constant 2.500000e-01 : f32
      %18 = vector.broadcast %cst_13 : f32 to vector<1x256xf32>
      %19 = arith.mulf %17, %18 : vector<1x256xf32>
      %c0_14 = arith.constant 0 : index
      %c0_15 = arith.constant 0 : index
      %20 = vector.load %arg8[%c0_14, %c0_15] : memref<2x384xf32, #tpu.memory_space<vmem>>, vector<1x256xf32>
      tpu.vector_store %arg8[%c0_14, %c0_15], %19 {strides = array<i32>} : memref<2x384xf32, #tpu.memory_space<vmem>>, vector<1x256xf32>,
      %c0_16 = arith.constant 0 : index
      %c0_17 = arith.constant 0 : index
      %21 = vector.load %arg7[%c0_16, %c0_17] : memref<1x256xf32, #tpu.memory_space<vmem>>, vector<1x256xf32>
      %c1 = arith.constant 1 : index
      %c0_18 = arith.constant 0 : index
      %22 = vector.load %arg8[%c1, %c0_18] : memref<2x384xf32, #tpu.memory_space<vmem>>, vector<1x256xf32>
      tpu.vector_store %arg8[%c1, %c0_18], %21 {strides = array<i32>} : memref<2x384xf32, #tpu.memory_space<vmem>>, vector<1x256xf32>,
      %c0_19 = arith.constant 0 : index
      %c0_20 = arith.constant 0 : index
      %23 = vector.load %arg8[%c0_19, %c0_20] : memref<2x384xf32, #tpu.memory_space<vmem>>, vector<1x384xf32>
      %c1_21 = arith.constant 1 : index
      %c0_22 = arith.constant 0 : index
      %24 = vector.load %arg8[%c1_21, %c0_22] : memref<2x384xf32, #tpu.memory_space<vmem>>, vector<1x384xf32>
      %c0_23 = arith.constant 0 : index
      %25 = memref.load %arg2[%c0_23] : memref<98xf32, #tpu.memory_space<smem>>
      %c1_24 = arith.constant 1 : index
      %26 = memref.load %arg2[%c1_24] : memref<98xf32, #tpu.memory_space<smem>>
      %c2 = arith.constant 2 : index
      %27 = memref.load %arg2[%c2] : memref<98xf32, #tpu.memory_space<smem>>
      %c3 = arith.constant 3 : index
      %28 = memref.load %arg2[%c3] : memref<98xf32, #tpu.memory_space<smem>>
      %c4 = arith.constant 4 : index
      %29 = memref.load %arg2[%c4] : memref<98xf32, #tpu.memory_space<smem>>
      %c5 = arith.constant 5 : index
      %30 = memref.load %arg2[%c5] : memref<98xf32, #tpu.memory_space<smem>>
      %c6 = arith.constant 6 : index
      %31 = memref.load %arg2[%c6] : memref<98xf32, #tpu.memory_space<smem>>
      %c7 = arith.constant 7 : index
      %32 = memref.load %arg2[%c7] : memref<98xf32, #tpu.memory_space<smem>>
      %c8 = arith.constant 8 : index
      %33 = memref.load %arg2[%c8] : memref<98xf32, #tpu.memory_space<smem>>
      %c9 = arith.constant 9 : index
      %34 = memref.load %arg2[%c9] : memref<98xf32, #tpu.memory_space<smem>>
      %c10 = arith.constant 10 : index
      %35 = memref.load %arg2[%c10] : memref<98xf32, #tpu.memory_space<smem>>
      %c11 = arith.constant 11 : index
      %36 = memref.load %arg2[%c11] : memref<98xf32, #tpu.memory_space<smem>>
      %c12 = arith.constant 12 : index
      %37 = memref.load %arg2[%c12] : memref<98xf32, #tpu.memory_space<smem>>
      %c13 = arith.constant 13 : index
      %38 = memref.load %arg2[%c13] : memref<98xf32, #tpu.memory_space<smem>>
      %c14 = arith.constant 14 : index
      %39 = memref.load %arg2[%c14] : memref<98xf32, #tpu.memory_space<smem>>
      %c15 = arith.constant 15 : index
      %40 = memref.load %arg2[%c15] : memref<98xf32, #tpu.memory_space<smem>>
      %c16 = arith.constant 16 : index
      %41 = memref.load %arg2[%c16] : memref<98xf32, #tpu.memory_space<smem>>
      %c17 = arith.constant 17 : index
      %42 = memref.load %arg2[%c17] : memref<98xf32, #tpu.memory_space<smem>>
      %c18 = arith.constant 18 : index
      %43 = memref.load %arg2[%c18] : memref<98xf32, #tpu.memory_space<smem>>
      %c19 = arith.constant 19 : index
      %44 = memref.load %arg2[%c19] : memref<98xf32, #tpu.memory_space<smem>>
      %c20 = arith.constant 20 : index
      %45 = memref.load %arg2[%c20] : memref<98xf32, #tpu.memory_space<smem>>
      %c21 = arith.constant 21 : index
      %46 = memref.load %arg2[%c21] : memref<98xf32, #tpu.memory_space<smem>>
      %c22 = arith.constant 22 : index
      %47 = memref.load %arg2[%c22] : memref<98xf32, #tpu.memory_space<smem>>
      %c23 = arith.constant 23 : index
      %48 = memref.load %arg2[%c23] : memref<98xf32, #tpu.memory_space<smem>>
      %c24 = arith.constant 24 : index
      %49 = memref.load %arg2[%c24] : memref<98xf32, #tpu.memory_space<smem>>
      %c25 = arith.constant 25 : index
      %50 = memref.load %arg2[%c25] : memref<98xf32, #tpu.memory_space<smem>>
      %c26 = arith.constant 26 : index
      %51 = memref.load %arg2[%c26] : memref<98xf32, #tpu.memory_space<smem>>
      %c27 = arith.constant 27 : index
      %52 = memref.load %arg2[%c27] : memref<98xf32, #tpu.memory_space<smem>>
      %c28 = arith.constant 28 : index
      %53 = memref.load %arg2[%c28] : memref<98xf32, #tpu.memory_space<smem>>
      %c29 = arith.constant 29 : index
      %54 = memref.load %arg2[%c29] : memref<98xf32, #tpu.memory_space<smem>>
      %c30 = arith.constant 30 : index
      %55 = memref.load %arg2[%c30] : memref<98xf32, #tpu.memory_space<smem>>
      %c31 = arith.constant 31 : index
      %56 = memref.load %arg2[%c31] : memref<98xf32, #tpu.memory_space<smem>>
      %c32 = arith.constant 32 : index
      %57 = memref.load %arg2[%c32] : memref<98xf32, #tpu.memory_space<smem>>
      %c33 = arith.constant 33 : index
      %58 = memref.load %arg2[%c33] : memref<98xf32, #tpu.memory_space<smem>>
      %c34 = arith.constant 34 : index
      %59 = memref.load %arg2[%c34] : memref<98xf32, #tpu.memory_space<smem>>
      %c35 = arith.constant 35 : index
      %60 = memref.load %arg2[%c35] : memref<98xf32, #tpu.memory_space<smem>>
      %c36 = arith.constant 36 : index
      %61 = memref.load %arg2[%c36] : memref<98xf32, #tpu.memory_space<smem>>
      %c37 = arith.constant 37 : index
      %62 = memref.load %arg2[%c37] : memref<98xf32, #tpu.memory_space<smem>>
      %c38 = arith.constant 38 : index
      %63 = memref.load %arg2[%c38] : memref<98xf32, #tpu.memory_space<smem>>
      %c39 = arith.constant 39 : index
      %64 = memref.load %arg2[%c39] : memref<98xf32, #tpu.memory_space<smem>>
      %c40 = arith.constant 40 : index
      %65 = memref.load %arg2[%c40] : memref<98xf32, #tpu.memory_space<smem>>
      %c41 = arith.constant 41 : index
      %66 = memref.load %arg2[%c41] : memref<98xf32, #tpu.memory_space<smem>>
      %c42 = arith.constant 42 : index
      %67 = memref.load %arg2[%c42] : memref<98xf32, #tpu.memory_space<smem>>
      %c43 = arith.constant 43 : index
      %68 = memref.load %arg2[%c43] : memref<98xf32, #tpu.memory_space<smem>>
      %c44 = arith.constant 44 : index
      %69 = memref.load %arg2[%c44] : memref<98xf32, #tpu.memory_space<smem>>
      %c45 = arith.constant 45 : index
      %70 = memref.load %arg2[%c45] : memref<98xf32, #tpu.memory_space<smem>>
      %c46 = arith.constant 46 : index
      %71 = memref.load %arg2[%c46] : memref<98xf32, #tpu.memory_space<smem>>
      %c47 = arith.constant 47 : index
      %72 = memref.load %arg2[%c47] : memref<98xf32, #tpu.memory_space<smem>>
      %c48 = arith.constant 48 : index
      %73 = memref.load %arg2[%c48] : memref<98xf32, #tpu.memory_space<smem>>
      %c49 = arith.constant 49 : index
      %74 = memref.load %arg2[%c49] : memref<98xf32, #tpu.memory_space<smem>>
      %c50 = arith.constant 50 : index
      %75 = memref.load %arg2[%c50] : memref<98xf32, #tpu.memory_space<smem>>
      %c51 = arith.constant 51 : index
      %76 = memref.load %arg2[%c51] : memref<98xf32, #tpu.memory_space<smem>>
      %c52 = arith.constant 52 : index
      %77 = memref.load %arg2[%c52] : memref<98xf32, #tpu.memory_space<smem>>
      %c53 = arith.constant 53 : index
      %78 = memref.load %arg2[%c53] : memref<98xf32, #tpu.memory_space<smem>>
      %c54 = arith.constant 54 : index
      %79 = memref.load %arg2[%c54] : memref<98xf32, #tpu.memory_space<smem>>
      %c55 = arith.constant 55 : index
      %80 = memref.load %arg2[%c55] : memref<98xf32, #tpu.memory_space<smem>>
      %c56 = arith.constant 56 : index
      %81 = memref.load %arg2[%c56] : memref<98xf32, #tpu.memory_space<smem>>
      %c57 = arith.constant 57 : index
      %82 = memref.load %arg2[%c57] : memref<98xf32, #tpu.memory_space<smem>>
      %c58 = arith.constant 58 : index
      %83 = memref.load %arg2[%c58] : memref<98xf32, #tpu.memory_space<smem>>
      %c59 = arith.constant 59 : index
      %84 = memref.load %arg2[%c59] : memref<98xf32, #tpu.memory_space<smem>>
      %c60 = arith.constant 60 : index
      %85 = memref.load %arg2[%c60] : memref<98xf32, #tpu.memory_space<smem>>
      %c61 = arith.constant 61 : index
      %86 = memref.load %arg2[%c61] : memref<98xf32, #tpu.memory_space<smem>>
      %c62 = arith.constant 62 : index
      %87 = memref.load %arg2[%c62] : memref<98xf32, #tpu.memory_space<smem>>
      %c63 = arith.constant 63 : index
      %88 = memref.load %arg2[%c63] : memref<98xf32, #tpu.memory_space<smem>>
      %c64 = arith.constant 64 : index
      %89 = memref.load %arg2[%c64] : memref<98xf32, #tpu.memory_space<smem>>
      %c65 = arith.constant 65 : index
      %90 = memref.load %arg2[%c65] : memref<98xf32, #tpu.memory_space<smem>>
      %c66 = arith.constant 66 : index
      %91 = memref.load %arg2[%c66] : memref<98xf32, #tpu.memory_space<smem>>
      %c67 = arith.constant 67 : index
      %92 = memref.load %arg2[%c67] : memref<98xf32, #tpu.memory_space<smem>>
      %c68 = arith.constant 68 : index
      %93 = memref.load %arg2[%c68] : memref<98xf32, #tpu.memory_space<smem>>
      %c69 = arith.constant 69 : index
      %94 = memref.load %arg2[%c69] : memref<98xf32, #tpu.memory_space<smem>>
      %c70 = arith.constant 70 : index
      %95 = memref.load %arg2[%c70] : memref<98xf32, #tpu.memory_space<smem>>
      %c71 = arith.constant 71 : index
      %96 = memref.load %arg2[%c71] : memref<98xf32, #tpu.memory_space<smem>>
      %c72 = arith.constant 72 : index
      %97 = memref.load %arg2[%c72] : memref<98xf32, #tpu.memory_space<smem>>
      %c73 = arith.constant 73 : index
      %98 = memref.load %arg2[%c73] : memref<98xf32, #tpu.memory_space<smem>>
      %c74 = arith.constant 74 : index
      %99 = memref.load %arg2[%c74] : memref<98xf32, #tpu.memory_space<smem>>
      %c75 = arith.constant 75 : index
      %100 = memref.load %arg2[%c75] : memref<98xf32, #tpu.memory_space<smem>>
      %c76 = arith.constant 76 : index
      %101 = memref.load %arg2[%c76] : memref<98xf32, #tpu.memory_space<smem>>
      %c77 = arith.constant 77 : index
      %102 = memref.load %arg2[%c77] : memref<98xf32, #tpu.memory_space<smem>>
      %c78 = arith.constant 78 : index
      %103 = memref.load %arg2[%c78] : memref<98xf32, #tpu.memory_space<smem>>
      %c79 = arith.constant 79 : index
      %104 = memref.load %arg2[%c79] : memref<98xf32, #tpu.memory_space<smem>>
      %c80 = arith.constant 80 : index
      %105 = memref.load %arg2[%c80] : memref<98xf32, #tpu.memory_space<smem>>
      %c81 = arith.constant 81 : index
      %106 = memref.load %arg2[%c81] : memref<98xf32, #tpu.memory_space<smem>>
      %c82 = arith.constant 82 : index
      %107 = memref.load %arg2[%c82] : memref<98xf32, #tpu.memory_space<smem>>
      %c83 = arith.constant 83 : index
      %108 = memref.load %arg2[%c83] : memref<98xf32, #tpu.memory_space<smem>>
      %c84 = arith.constant 84 : index
      %109 = memref.load %arg2[%c84] : memref<98xf32, #tpu.memory_space<smem>>
      %c85 = arith.constant 85 : index
      %110 = memref.load %arg2[%c85] : memref<98xf32, #tpu.memory_space<smem>>
      %c86 = arith.constant 86 : index
      %111 = memref.load %arg2[%c86] : memref<98xf32, #tpu.memory_space<smem>>
      %c87 = arith.constant 87 : index
      %112 = memref.load %arg2[%c87] : memref<98xf32, #tpu.memory_space<smem>>
      %c88 = arith.constant 88 : index
      %113 = memref.load %arg2[%c88] : memref<98xf32, #tpu.memory_space<smem>>
      %c89 = arith.constant 89 : index
      %114 = memref.load %arg2[%c89] : memref<98xf32, #tpu.memory_space<smem>>
      %c90 = arith.constant 90 : index
      %115 = memref.load %arg2[%c90] : memref<98xf32, #tpu.memory_space<smem>>
      %c91 = arith.constant 91 : index
      %116 = memref.load %arg2[%c91] : memref<98xf32, #tpu.memory_space<smem>>
      %c92 = arith.constant 92 : index
      %117 = memref.load %arg2[%c92] : memref<98xf32, #tpu.memory_space<smem>>
      %c93 = arith.constant 93 : index
      %118 = memref.load %arg2[%c93] : memref<98xf32, #tpu.memory_space<smem>>
      %c94 = arith.constant 94 : index
      %119 = memref.load %arg2[%c94] : memref<98xf32, #tpu.memory_space<smem>>
      %c95 = arith.constant 95 : index
      %120 = memref.load %arg2[%c95] : memref<98xf32, #tpu.memory_space<smem>>
      %c96 = arith.constant 96 : index
      %121 = memref.load %arg2[%c96] : memref<98xf32, #tpu.memory_space<smem>>
      %c97 = arith.constant 97 : index
      %122 = memref.load %arg2[%c97] : memref<98xf32, #tpu.memory_space<smem>>
      %cst_25 = arith.constant 0.000000e+00 : f32
      %123 = vector.broadcast %cst_25 : f32 to vector<1x384xf32>
      %c0_26 = arith.constant 0 : index
      %c0_27 = arith.constant 0 : index
      %124 = vector.load %arg3[%c0_26, %c0_27] : memref<7x384xf32, #tpu.memory_space<vmem>>, vector<1x384xf32>
      %cst_28 = arith.constant 0.000000e+00 : f32
      %125 = vector.broadcast %cst_28 : f32 to vector<1x384xf32>
      %c51_i32 = arith.constant 51 : i32
      %126 = tpu.dynamic_rotate %23 by %c51_i32 dim 1 : vector<1x384xf32>, i32 -> vector<1x384xf32>
      %127 = vector.broadcast %25 : f32 to vector<1x384xf32>
      %128 = arith.mulf %126, %127 : vector<1x384xf32>
      %129 = arith.addf %125, %128 : vector<1x384xf32>
      %c35_i32 = arith.constant 35 : i32
      %130 = tpu.dynamic_rotate %23 by %c35_i32 dim 1 : vector<1x384xf32>, i32 -> vector<1x384xf32>
      %131 = vector.broadcast %32 : f32 to vector<1x384xf32>
      %132 = arith.mulf %130, %131 : vector<1x384xf32>
      %133 = arith.addf %129, %132 : vector<1x384xf32>
      %c19_i32 = arith.constant 19 : i32
      %134 = tpu.dynamic_rotate %23 by %c19_i32 dim 1 : vector<1x384xf32>, i32 -> vector<1x384xf32>
      %135 = vector.broadcast %39 : f32 to vector<1x384xf32>
      %136 = arith.mulf %134, %135 : vector<1x384xf32>
      %137 = arith.addf %133, %136 : vector<1x384xf32>
      %c3_i32 = arith.constant 3 : i32
      %138 = tpu.dynamic_rotate %23 by %c3_i32 dim 1 : vector<1x384xf32>, i32 -> vector<1x384xf32>
      %139 = vector.broadcast %46 : f32 to vector<1x384xf32>
      %140 = arith.mulf %138, %139 : vector<1x384xf32>
      %141 = arith.addf %137, %140 : vector<1x384xf32>
      %c371_i32 = arith.constant 371 : i32
      %142 = tpu.dynamic_rotate %23 by %c371_i32 dim 1 : vector<1x384xf32>, i32 -> vector<1x384xf32>
      %143 = vector.broadcast %53 : f32 to vector<1x384xf32>
      %144 = arith.mulf %142, %143 : vector<1x384xf32>
      %145 = arith.addf %141, %144 : vector<1x384xf32>
      %c355_i32 = arith.constant 355 : i32
      %146 = tpu.dynamic_rotate %23 by %c355_i32 dim 1 : vector<1x384xf32>, i32 -> vector<1x384xf32>
      %147 = vector.broadcast %60 : f32 to vector<1x384xf32>
      %148 = arith.mulf %146, %147 : vector<1x384xf32>
      %149 = arith.addf %145, %148 : vector<1x384xf32>
      %c339_i32 = arith.constant 339 : i32
      %150 = tpu.dynamic_rotate %23 by %c339_i32 dim 1 : vector<1x384xf32>, i32 -> vector<1x384xf32>
      %151 = vector.broadcast %67 : f32 to vector<1x384xf32>
      %152 = arith.mulf %150, %151 : vector<1x384xf32>
      %153 = arith.addf %149, %152 : vector<1x384xf32>
      %c51_i32_29 = arith.constant 51 : i32
      %154 = tpu.dynamic_rotate %24 by %c51_i32_29 dim 1 : vector<1x384xf32>, i32 -> vector<1x384xf32>
      %155 = vector.broadcast %74 : f32 to vector<1x384xf32>
      %156 = arith.mulf %154, %155 : vector<1x384xf32>
      %157 = arith.addf %153, %156 : vector<1x384xf32>
      %c35_i32_30 = arith.constant 35 : i32
      %158 = tpu.dynamic_rotate %24 by %c35_i32_30 dim 1 : vector<1x384xf32>, i32 -> vector<1x384xf32>
      %159 = vector.broadcast %81 : f32 to vector<1x384xf32>
      %160 = arith.mulf %158, %159 : vector<1x384xf32>
      %161 = arith.addf %157, %160 : vector<1x384xf32>
      %c19_i32_31 = arith.constant 19 : i32
      %162 = tpu.dynamic_rotate %24 by %c19_i32_31 dim 1 : vector<1x384xf32>, i32 -> vector<1x384xf32>
      %163 = vector.broadcast %88 : f32 to vector<1x384xf32>
      %164 = arith.mulf %162, %163 : vector<1x384xf32>
      %165 = arith.addf %161, %164 : vector<1x384xf32>
      %c3_i32_32 = arith.constant 3 : i32
      %166 = tpu.dynamic_rotate %24 by %c3_i32_32 dim 1 : vector<1x384xf32>, i32 -> vector<1x384xf32>
      %167 = vector.broadcast %95 : f32 to vector<1x384xf32>
      %168 = arith.mulf %166, %167 : vector<1x384xf32>
      %169 = arith.addf %165, %168 : vector<1x384xf32>
      %c371_i32_33 = arith.constant 371 : i32
      %170 = tpu.dynamic_rotate %24 by %c371_i32_33 dim 1 : vector<1x384xf32>, i32 -> vector<1x384xf32>
      %171 = vector.broadcast %102 : f32 to vector<1x384xf32>
      %172 = arith.mulf %170, %171 : vector<1x384xf32>
      %173 = arith.addf %169, %172 : vector<1x384xf32>
      %c355_i32_34 = arith.constant 355 : i32
      %174 = tpu.dynamic_rotate %24 by %c355_i32_34 dim 1 : vector<1x384xf32>, i32 -> vector<1x384xf32>
      %175 = vector.broadcast %109 : f32 to vector<1x384xf32>
      %176 = arith.mulf %174, %175 : vector<1x384xf32>
      %177 = arith.addf %173, %176 : vector<1x384xf32>
      %c339_i32_35 = arith.constant 339 : i32
      %178 = tpu.dynamic_rotate %24 by %c339_i32_35 dim 1 : vector<1x384xf32>, i32 -> vector<1x384xf32>
      %179 = vector.broadcast %116 : f32 to vector<1x384xf32>
      %180 = arith.mulf %178, %179 : vector<1x384xf32>
      %181 = arith.addf %177, %180 : vector<1x384xf32>
      %182 = arith.mulf %181, %124 : vector<1x384xf32>
      %183 = arith.addf %123, %182 : vector<1x384xf32>
      %c1_36 = arith.constant 1 : index
      %c0_37 = arith.constant 0 : index
      %184 = vector.load %arg3[%c1_36, %c0_37] : memref<7x384xf32, #tpu.memory_space<vmem>>, vector<1x384xf32>
      %cst_38 = arith.constant 0.000000e+00 : f32
      %185 = vector.broadcast %cst_38 : f32 to vector<1x384xf32>
      %c50_i32 = arith.constant 50 : i32
      %186 = tpu.dynamic_rotate %23 by %c50_i32 dim 1 : vector<1x384xf32>, i32 -> vector<1x384xf32>
      %187 = vector.broadcast %26 : f32 to vector<1x384xf32>
      %188 = arith.mulf %186, %187 : vector<1x384xf32>
      %189 = arith.addf %185, %188 : vector<1x384xf32>
      %c34_i32 = arith.constant 34 : i32
      %190 = tpu.dynamic_rotate %23 by %c34_i32 dim 1 : vector<1x384xf32>, i32 -> vector<1x384xf32>
      %191 = vector.broadcast %33 : f32 to vector<1x384xf32>
      %192 = arith.mulf %190, %191 : vector<1x384xf32>
      %193 = arith.addf %189, %192 : vector<1x384xf32>
      %c18_i32 = arith.constant 18 : i32
      %194 = tpu.dynamic_rotate %23 by %c18_i32 dim 1 : vector<1x384xf32>, i32 -> vector<1x384xf32>
      %195 = vector.broadcast %40 : f32 to vector<1x384xf32>
      %196 = arith.mulf %194, %195 : vector<1x384xf32>
      %197 = arith.addf %193, %196 : vector<1x384xf32>
      %c2_i32 = arith.constant 2 : i32
      %198 = tpu.dynamic_rotate %23 by %c2_i32 dim 1 : vector<1x384xf32>, i32 -> vector<1x384xf32>
      %199 = vector.broadcast %47 : f32 to vector<1x384xf32>
      %200 = arith.mulf %198, %199 : vector<1x384xf32>
      %201 = arith.addf %197, %200 : vector<1x384xf32>
      %c370_i32 = arith.constant 370 : i32
      %202 = tpu.dynamic_rotate %23 by %c370_i32 dim 1 : vector<1x384xf32>, i32 -> vector<1x384xf32>
      %203 = vector.broadcast %54 : f32 to vector<1x384xf32>
      %204 = arith.mulf %202, %203 : vector<1x384xf32>
      %205 = arith.addf %201, %204 : vector<1x384xf32>
      %c354_i32 = arith.constant 354 : i32
      %206 = tpu.dynamic_rotate %23 by %c354_i32 dim 1 : vector<1x384xf32>, i32 -> vector<1x384xf32>
      %207 = vector.broadcast %61 : f32 to vector<1x384xf32>
      %208 = arith.mulf %206, %207 : vector<1x384xf32>
      %209 = arith.addf %205, %208 : vector<1x384xf32>
      %c338_i32 = arith.constant 338 : i32
      %210 = tpu.dynamic_rotate %23 by %c338_i32 dim 1 : vector<1x384xf32>, i32 -> vector<1x384xf32>
      %211 = vector.broadcast %68 : f32 to vector<1x384xf32>
      %212 = arith.mulf %210, %211 : vector<1x384xf32>
      %213 = arith.addf %209, %212 : vector<1x384xf32>
      %c50_i32_39 = arith.constant 50 : i32
      %214 = tpu.dynamic_rotate %24 by %c50_i32_39 dim 1 : vector<1x384xf32>, i32 -> vector<1x384xf32>
      %215 = vector.broadcast %75 : f32 to vector<1x384xf32>
      %216 = arith.mulf %214, %215 : vector<1x384xf32>
      %217 = arith.addf %213, %216 : vector<1x384xf32>
      %c34_i32_40 = arith.constant 34 : i32
      %218 = tpu.dynamic_rotate %24 by %c34_i32_40 dim 1 : vector<1x384xf32>, i32 -> vector<1x384xf32>
      %219 = vector.broadcast %82 : f32 to vector<1x384xf32>
      %220 = arith.mulf %218, %219 : vector<1x384xf32>
      %221 = arith.addf %217, %220 : vector<1x384xf32>
      %c18_i32_41 = arith.constant 18 : i32
      %222 = tpu.dynamic_rotate %24 by %c18_i32_41 dim 1 : vector<1x384xf32>, i32 -> vector<1x384xf32>
      %223 = vector.broadcast %89 : f32 to vector<1x384xf32>
      %224 = arith.mulf %222, %223 : vector<1x384xf32>
      %225 = arith.addf %221, %224 : vector<1x384xf32>
      %c2_i32_42 = arith.constant 2 : i32
      %226 = tpu.dynamic_rotate %24 by %c2_i32_42 dim 1 : vector<1x384xf32>, i32 -> vector<1x384xf32>
      %227 = vector.broadcast %96 : f32 to vector<1x384xf32>
      %228 = arith.mulf %226, %227 : vector<1x384xf32>
      %229 = arith.addf %225, %228 : vector<1x384xf32>
      %c370_i32_43 = arith.constant 370 : i32
      %230 = tpu.dynamic_rotate %24 by %c370_i32_43 dim 1 : vector<1x384xf32>, i32 -> vector<1x384xf32>
      %231 = vector.broadcast %103 : f32 to vector<1x384xf32>
      %232 = arith.mulf %230, %231 : vector<1x384xf32>
      %233 = arith.addf %229, %232 : vector<1x384xf32>
      %c354_i32_44 = arith.constant 354 : i32
      %234 = tpu.dynamic_rotate %24 by %c354_i32_44 dim 1 : vector<1x384xf32>, i32 -> vector<1x384xf32>
      %235 = vector.broadcast %110 : f32 to vector<1x384xf32>
      %236 = arith.mulf %234, %235 : vector<1x384xf32>
      %237 = arith.addf %233, %236 : vector<1x384xf32>
      %c338_i32_45 = arith.constant 338 : i32
      %238 = tpu.dynamic_rotate %24 by %c338_i32_45 dim 1 : vector<1x384xf32>, i32 -> vector<1x384xf32>
      %239 = vector.broadcast %117 : f32 to vector<1x384xf32>
      %240 = arith.mulf %238, %239 : vector<1x384xf32>
      %241 = arith.addf %237, %240 : vector<1x384xf32>
      %242 = arith.mulf %241, %184 : vector<1x384xf32>
      %243 = arith.addf %183, %242 : vector<1x384xf32>
      %c2_46 = arith.constant 2 : index
      %c0_47 = arith.constant 0 : index
      %244 = vector.load %arg3[%c2_46, %c0_47] : memref<7x384xf32, #tpu.memory_space<vmem>>, vector<1x384xf32>
      %cst_48 = arith.constant 0.000000e+00 : f32
      %245 = vector.broadcast %cst_48 : f32 to vector<1x384xf32>
      %c49_i32 = arith.constant 49 : i32
      %246 = tpu.dynamic_rotate %23 by %c49_i32 dim 1 : vector<1x384xf32>, i32 -> vector<1x384xf32>
      %247 = vector.broadcast %27 : f32 to vector<1x384xf32>
      %248 = arith.mulf %246, %247 : vector<1x384xf32>
      %249 = arith.addf %245, %248 : vector<1x384xf32>
      %c33_i32 = arith.constant 33 : i32
      %250 = tpu.dynamic_rotate %23 by %c33_i32 dim 1 : vector<1x384xf32>, i32 -> vector<1x384xf32>
      %251 = vector.broadcast %34 : f32 to vector<1x384xf32>
      %252 = arith.mulf %250, %251 : vector<1x384xf32>
      %253 = arith.addf %249, %252 : vector<1x384xf32>
      %c17_i32 = arith.constant 17 : i32
      %254 = tpu.dynamic_rotate %23 by %c17_i32 dim 1 : vector<1x384xf32>, i32 -> vector<1x384xf32>
      %255 = vector.broadcast %41 : f32 to vector<1x384xf32>
      %256 = arith.mulf %254, %255 : vector<1x384xf32>
      %257 = arith.addf %253, %256 : vector<1x384xf32>
      %c1_i32 = arith.constant 1 : i32
      %258 = tpu.dynamic_rotate %23 by %c1_i32 dim 1 : vector<1x384xf32>, i32 -> vector<1x384xf32>
      %259 = vector.broadcast %48 : f32 to vector<1x384xf32>
      %260 = arith.mulf %258, %259 : vector<1x384xf32>
      %261 = arith.addf %257, %260 : vector<1x384xf32>
      %c369_i32 = arith.constant 369 : i32
      %262 = tpu.dynamic_rotate %23 by %c369_i32 dim 1 : vector<1x384xf32>, i32 -> vector<1x384xf32>
      %263 = vector.broadcast %55 : f32 to vector<1x384xf32>
      %264 = arith.mulf %262, %263 : vector<1x384xf32>
      %265 = arith.addf %261, %264 : vector<1x384xf32>
      %c353_i32 = arith.constant 353 : i32
      %266 = tpu.dynamic_rotate %23 by %c353_i32 dim 1 : vector<1x384xf32>, i32 -> vector<1x384xf32>
      %267 = vector.broadcast %62 : f32 to vector<1x384xf32>
      %268 = arith.mulf %266, %267 : vector<1x384xf32>
      %269 = arith.addf %265, %268 : vector<1x384xf32>
      %c337_i32 = arith.constant 337 : i32
      %270 = tpu.dynamic_rotate %23 by %c337_i32 dim 1 : vector<1x384xf32>, i32 -> vector<1x384xf32>
      %271 = vector.broadcast %69 : f32 to vector<1x384xf32>
      %272 = arith.mulf %270, %271 : vector<1x384xf32>
      %273 = arith.addf %269, %272 : vector<1x384xf32>
      %c49_i32_49 = arith.constant 49 : i32
      %274 = tpu.dynamic_rotate %24 by %c49_i32_49 dim 1 : vector<1x384xf32>, i32 -> vector<1x384xf32>
      %275 = vector.broadcast %76 : f32 to vector<1x384xf32>
      %276 = arith.mulf %274, %275 : vector<1x384xf32>
      %277 = arith.addf %273, %276 : vector<1x384xf32>
      %c33_i32_50 = arith.constant 33 : i32
      %278 = tpu.dynamic_rotate %24 by %c33_i32_50 dim 1 : vector<1x384xf32>, i32 -> vector<1x384xf32>
      %279 = vector.broadcast %83 : f32 to vector<1x384xf32>
      %280 = arith.mulf %278, %279 : vector<1x384xf32>
      %281 = arith.addf %277, %280 : vector<1x384xf32>
      %c17_i32_51 = arith.constant 17 : i32
      %282 = tpu.dynamic_rotate %24 by %c17_i32_51 dim 1 : vector<1x384xf32>, i32 -> vector<1x384xf32>
      %283 = vector.broadcast %90 : f32 to vector<1x384xf32>
      %284 = arith.mulf %282, %283 : vector<1x384xf32>
      %285 = arith.addf %281, %284 : vector<1x384xf32>
      %c1_i32_52 = arith.constant 1 : i32
      %286 = tpu.dynamic_rotate %24 by %c1_i32_52 dim 1 : vector<1x384xf32>, i32 -> vector<1x384xf32>
      %287 = vector.broadcast %97 : f32 to vector<1x384xf32>
      %288 = arith.mulf %286, %287 : vector<1x384xf32>
      %289 = arith.addf %285, %288 : vector<1x384xf32>
      %c369_i32_53 = arith.constant 369 : i32
      %290 = tpu.dynamic_rotate %24 by %c369_i32_53 dim 1 : vector<1x384xf32>, i32 -> vector<1x384xf32>
      %291 = vector.broadcast %104 : f32 to vector<1x384xf32>
      %292 = arith.mulf %290, %291 : vector<1x384xf32>
      %293 = arith.addf %289, %292 : vector<1x384xf32>
      %c353_i32_54 = arith.constant 353 : i32
      %294 = tpu.dynamic_rotate %24 by %c353_i32_54 dim 1 : vector<1x384xf32>, i32 -> vector<1x384xf32>
      %295 = vector.broadcast %111 : f32 to vector<1x384xf32>
      %296 = arith.mulf %294, %295 : vector<1x384xf32>
      %297 = arith.addf %293, %296 : vector<1x384xf32>
      %c337_i32_55 = arith.constant 337 : i32
      %298 = tpu.dynamic_rotate %24 by %c337_i32_55 dim 1 : vector<1x384xf32>, i32 -> vector<1x384xf32>
      %299 = vector.broadcast %118 : f32 to vector<1x384xf32>
      %300 = arith.mulf %298, %299 : vector<1x384xf32>
      %301 = arith.addf %297, %300 : vector<1x384xf32>
      %302 = arith.mulf %301, %244 : vector<1x384xf32>
      %303 = arith.addf %243, %302 : vector<1x384xf32>
      %c3_56 = arith.constant 3 : index
      %c0_57 = arith.constant 0 : index
      %304 = vector.load %arg3[%c3_56, %c0_57] : memref<7x384xf32, #tpu.memory_space<vmem>>, vector<1x384xf32>
      %cst_58 = arith.constant 0.000000e+00 : f32
      %305 = vector.broadcast %cst_58 : f32 to vector<1x384xf32>
      %c48_i32 = arith.constant 48 : i32
      %306 = tpu.dynamic_rotate %23 by %c48_i32 dim 1 : vector<1x384xf32>, i32 -> vector<1x384xf32>
      %307 = vector.broadcast %28 : f32 to vector<1x384xf32>
      %308 = arith.mulf %306, %307 : vector<1x384xf32>
      %309 = arith.addf %305, %308 : vector<1x384xf32>
      %c32_i32 = arith.constant 32 : i32
      %310 = tpu.dynamic_rotate %23 by %c32_i32 dim 1 : vector<1x384xf32>, i32 -> vector<1x384xf32>
      %311 = vector.broadcast %35 : f32 to vector<1x384xf32>
      %312 = arith.mulf %310, %311 : vector<1x384xf32>
      %313 = arith.addf %309, %312 : vector<1x384xf32>
      %c16_i32 = arith.constant 16 : i32
      %314 = tpu.dynamic_rotate %23 by %c16_i32 dim 1 : vector<1x384xf32>, i32 -> vector<1x384xf32>
      %315 = vector.broadcast %42 : f32 to vector<1x384xf32>
      %316 = arith.mulf %314, %315 : vector<1x384xf32>
      %317 = arith.addf %313, %316 : vector<1x384xf32>
      %318 = vector.broadcast %49 : f32 to vector<1x384xf32>
      %319 = arith.mulf %23, %318 : vector<1x384xf32>
      %320 = arith.addf %317, %319 : vector<1x384xf32>
      %c368_i32 = arith.constant 368 : i32
      %321 = tpu.dynamic_rotate %23 by %c368_i32 dim 1 : vector<1x384xf32>, i32 -> vector<1x384xf32>
      %322 = vector.broadcast %56 : f32 to vector<1x384xf32>
      %323 = arith.mulf %321, %322 : vector<1x384xf32>
      %324 = arith.addf %320, %323 : vector<1x384xf32>
      %c352_i32 = arith.constant 352 : i32
      %325 = tpu.dynamic_rotate %23 by %c352_i32 dim 1 : vector<1x384xf32>, i32 -> vector<1x384xf32>
      %326 = vector.broadcast %63 : f32 to vector<1x384xf32>
      %327 = arith.mulf %325, %326 : vector<1x384xf32>
      %328 = arith.addf %324, %327 : vector<1x384xf32>
      %c336_i32 = arith.constant 336 : i32
      %329 = tpu.dynamic_rotate %23 by %c336_i32 dim 1 : vector<1x384xf32>, i32 -> vector<1x384xf32>
      %330 = vector.broadcast %70 : f32 to vector<1x384xf32>
      %331 = arith.mulf %329, %330 : vector<1x384xf32>
      %332 = arith.addf %328, %331 : vector<1x384xf32>
      %c48_i32_59 = arith.constant 48 : i32
      %333 = tpu.dynamic_rotate %24 by %c48_i32_59 dim 1 : vector<1x384xf32>, i32 -> vector<1x384xf32>
      %334 = vector.broadcast %77 : f32 to vector<1x384xf32>
      %335 = arith.mulf %333, %334 : vector<1x384xf32>
      %336 = arith.addf %332, %335 : vector<1x384xf32>
      %c32_i32_60 = arith.constant 32 : i32
      %337 = tpu.dynamic_rotate %24 by %c32_i32_60 dim 1 : vector<1x384xf32>, i32 -> vector<1x384xf32>
      %338 = vector.broadcast %84 : f32 to vector<1x384xf32>
      %339 = arith.mulf %337, %338 : vector<1x384xf32>
      %340 = arith.addf %336, %339 : vector<1x384xf32>
      %c16_i32_61 = arith.constant 16 : i32
      %341 = tpu.dynamic_rotate %24 by %c16_i32_61 dim 1 : vector<1x384xf32>, i32 -> vector<1x384xf32>
      %342 = vector.broadcast %91 : f32 to vector<1x384xf32>
      %343 = arith.mulf %341, %342 : vector<1x384xf32>
      %344 = arith.addf %340, %343 : vector<1x384xf32>
      %345 = vector.broadcast %98 : f32 to vector<1x384xf32>
      %346 = arith.mulf %24, %345 : vector<1x384xf32>
      %347 = arith.addf %344, %346 : vector<1x384xf32>
      %c368_i32_62 = arith.constant 368 : i32
      %348 = tpu.dynamic_rotate %24 by %c368_i32_62 dim 1 : vector<1x384xf32>, i32 -> vector<1x384xf32>
      %349 = vector.broadcast %105 : f32 to vector<1x384xf32>
      %350 = arith.mulf %348, %349 : vector<1x384xf32>
      %351 = arith.addf %347, %350 : vector<1x384xf32>
      %c352_i32_63 = arith.constant 352 : i32
      %352 = tpu.dynamic_rotate %24 by %c352_i32_63 dim 1 : vector<1x384xf32>, i32 -> vector<1x384xf32>
      %353 = vector.broadcast %112 : f32 to vector<1x384xf32>
      %354 = arith.mulf %352, %353 : vector<1x384xf32>
      %355 = arith.addf %351, %354 : vector<1x384xf32>
      %c336_i32_64 = arith.constant 336 : i32
      %356 = tpu.dynamic_rotate %24 by %c336_i32_64 dim 1 : vector<1x384xf32>, i32 -> vector<1x384xf32>
      %357 = vector.broadcast %119 : f32 to vector<1x384xf32>
      %358 = arith.mulf %356, %357 : vector<1x384xf32>
      %359 = arith.addf %355, %358 : vector<1x384xf32>
      %360 = arith.mulf %359, %304 : vector<1x384xf32>
      %361 = arith.addf %303, %360 : vector<1x384xf32>
      %c4_65 = arith.constant 4 : index
      %c0_66 = arith.constant 0 : index
      %362 = vector.load %arg3[%c4_65, %c0_66] : memref<7x384xf32, #tpu.memory_space<vmem>>, vector<1x384xf32>
      %cst_67 = arith.constant 0.000000e+00 : f32
      %363 = vector.broadcast %cst_67 : f32 to vector<1x384xf32>
      %c47_i32 = arith.constant 47 : i32
      %364 = tpu.dynamic_rotate %23 by %c47_i32 dim 1 : vector<1x384xf32>, i32 -> vector<1x384xf32>
      %365 = vector.broadcast %29 : f32 to vector<1x384xf32>
      %366 = arith.mulf %364, %365 : vector<1x384xf32>
      %367 = arith.addf %363, %366 : vector<1x384xf32>
      %c31_i32 = arith.constant 31 : i32
      %368 = tpu.dynamic_rotate %23 by %c31_i32 dim 1 : vector<1x384xf32>, i32 -> vector<1x384xf32>
      %369 = vector.broadcast %36 : f32 to vector<1x384xf32>
      %370 = arith.mulf %368, %369 : vector<1x384xf32>
      %371 = arith.addf %367, %370 : vector<1x384xf32>
      %c15_i32 = arith.constant 15 : i32
      %372 = tpu.dynamic_rotate %23 by %c15_i32 dim 1 : vector<1x384xf32>, i32 -> vector<1x384xf32>
      %373 = vector.broadcast %43 : f32 to vector<1x384xf32>
      %374 = arith.mulf %372, %373 : vector<1x384xf32>
      %375 = arith.addf %371, %374 : vector<1x384xf32>
      %c383_i32 = arith.constant 383 : i32
      %376 = tpu.dynamic_rotate %23 by %c383_i32 dim 1 : vector<1x384xf32>, i32 -> vector<1x384xf32>
      %377 = vector.broadcast %50 : f32 to vector<1x384xf32>
      %378 = arith.mulf %376, %377 : vector<1x384xf32>
      %379 = arith.addf %375, %378 : vector<1x384xf32>
      %c367_i32 = arith.constant 367 : i32
      %380 = tpu.dynamic_rotate %23 by %c367_i32 dim 1 : vector<1x384xf32>, i32 -> vector<1x384xf32>
      %381 = vector.broadcast %57 : f32 to vector<1x384xf32>
      %382 = arith.mulf %380, %381 : vector<1x384xf32>
      %383 = arith.addf %379, %382 : vector<1x384xf32>
      %c351_i32 = arith.constant 351 : i32
      %384 = tpu.dynamic_rotate %23 by %c351_i32 dim 1 : vector<1x384xf32>, i32 -> vector<1x384xf32>
      %385 = vector.broadcast %64 : f32 to vector<1x384xf32>
      %386 = arith.mulf %384, %385 : vector<1x384xf32>
      %387 = arith.addf %383, %386 : vector<1x384xf32>
      %c335_i32 = arith.constant 335 : i32
      %388 = tpu.dynamic_rotate %23 by %c335_i32 dim 1 : vector<1x384xf32>, i32 -> vector<1x384xf32>
      %389 = vector.broadcast %71 : f32 to vector<1x384xf32>
      %390 = arith.mulf %388, %389 : vector<1x384xf32>
      %391 = arith.addf %387, %390 : vector<1x384xf32>
      %c47_i32_68 = arith.constant 47 : i32
      %392 = tpu.dynamic_rotate %24 by %c47_i32_68 dim 1 : vector<1x384xf32>, i32 -> vector<1x384xf32>
      %393 = vector.broadcast %78 : f32 to vector<1x384xf32>
      %394 = arith.mulf %392, %393 : vector<1x384xf32>
      %395 = arith.addf %391, %394 : vector<1x384xf32>
      %c31_i32_69 = arith.constant 31 : i32
      %396 = tpu.dynamic_rotate %24 by %c31_i32_69 dim 1 : vector<1x384xf32>, i32 -> vector<1x384xf32>
      %397 = vector.broadcast %85 : f32 to vector<1x384xf32>
      %398 = arith.mulf %396, %397 : vector<1x384xf32>
      %399 = arith.addf %395, %398 : vector<1x384xf32>
      %c15_i32_70 = arith.constant 15 : i32
      %400 = tpu.dynamic_rotate %24 by %c15_i32_70 dim 1 : vector<1x384xf32>, i32 -> vector<1x384xf32>
      %401 = vector.broadcast %92 : f32 to vector<1x384xf32>
      %402 = arith.mulf %400, %401 : vector<1x384xf32>
      %403 = arith.addf %399, %402 : vector<1x384xf32>
      %c383_i32_71 = arith.constant 383 : i32
      %404 = tpu.dynamic_rotate %24 by %c383_i32_71 dim 1 : vector<1x384xf32>, i32 -> vector<1x384xf32>
      %405 = vector.broadcast %99 : f32 to vector<1x384xf32>
      %406 = arith.mulf %404, %405 : vector<1x384xf32>
      %407 = arith.addf %403, %406 : vector<1x384xf32>
      %c367_i32_72 = arith.constant 367 : i32
      %408 = tpu.dynamic_rotate %24 by %c367_i32_72 dim 1 : vector<1x384xf32>, i32 -> vector<1x384xf32>
      %409 = vector.broadcast %106 : f32 to vector<1x384xf32>
      %410 = arith.mulf %408, %409 : vector<1x384xf32>
      %411 = arith.addf %407, %410 : vector<1x384xf32>
      %c351_i32_73 = arith.constant 351 : i32
      %412 = tpu.dynamic_rotate %24 by %c351_i32_73 dim 1 : vector<1x384xf32>, i32 -> vector<1x384xf32>
      %413 = vector.broadcast %113 : f32 to vector<1x384xf32>
      %414 = arith.mulf %412, %413 : vector<1x384xf32>
      %415 = arith.addf %411, %414 : vector<1x384xf32>
      %c335_i32_74 = arith.constant 335 : i32
      %416 = tpu.dynamic_rotate %24 by %c335_i32_74 dim 1 : vector<1x384xf32>, i32 -> vector<1x384xf32>
      %417 = vector.broadcast %120 : f32 to vector<1x384xf32>
      %418 = arith.mulf %416, %417 : vector<1x384xf32>
      %419 = arith.addf %415, %418 : vector<1x384xf32>
      %420 = arith.mulf %419, %362 : vector<1x384xf32>
      %421 = arith.addf %361, %420 : vector<1x384xf32>
      %c5_75 = arith.constant 5 : index
      %c0_76 = arith.constant 0 : index
      %422 = vector.load %arg3[%c5_75, %c0_76] : memref<7x384xf32, #tpu.memory_space<vmem>>, vector<1x384xf32>
      %cst_77 = arith.constant 0.000000e+00 : f32
      %423 = vector.broadcast %cst_77 : f32 to vector<1x384xf32>
      %c46_i32 = arith.constant 46 : i32
      %424 = tpu.dynamic_rotate %23 by %c46_i32 dim 1 : vector<1x384xf32>, i32 -> vector<1x384xf32>
      %425 = vector.broadcast %30 : f32 to vector<1x384xf32>
      %426 = arith.mulf %424, %425 : vector<1x384xf32>
      %427 = arith.addf %423, %426 : vector<1x384xf32>
      %c30_i32 = arith.constant 30 : i32
      %428 = tpu.dynamic_rotate %23 by %c30_i32 dim 1 : vector<1x384xf32>, i32 -> vector<1x384xf32>
      %429 = vector.broadcast %37 : f32 to vector<1x384xf32>
      %430 = arith.mulf %428, %429 : vector<1x384xf32>
      %431 = arith.addf %427, %430 : vector<1x384xf32>
      %c14_i32 = arith.constant 14 : i32
      %432 = tpu.dynamic_rotate %23 by %c14_i32 dim 1 : vector<1x384xf32>, i32 -> vector<1x384xf32>
      %433 = vector.broadcast %44 : f32 to vector<1x384xf32>
      %434 = arith.mulf %432, %433 : vector<1x384xf32>
      %435 = arith.addf %431, %434 : vector<1x384xf32>
      %c382_i32 = arith.constant 382 : i32
      %436 = tpu.dynamic_rotate %23 by %c382_i32 dim 1 : vector<1x384xf32>, i32 -> vector<1x384xf32>
      %437 = vector.broadcast %51 : f32 to vector<1x384xf32>
      %438 = arith.mulf %436, %437 : vector<1x384xf32>
      %439 = arith.addf %435, %438 : vector<1x384xf32>
      %c366_i32 = arith.constant 366 : i32
      %440 = tpu.dynamic_rotate %23 by %c366_i32 dim 1 : vector<1x384xf32>, i32 -> vector<1x384xf32>
      %441 = vector.broadcast %58 : f32 to vector<1x384xf32>
      %442 = arith.mulf %440, %441 : vector<1x384xf32>
      %443 = arith.addf %439, %442 : vector<1x384xf32>
      %c350_i32 = arith.constant 350 : i32
      %444 = tpu.dynamic_rotate %23 by %c350_i32 dim 1 : vector<1x384xf32>, i32 -> vector<1x384xf32>
      %445 = vector.broadcast %65 : f32 to vector<1x384xf32>
      %446 = arith.mulf %444, %445 : vector<1x384xf32>
      %447 = arith.addf %443, %446 : vector<1x384xf32>
      %c334_i32 = arith.constant 334 : i32
      %448 = tpu.dynamic_rotate %23 by %c334_i32 dim 1 : vector<1x384xf32>, i32 -> vector<1x384xf32>
      %449 = vector.broadcast %72 : f32 to vector<1x384xf32>
      %450 = arith.mulf %448, %449 : vector<1x384xf32>
      %451 = arith.addf %447, %450 : vector<1x384xf32>
      %c46_i32_78 = arith.constant 46 : i32
      %452 = tpu.dynamic_rotate %24 by %c46_i32_78 dim 1 : vector<1x384xf32>, i32 -> vector<1x384xf32>
      %453 = vector.broadcast %79 : f32 to vector<1x384xf32>
      %454 = arith.mulf %452, %453 : vector<1x384xf32>
      %455 = arith.addf %451, %454 : vector<1x384xf32>
      %c30_i32_79 = arith.constant 30 : i32
      %456 = tpu.dynamic_rotate %24 by %c30_i32_79 dim 1 : vector<1x384xf32>, i32 -> vector<1x384xf32>
      %457 = vector.broadcast %86 : f32 to vector<1x384xf32>
      %458 = arith.mulf %456, %457 : vector<1x384xf32>
      %459 = arith.addf %455, %458 : vector<1x384xf32>
      %c14_i32_80 = arith.constant 14 : i32
      %460 = tpu.dynamic_rotate %24 by %c14_i32_80 dim 1 : vector<1x384xf32>, i32 -> vector<1x384xf32>
      %461 = vector.broadcast %93 : f32 to vector<1x384xf32>
      %462 = arith.mulf %460, %461 : vector<1x384xf32>
      %463 = arith.addf %459, %462 : vector<1x384xf32>
      %c382_i32_81 = arith.constant 382 : i32
      %464 = tpu.dynamic_rotate %24 by %c382_i32_81 dim 1 : vector<1x384xf32>, i32 -> vector<1x384xf32>
      %465 = vector.broadcast %100 : f32 to vector<1x384xf32>
      %466 = arith.mulf %464, %465 : vector<1x384xf32>
      %467 = arith.addf %463, %466 : vector<1x384xf32>
      %c366_i32_82 = arith.constant 366 : i32
      %468 = tpu.dynamic_rotate %24 by %c366_i32_82 dim 1 : vector<1x384xf32>, i32 -> vector<1x384xf32>
      %469 = vector.broadcast %107 : f32 to vector<1x384xf32>
      %470 = arith.mulf %468, %469 : vector<1x384xf32>
      %471 = arith.addf %467, %470 : vector<1x384xf32>
      %c350_i32_83 = arith.constant 350 : i32
      %472 = tpu.dynamic_rotate %24 by %c350_i32_83 dim 1 : vector<1x384xf32>, i32 -> vector<1x384xf32>
      %473 = vector.broadcast %114 : f32 to vector<1x384xf32>
      %474 = arith.mulf %472, %473 : vector<1x384xf32>
      %475 = arith.addf %471, %474 : vector<1x384xf32>
      %c334_i32_84 = arith.constant 334 : i32
      %476 = tpu.dynamic_rotate %24 by %c334_i32_84 dim 1 : vector<1x384xf32>, i32 -> vector<1x384xf32>
      %477 = vector.broadcast %121 : f32 to vector<1x384xf32>
      %478 = arith.mulf %476, %477 : vector<1x384xf32>
      %479 = arith.addf %475, %478 : vector<1x384xf32>
      %480 = arith.mulf %479, %422 : vector<1x384xf32>
      %481 = arith.addf %421, %480 : vector<1x384xf32>
      %c6_85 = arith.constant 6 : index
      %c0_86 = arith.constant 0 : index
      %482 = vector.load %arg3[%c6_85, %c0_86] : memref<7x384xf32, #tpu.memory_space<vmem>>, vector<1x384xf32>
      %cst_87 = arith.constant 0.000000e+00 : f32
      %483 = vector.broadcast %cst_87 : f32 to vector<1x384xf32>
      %c45_i32 = arith.constant 45 : i32
      %484 = tpu.dynamic_rotate %23 by %c45_i32 dim 1 : vector<1x384xf32>, i32 -> vector<1x384xf32>
      %485 = vector.broadcast %31 : f32 to vector<1x384xf32>
      %486 = arith.mulf %484, %485 : vector<1x384xf32>
      %487 = arith.addf %483, %486 : vector<1x384xf32>
      %c29_i32 = arith.constant 29 : i32
      %488 = tpu.dynamic_rotate %23 by %c29_i32 dim 1 : vector<1x384xf32>, i32 -> vector<1x384xf32>
      %489 = vector.broadcast %38 : f32 to vector<1x384xf32>
      %490 = arith.mulf %488, %489 : vector<1x384xf32>
      %491 = arith.addf %487, %490 : vector<1x384xf32>
      %c13_i32 = arith.constant 13 : i32
      %492 = tpu.dynamic_rotate %23 by %c13_i32 dim 1 : vector<1x384xf32>, i32 -> vector<1x384xf32>
      %493 = vector.broadcast %45 : f32 to vector<1x384xf32>
      %494 = arith.mulf %492, %493 : vector<1x384xf32>
      %495 = arith.addf %491, %494 : vector<1x384xf32>
      %c381_i32 = arith.constant 381 : i32
      %496 = tpu.dynamic_rotate %23 by %c381_i32 dim 1 : vector<1x384xf32>, i32 -> vector<1x384xf32>
      %497 = vector.broadcast %52 : f32 to vector<1x384xf32>
      %498 = arith.mulf %496, %497 : vector<1x384xf32>
      %499 = arith.addf %495, %498 : vector<1x384xf32>
      %c365_i32 = arith.constant 365 : i32
      %500 = tpu.dynamic_rotate %23 by %c365_i32 dim 1 : vector<1x384xf32>, i32 -> vector<1x384xf32>
      %501 = vector.broadcast %59 : f32 to vector<1x384xf32>
      %502 = arith.mulf %500, %501 : vector<1x384xf32>
      %503 = arith.addf %499, %502 : vector<1x384xf32>
      %c349_i32 = arith.constant 349 : i32
      %504 = tpu.dynamic_rotate %23 by %c349_i32 dim 1 : vector<1x384xf32>, i32 -> vector<1x384xf32>
      %505 = vector.broadcast %66 : f32 to vector<1x384xf32>
      %506 = arith.mulf %504, %505 : vector<1x384xf32>
      %507 = arith.addf %503, %506 : vector<1x384xf32>
      %c333_i32 = arith.constant 333 : i32
      %508 = tpu.dynamic_rotate %23 by %c333_i32 dim 1 : vector<1x384xf32>, i32 -> vector<1x384xf32>
      %509 = vector.broadcast %73 : f32 to vector<1x384xf32>
      %510 = arith.mulf %508, %509 : vector<1x384xf32>
      %511 = arith.addf %507, %510 : vector<1x384xf32>
      %c45_i32_88 = arith.constant 45 : i32
      %512 = tpu.dynamic_rotate %24 by %c45_i32_88 dim 1 : vector<1x384xf32>, i32 -> vector<1x384xf32>
      %513 = vector.broadcast %80 : f32 to vector<1x384xf32>
      %514 = arith.mulf %512, %513 : vector<1x384xf32>
      %515 = arith.addf %511, %514 : vector<1x384xf32>
      %c29_i32_89 = arith.constant 29 : i32
      %516 = tpu.dynamic_rotate %24 by %c29_i32_89 dim 1 : vector<1x384xf32>, i32 -> vector<1x384xf32>
      %517 = vector.broadcast %87 : f32 to vector<1x384xf32>
      %518 = arith.mulf %516, %517 : vector<1x384xf32>
      %519 = arith.addf %515, %518 : vector<1x384xf32>
      %c13_i32_90 = arith.constant 13 : i32
      %520 = tpu.dynamic_rotate %24 by %c13_i32_90 dim 1 : vector<1x384xf32>, i32 -> vector<1x384xf32>
      %521 = vector.broadcast %94 : f32 to vector<1x384xf32>
      %522 = arith.mulf %520, %521 : vector<1x384xf32>
      %523 = arith.addf %519, %522 : vector<1x384xf32>
      %c381_i32_91 = arith.constant 381 : i32
      %524 = tpu.dynamic_rotate %24 by %c381_i32_91 dim 1 : vector<1x384xf32>, i32 -> vector<1x384xf32>
      %525 = vector.broadcast %101 : f32 to vector<1x384xf32>
      %526 = arith.mulf %524, %525 : vector<1x384xf32>
      %527 = arith.addf %523, %526 : vector<1x384xf32>
      %c365_i32_92 = arith.constant 365 : i32
      %528 = tpu.dynamic_rotate %24 by %c365_i32_92 dim 1 : vector<1x384xf32>, i32 -> vector<1x384xf32>
      %529 = vector.broadcast %108 : f32 to vector<1x384xf32>
      %530 = arith.mulf %528, %529 : vector<1x384xf32>
      %531 = arith.addf %527, %530 : vector<1x384xf32>
      %c349_i32_93 = arith.constant 349 : i32
      %532 = tpu.dynamic_rotate %24 by %c349_i32_93 dim 1 : vector<1x384xf32>, i32 -> vector<1x384xf32>
      %533 = vector.broadcast %115 : f32 to vector<1x384xf32>
      %534 = arith.mulf %532, %533 : vector<1x384xf32>
      %535 = arith.addf %531, %534 : vector<1x384xf32>
      %c333_i32_94 = arith.constant 333 : i32
      %536 = tpu.dynamic_rotate %24 by %c333_i32_94 dim 1 : vector<1x384xf32>, i32 -> vector<1x384xf32>
      %537 = vector.broadcast %122 : f32 to vector<1x384xf32>
      %538 = arith.mulf %536, %537 : vector<1x384xf32>
      %539 = arith.addf %535, %538 : vector<1x384xf32>
      %540 = arith.mulf %539, %482 : vector<1x384xf32>
      %541 = arith.addf %481, %540 : vector<1x384xf32>
      %542 = vector.extract_strided_slice %541 {offsets = [0, 0], sizes = [1, 256], strides = [1, 1]} : vector<1x384xf32> to vector<1x256xf32>
      %543 = arith.negf %542 : vector<1x256xf32>
      %544 = math.exp %543 : vector<1x256xf32>
      %cst_95 = arith.constant 1.000000e+00 : f32
      %545 = vector.broadcast %cst_95 : f32 to vector<1x256xf32>
      %546 = arith.addf %545, %544 : vector<1x256xf32>
      %547 = arith.divf %545, %546 : vector<1x256xf32>
      %c0_96 = arith.constant 0 : index
      %c0_97 = arith.constant 0 : index
      %c0_98 = arith.constant 0 : index
      %548 = vector.load %arg5[%c0_96, %c0_97, %c0_98] : memref<1x1x256xf32, #tpu.memory_space<vmem>>, vector<1x1x256xf32>
      %549 = vector.shape_cast %548 : vector<1x1x256xf32> to vector<1x256xf32>
      %550 = vector.shape_cast %547 : vector<1x256xf32> to vector<1x1x256xf32>
      tpu.vector_store %arg5[%c0_96, %c0_97, %c0_98], %550 {strides = array<i32>} : memref<1x1x256xf32, #tpu.memory_space<vmem>>, vector<1x1x256xf32>,
    } else {
    }
    return
  }
  func.func @transform_0(%arg0: i32, %arg1: i32) -> i32 {
    %c0_i32 = arith.constant 0 : i32
    %c0_i32_0 = arith.constant 0 : i32
    return %c0_i32 : i32
  }
  func.func @transform_1(%arg0: i32, %arg1: i32) -> (i32, i32) {
    %c0_i32 = arith.constant 0 : i32
    %c0_i32_0 = arith.constant 0 : i32
    %c0_i32_1 = arith.constant 0 : i32
    return %c0_i32, %c0_i32_0 : i32, i32
  }
  func.func @transform_2(%arg0: i32, %arg1: i32) -> (i32, i32, i32) {
    %c0_i32 = arith.constant 0 : i32
    %c0_i32_0 = arith.constant 0 : i32
    return %arg0, %arg1, %c0_i32 : i32, i32, i32
  }
  func.func @transform_3(%arg0: i32, %arg1: i32) -> (i32, i32, i32) {
    %c0_i32 = arith.constant 0 : i32
    %c0_i32_0 = arith.constant 0 : i32
    %c0_i32_1 = arith.constant 0 : i32
    return %arg0, %c0_i32, %c0_i32_0 : i32, i32, i32
  }
}

</mosaic_0001>

<bundles_post_ra>
// kernel: tpu_custom_call.1
= control target key start
LH: loop header
LB: loop body
LE: loop exit
PB: predicated region body
PF: predicated region fallthrough
CT: control target
= control target key end

     0   :  { %s5064_s0 = inlined_call_operand.hbm [shape: f32[98], index: 0, kind: input, shape index: {}]   ;;  %s5065_s1 = inlined_call_operand.hbm [shape: f32[7,384], index: 1, kind: input, shape index: {}]   ;;  %s5066_s2 = inlined_call_operand.hbm [shape: f32[2,4,256], index: 2, kind: input, shape index: {}]   ;;  %s5067_s3 = inlined_call_operand.hbm [shape: f32[2,1,256], index: 3, kind: output, shape index: {}]  }
   0x1   :  { %5154 = sst [smem:[#allocation132_spill]] %s5064_s0 }
   0x2   :  { %5155 = sst [smem:[#allocation133_spill]] %s5065_s1 }
   0x3   :  { %5156 = sst [smem:[#allocation134_spill]] %s5066_s2 }
   0x4   :  { %5157 = sst [smem:[#allocation135_spill]] %s5067_s3 }
   0x5   :  { %8 = vsyncpa [#allocation8], 0 }
   0x6   :  { %9 = vsyncpa [#allocation6], 0 }
   0x7   :  { %10 = vsyncpa [#allocation11], 0 }
   0x8   :  { %12 = vsyncpa [#allocation11 + $0x1], 0 }
   0x9   :  { %13 = vsyncpa [#allocation7], 0 }
   0xa   :  { %15 = vsyncpa [#allocation7 + $0x1], 0  ;;  %s2602_s12 = smov 0   ;;  %s2604_s13 = smov 0  }
   0xb   :  { %s2606_s14 = smov 0   ;;  %s2608_s15 = smov 0  }
   0xc   :  { %s2610_s16 = smov 0   ;;  %s2612_s17 = smov 0  }
   0xd LB: > { %5158 = sst [smem:[#allocation17_spill]] %s2506_s12  ;;  %s2101_s18 = sadd.s32 4294967295, %s2526_s17   ;;  %s2526_s17 = sphi %s2612_s17, %s21_s17   ;;  %s2522_s16 = sphi %s2610_s16, %s5533_s16   ;;  %s2518_s15 = sphi %s2608_s15, %s5532_s15   ;;  %s2514_s14 = sphi %s2606_s14, %s5531_s14   ;;  %s2510_s13 = sphi %s2604_s13, %s5530_s13   ;;  %s2506_s12 = sphi %s2602_s12, %s5529_s12  }
   0xe   : > { %5159 = sst [smem:[#allocation18_spill]] %s2510_s13  ;;  %s2102_s19 = sadd.s32 4294967294, %s2526_s17  }
   0xf   : > { %5160 = sst [smem:[#allocation19_spill]] %s2514_s14  ;;  %p97_p0 = scmp.ne.s32.totalorder %s2510_s13, %s2506_s12 }
  0x10   : > { %5161 = sst [smem:[#allocation20_spill]] %s2518_s15  ;;  %p2636_p1 = scmp.eq.s32.totalorder %s2101_s18, 0 }
  0x11   : > { %5162 = sst [smem:[#allocation21_spill]] %s2522_s16  ;;  %p2640_p2 = scmp.eq.s32.totalorder %s2101_s18, 1 }
  0x12   : > { %5163 = sst [smem:[#allocation22_spill]] %s2526_s17  ;;  %p127_p3 = scmp.eq.s32.totalorder %s2102_s19, 1 }
  0x13   : > { %s5164_s20 = scalar_select %p2636_p1, 1, 0 }
  0x14   : > { %p2646_p4 = por %p2636_p1, %p97_p0  ;;  %p2103_p5 = scmp.ge.s32.totalorder %s2526_s17, 1 }
  0x15   : > { %p2651_p6 = por %p127_p3, %p97_p0  ;;  %p134_p7 = scmp.lt.s32.totalorder %s2526_s17, 3 }
  0x16   : > { %s5166_s22 = scalar_select %p2646_p4, 1, 0 }
  0x17   : > { %s5167_s23 = scalar_select %p2651_p6, 1, 0 }
  0x18   : > { %p2656_p8 = pnand %p2103_p5, %p134_p7  ;;  %s2528_s25 = smov [#allocation9]  }
  0x19   : > { %5168 = sst [smem:[#allocation23_spill]] %s5167_s23  ;;  %s156_s26 = sshll.u32 %s2528_s25, 4  ;;  %s2663_s26 = int_to_ptr.vmem [resolvable:$true] %s156_s26 }
  0x1a   : > { %s5169_s24 = scalar_select %p2656_p8, 1, 0 }
  0x1b   : > { %p2233_p10 = pneg %p2656_p8  ;;  %s33_s28 = sadd.s32 1, %s2522_s16 }
  0x1c   : > { %p2674_p12 = scmp.ge.s32.totalorder %s33_s28, 2  ;;  %s5172_s0 = sld [smem:[#allocation132_spill]] }
  0x1d   : > { %p2667_p11 = pnand %p2233_p10, %p2636_p1 }
  0x1f   : > { %p2367_p0 = pneg %p2667_p11 }
  0x22   : > { %s2365_s5 = scalar_lea.hbm %s5172_s0, 16 }
  0x23   : > { %p2366_p13 = scmp.ne.s32.totalorder %s5172_s0, %s2365_s5  ;;  %p2372_p7 = scmp.lt.u32.totalorder %s2365_s5, %s5172_s0 }
  0x25   : > { %p2368_p3 = pnand %p2367_p0, %p2366_p13 }
  0x27   : > { %p2369_p5 = pneg %p2368_p3 }
  0x29   : > { %p2374_p10 = pnand %p2372_p7, %p2369_p5 }
  0x2b   : > { %2377 = shalt.err (!%p2374_p10)
}
  0x2c   : > { %s2529_s10 = smov [#allocation5]   ;;  %s5173_s1 = sld [smem:[#allocation133_spill]] }
  0x2d   : > { %2236 = dma.hbm_to_smem (!%p2667_p11), %s5172_s0, 16, %s2529_s10, [#allocation8]  }
  0x32   : > { %s2378_s30 = scalar_lea.hbm %s5173_s1, 384 }
  0x33   : > { %p2379_p13 = scmp.ne.s32.totalorder %s5173_s1, %s2378_s30  ;;  %p2385_p7 = scmp.lt.u32.totalorder %s2378_s30, %s5173_s1 }
  0x35   : > { %p2381_p3 = pnand %p2379_p13, %p2367_p0 }
  0x37   : > { %p2382_p5 = pneg %p2381_p3 }
  0x39   : > { %p2387_p10 = pnand %p2385_p7, %p2382_p5 }
  0x3b   : > { %2390 = shalt.err (!%p2387_p10)
}
  0x3c   : > { %s2391_s8 = scalar_lea.vmem %s2663_s26, 384  ;;  %p2399_p1 = scmp.lt.s32.totalorder %s2663_s26, %s2663_s26 }
  0x3d   : > { %p2392_p9 = scmp.ne.s32.totalorder %s2663_s26, %s2391_s8  ;;  %p2400_p13 = scmp.lt.s32.totalorder %s2391_s8, %s2391_s8 }
  0x3f   : > { %p2394_p6 = pnand %p2392_p9, %p2367_p0  ;;  %p2401_p3 = por %p2400_p13, %p2399_p1 }
  0x41   : > { %p2395_p4 = pneg %p2394_p6 }
  0x43   : > { %p2402_p8 = pnand %p2401_p3, %p2395_p4 }
  0x45   : > { %2405 = shalt.err (!%p2402_p8)
}
  0x46   : > { %2239 = dma.hbm_to_vmem [thread:$0]  (!%p2667_p11), %s5173_s1, 384, %s2663_s26, [#allocation6]  }
  0x47   : > { %s5535_s28 = smov (%p2674_p12, %s33_s28), 0  ;;  %s84_s27 = sadd.s32 1, %s2514_s14 }
  0x48   : > { %5174 = sst [smem:[#allocation24_spill]] %s5535_s28  ;;  %p91_p1 = scmp.ne.s32.totalorder %s2514_s14, %s2510_s13 }
  0x49   : > { %s79_s11 = ssub.s32 %s2522_s16, %s5535_s28  ;;  %p92_p4 = scmp.eq.s32.totalorder %s2526_s17, 0 }
  0x4a   : > { %p82_p6 = scmp.eq.s32.totalorder %s79_s11, 0  ;;  %p2736_p8 = por %p2640_p2, %p91_p1 }
  0x4b   : > { %p93_p9 = por %p92_p4, %p91_p1  ;;  %p2250_p0 = scmp.lt.s32.totalorder %s2526_s17, 2 }
  0x4c   : > { %s5175_s18 = scalar_select %p2736_p8, 1, 0 }
  0x4d   : > { %s2742_s19 = scalar_select %p82_p6, %s2514_s14, %s84_s27  }
  0x4e   : > { %5176 = sst [smem:[#allocation25_spill]] %s5175_s18  ;;  %s167_s26 = sand.u32 1, %s2514_s14  }
  0x4f   : > { %5177 = sst [smem:[#allocation26_spill]] %s2742_s19  ;;  %s2219_s25 = sshll.u32 %s2522_s16, 7 }
  0x50   : > { %s2107_s29 = sshll.u32 %s167_s26, 3  ;;  %s5178_s2 = sld [smem:[#allocation134_spill]] }
  0x51   : > { %s171_s21 = scalar_lea.vmem [#allocation10], %s2107_s29  ;;  %p2751_p2 = pnand %p2250_p0, %p93_p9 }
  0x52   : > { %s181_s5 = sshll.u32 %s171_s21, 4  ;;  %s168_s8 = scalar_lea.sflag [#allocation11], %s167_s26  ;;  %s2755_s5 = int_to_ptr.vmem [resolvable:$true] %s181_s5 }
  0x53   : > { %p2408_p12 = pneg %p2751_p2 }
  0x56   : > { %s2749_s6 = scalar_lea.hbm %s5178_s2, %s2219_s25  ;;  %s2411_s11 = scalar_lea.hbm %s5178_s2, 256 }
  0x57   : > { %s2406_s9 = scalar_lea.hbm %s2749_s6, 128  ;;  %p2412_p10 = scmp.lt.u32.totalorder %s2749_s6, %s5178_s2 }
  0x58   : > { %p2407_p11 = scmp.ne.s32.totalorder %s2749_s6, %s2406_s9  ;;  %p2413_p13 = scmp.lt.u32.totalorder %s2411_s11, %s2406_s9 }
  0x59   : > { %p2415_p1 = scmp.lt.u32.totalorder %s2406_s9, %s2749_s6 }
  0x5a   : > { %p2409_p5 = pnand %p2408_p12, %p2407_p11  ;;  %p2414_p3 = por %p2413_p13, %p2412_p10 }
  0x5c   : > { %p2410_p7 = pneg %p2409_p5  ;;  %p2416_p4 = por %p2415_p1, %p2414_p3 }
  0x5e   : > { %p2417_p6 = pnand %p2416_p4, %p2410_p7 }
  0x60   : > { %2420 = shalt.err (!%p2417_p6)
}
  0x61   : > { %s2421_s26 = scalar_lea.vmem %s2755_s5, 128  ;;  %s2530_s30 = smov [#allocation10]  }
  0x62   : > { %p2422_p9 = scmp.ne.s32.totalorder %s2755_s5, %s2421_s26  ;;  %s2426_s4 = sshll.u32 %s2530_s30, 4  ;;  %s2427_s4 = int_to_ptr.vmem [resolvable:$false] %s2426_s4 }
  0x63   : > { %s2428_s21 = scalar_lea.vmem %s2427_s4, 256  ;;  %p2429_p5 = scmp.lt.s32.totalorder %s2755_s5, %s2427_s4 }
  0x64   : > { %p2424_p0 = pnand %p2422_p9, %p2408_p12  ;;  %p2430_p10 = scmp.lt.s32.totalorder %s2428_s21, %s2421_s26 }
  0x66   : > { %p2425_p11 = pneg %p2424_p0  ;;  %p2431_p13 = por %p2430_p10, %p2429_p5 }
  0x68   : > { %p2432_p3 = pnand %p2431_p13, %p2425_p11 }
  0x6a   : > { %2435 = shalt.err (!%p2432_p3)
}
  0x6b   : > { %2243 = dma.hbm_to_vmem [thread:$0]  (!%p2751_p2), %s2749_s6, 128, %s2755_s5, %s168_s8  }
  0x6c   : > { %p5180_p7 = scmp.ne.s32.totalorder %s5169_s24, 0 }
  0x6e   : > { %190 = sbr.rel (%p5180_p7) target bundleno = 917 (0x395), region = 32 }
  0x75   : > { %p5181_p12 = scmp.ne.s32.totalorder %s5164_s20, 0 }
  0x77   : > { %2489 = dma.done.wait (%p5181_p12), [#allocation8], 16  }
  0x78   : > { %2491 = vsyncadd (%p5181_p12), [#allocation8], 4294967280 }
  0x79   : > { %2493 = dma.done.wait (%p5181_p12), [#allocation6], 384  }
  0x7a   : > { %2495 = vsyncadd (%p5181_p12), [#allocation6], 4294966912  ;;  %s2793_s7 = sand.u32 1, %s2510_s13   ;;  %p5182_p2 = scmp.ne.s32.totalorder %s5166_s22, 0 }
  0x7b   : > { %s2113_s24 = sshll.u32 %s2793_s7, 3  ;;  %s201_s6 = scalar_lea.sflag [#allocation11], %s2793_s7 }
  0x7c   : > { %s204_s5 = scalar_lea.vmem [#allocation10], %s2113_s24 }
  0x7d   : > { %2497 = dma.done.wait (%p5182_p2), %s201_s6, 128  }
  0x7e   : > { %2499 = vsyncadd (%p5182_p2), %s201_s6, 4294967168 }
  0x7f   : > { %209 = sfence }
  0x80   : > { %v228_v0 = vld [vmem:[%s204_s5] sm:$0xff]  ;;  %vm232_vm0 = vcmask 1043456   ;;  %v2531_v4 = vmov 0.0   ;;  %v5072_v12 = vlaneseq  ;;  %v2532_v17 = vmov 1966171168   ;;  %s2533_s20 = smov 51  }
  0x81   : > { %v230_v1 = vcombine.high %v228_v0, %v228_v0  ;;  %v233_v2 = vsel %vm232_vm0, %v228_v0, 0.0  ;;  %v247_v3 = vsel %vm232_vm0, %v228_v0, -inf  ;;  %360 = vst [vmem:[#allocation4] sm:$0x3f] %v2531_v4  ;;  %v269_v18 = vunpack.c.l.s4 %v2532_v17  ;;  %s2534_s22 = smov 35   ;;  %s2535_s8 = smov 19  }
  0x82   : > { %v234_v5 = vrot.slane %v233_v2, 4  ;;  %v248_v6 = vrot.slane %v247_v3, 4  ;;  %v2802_v23 = vshrl.u32 %v5072_v12, 7  ;;  %vm2809_vm1 = vcmp.lt.s32.totalorder %v5072_v12, 256  ;;  %s2536_s9 = smov 3   ;;  %s2537_s10 = smov 115  }
  0x83   : > { %v254_v7 = vsel %vm232_vm0, %v230_v1, -inf  ;;  %v240_v8 = vsel %vm232_vm0, %v230_v1, 0.0  ;;  %v270_v28 = vunpack.c.0.s8 %v269_v18  ;;  %v5184_v40 = vmov 0  ;;  %s2538_s27 = smov 99   ;;  %s2539_s11 = smov 83  }
  0x84   : > { %v235_v9 = vadd.f32 %v234_v5, %v233_v2  ;;  %v249_v10 = vmax.f32 %v247_v3, %v248_v6  ;;  %v255_v11 = vrot.slane %v254_v7, 4  ;;  %v241_v13 = vrot.slane %v240_v8, 4  ;;  %s2540_s25 = smov 50   ;;  %s2541_s29 = smov 34  }
  0x85   : > { %v2805_v35 = vsub.s32 %v270_v28, %v2802_v23  ;;  %v5185_v40 = vsel %vm2809_vm1, 4294967295, %v5184_v40  ;;  %v2825_v47 = vsub.s32 0, %v2802_v23  ;;  %v484_v49 = vsub.s32 2, %v2802_v23  ;;  %s2542_s26 = smov 18   ;;  %s2543_s30 = smov 2  }
  0x86   : > { %v236_v14 = vrot.slane %v235_v9, 2  ;;  %v250_v15 = vrot.slane %v249_v10, 2  ;;  %v256_v16 = vmax.f32 %v254_v7, %v255_v11  ;;  %v242_v19 = vadd.f32 %v241_v13, %v240_v8  ;;  %5186 = vst [vmem:[#allocation28_spill] sm:$0xff] %v5185_v40  ;;  %s2544_s4 = smov 114   ;;  %s2545_s21 = smov 98  }
  0x87   : > { %5183 = vst [vmem:[#allocation27_spill] sm:$0xff] %v2805_v35  ;;  %v2832_v51 = vsub.s32 1, %v2802_v23  ;;  %s2546_s24 = smov 82   ;;  %s2547_s6 = smov 49  }
  0x88   : > { %v237_v20 = vadd.f32 %v236_v14, %v235_v9  ;;  %v251_v21 = vmax.f32 %v249_v10, %v250_v15  ;;  %v257_v22 = vrot.slane %v256_v16, 2  ;;  %v243_v24 = vrot.slane %v242_v19, 2  ;;  %s2548_s5 = smov 33   ;;  %s3611_s0 = sld [smem:[#allocation5 + $0x24]] }
  0x89   : > { %s3631_s1 = sld [smem:[#allocation5 + $0x32]]  ;;  %s3633_s2 = sld [smem:[#allocation5 + $0x39]] }
  0x8a   : > { %v238_v25 = vrot.slane %v237_v20, 1  ;;  %v252_v26 = vrot.slane %v251_v21, 1  ;;  %v258_v27 = vmax.f32 %v256_v16, %v257_v22  ;;  %v244_v29 = vadd.f32 %v243_v24, %v242_v19  ;;  %s3642_s28 = sld [smem:[#allocation5 + $0x40]]  ;;  %s3644_s16 = sld [smem:[#allocation5 + $0x47]] }
  0x8b   : > { %s3654_s19 = sld [smem:[#allocation5 + $0x4e]]  ;;  %s3656_s14 = sld [smem:[#allocation5 + $0x55]] }
  0x8c   : > { %v253_v30 = vmax.f32 %v251_v21, %v252_v26  ;;  %v259_v31 = vrot.slane %v258_v27, 1  ;;  %v239_v32 = vadd.f32 %v238_v25, %v237_v20  ;;  %v245_v33 = vrot.slane %v244_v29, 1  ;;  %s5118_s13 = smov 46   ;;  %s3700_s17 = sld [smem:[#allocation5 + $0x9]] }
  0x8d   : > { %s5300_s23 = smov 30   ;;  %s5124_s12 = smov 126  }
  0x8e   : > { %v260_v34 = vmax.f32 %v258_v27, %v259_v31  ;;  %v246_v36 = vadd.f32 %v245_v33, %v244_v29  ;;  %s5341_s3 = smov 94   ;;  %s5148_s18 = smov 45  }
  0x8f   : > { %s2577_s15 = smov 125  }
  0x90   : > { %v290_v37 = vcombine.low %v253_v30, %v260_v34  ;;  %v267_v38 = vcombine.low %v239_v32, %v246_v36 }
  0x92   : > { %v297_v39 = vrot.slane %v290_v37, %v2805_v35  ;;  %v274_v41 = vrot.slane %v267_v38, %v2805_v35 }
  0x94   : > { %v304_v42 = vrot.slane %v297_v39, %v2805_v35  ;;  %v281_v43 = vrot.slane %v274_v41, %v2805_v35 }
  0x96   : > { %306 = vst.msk [vmem:[#allocation3] sm:$0x3] %vm2809_vm1, %v304_v42  ;;  %287 = vst.msk [vmem:[#allocation2] sm:$0x3] %vm2809_vm1, %v281_v43 }
  0x9d   : > { %v368_v44 = vld [vmem:[#allocation3] sm:$0x3]  ;;  %v361_v45 = vld [vmem:[#allocation2] sm:$0x3] }
  0x9e   : > { %370 = vst.msk [vmem:[#allocation4 + $0x1] ss:$2 sm:$0x3] %vm2809_vm1, %v368_v44  ;;  %v362_v46 = vmul.f32 0.25, %v361_v45 }
  0xa0   : > { %367 = vst.msk [vmem:[#allocation4] ss:$2 sm:$0x3] %vm2809_vm1, %v362_v46 }
  0xa5   : > { %v373_v48 = vld [vmem:[#allocation4 + $0x1] ss:$2 sm:$0x7] }
  0xa6   : > { %v2829_v50 = vrot.slane %v373_v48, %v2825_v47  ;;  %v2870_v56 = vrot.slane %v373_v48, %v484_v49  ;;  %v2874_v57 = vrot.slane %v373_v48, %v2832_v51 }
  0xa7   : > { %v371_v52 = vld [vmem:[#allocation4] ss:$2 sm:$0x7] }
  0xa8   : > { %5187 = vst [vmem:[#allocation29_spill] sm:$0xff] %v2829_v50  ;;  %605 = vrot.lane.b32.xlu1 %v2829_v50, %s2533_s20  ;;  %v2837_v53 = vrot.slane %v371_v52, %v2825_v47  ;;  %v2839_v54 = vrot.slane %v371_v52, %v484_v49  ;;  %v2844_v55 = vrot.slane %v371_v52, %v2832_v51 }
  0xaa   : > { %489 = vrot.lane.b32.xlu0 %v2837_v53, %s2533_s20 }
  0xac   : > { %493 = vrot.lane.b32.xlu1 %v2839_v54, %s2533_s20 }
  0xae   : > { %491 = vrot.lane.b32.xlu0 %v2844_v55, %s2533_s20 }
  0xb0   : > { %505 = vrot.lane.b32.xlu1 %v2837_v53, %s2534_s22 }
  0xb2   : > { %507 = vrot.lane.b32.xlu0 %v2844_v55, %s2534_s22 }
  0xb4   : > { %509 = vrot.lane.b32.xlu1 %v2839_v54, %s2534_s22 }
  0xb6   : > { %519 = vrot.lane.b32.xlu0 %v2837_v53, %s2535_s8 }
  0xb8   : > { %521 = vrot.lane.b32.xlu1 %v2844_v55, %s2535_s8 }
  0xba   : > { %523 = vrot.lane.b32.xlu0 %v2839_v54, %s2535_s8 }
  0xbc   : > { %533 = vrot.lane.b32.xlu1 %v2837_v53, %s2536_s9 }
  0xbe   : > { %535 = vrot.lane.b32.xlu0 %v2844_v55, %s2536_s9 }
  0xc0   : > { %537 = vrot.lane.b32.xlu1 %v2839_v54, %s2536_s9 }
  0xc2   : > { %547 = vrot.lane.b32.xlu0 %v2837_v53, %s2537_s10 }
  0xc4   : > { %549 = vrot.lane.b32.xlu1 %v2844_v55, %s2537_s10 }
  0xc6   : > { %551 = vrot.lane.b32.xlu0 %v2839_v54, %s2537_s10 }
  0xc8   : > { %561 = vrot.lane.b32.xlu1 %v2837_v53, %s2538_s27 }
  0xca   : > { %563 = vrot.lane.b32.xlu0 %v2844_v55, %s2538_s27 }
  0xcc   : > { %565 = vrot.lane.b32.xlu1 %v2839_v54, %s2538_s27 }
  0xce   : > { %575 = vrot.lane.b32.xlu0 %v2837_v53, %s2539_s11 }
  0xd0   : > { %577 = vrot.lane.b32.xlu1 %v2844_v55, %s2539_s11 }
  0xd2   : > { %579 = vrot.lane.b32.xlu0 %v2839_v54, %s2539_s11 }
  0xd4   : > { %609 = vrot.lane.b32.xlu1 %v2870_v56, %s2533_s20 }
  0xd6   : > { %607 = vrot.lane.b32.xlu0 %v2874_v57, %s2533_s20  ;;  %s2549_s20 = smov 17  }
  0xd8   : > { %620 = vrot.lane.b32.xlu1 %v2874_v57, %s2534_s22 }
  0xda   : > { %618 = vrot.lane.b32.xlu0 %v2829_v50, %s2534_s22 }
  0xdc   : > { %631 = vrot.lane.b32.xlu1 %v2829_v50, %s2535_s8 }
  0xde   : > { %622 = vrot.lane.b32.xlu0 %v2870_v56, %s2534_s22  ;;  %s2550_s22 = smov 1  }
  0xe0   : > { %635 = vrot.lane.b32.xlu1 %v2870_v56, %s2535_s8 }
  0xe2   : > { %633 = vrot.lane.b32.xlu0 %v2874_v57, %s2535_s8  ;;  %s2551_s8 = smov 113  }
  0xe4   : > { %646 = vrot.lane.b32.xlu1 %v2874_v57, %s2536_s9 }
  0xe6   : > { %644 = vrot.lane.b32.xlu0 %v2829_v50, %s2536_s9 }
  0xe8   : > { %657 = vrot.lane.b32.xlu1 %v2829_v50, %s2537_s10 }
  0xea   : > { %648 = vrot.lane.b32.xlu0 %v2870_v56, %s2536_s9  ;;  %s2552_s9 = smov 97  }
  0xec   : > { %661 = vrot.lane.b32.xlu1 %v2870_v56, %s2537_s10 }
  0xee   : > { %659 = vrot.lane.b32.xlu0 %v2874_v57, %s2537_s10  ;;  %s2553_s10 = smov 81  }
  0xf0   : > { %672 = vrot.lane.b32.xlu1 %v2874_v57, %s2538_s27 }
  0xf2   : > { %670 = vrot.lane.b32.xlu0 %v2829_v50, %s2538_s27 }
  0xf4   : > { %683 = vrot.lane.b32.xlu1 %v2829_v50, %s2539_s11 }
  0xf6   : > { %674 = vrot.lane.b32.xlu0 %v2870_v56, %s2538_s27  ;;  %s2554_s27 = smov 48  }
  0xf8   : > { %687 = vrot.lane.b32.xlu1 %v2870_v56, %s2539_s11 }
  0xfa   : > { %685 = vrot.lane.b32.xlu0 %v2874_v57, %s2539_s11  ;;  %s2555_s11 = smov 32  }
  0xfc   : > { %715 = vrot.lane.b32.xlu1 %v2844_v55, %s2540_s25 }
  0xfe   : > { %713 = vrot.lane.b32.xlu0 %v2837_v53, %s2540_s25 }
 0x100   : > { %727 = vrot.lane.b32.xlu1 %v2837_v53, %s2541_s29 }
 0x102   : > { %717 = vrot.lane.b32.xlu0 %v2839_v54, %s2540_s25 }
 0x104   : > { %731 = vrot.lane.b32.xlu1 %v2839_v54, %s2541_s29 }
 0x106   : > { %729 = vrot.lane.b32.xlu0 %v2844_v55, %s2541_s29 }
 0x108   : > { %743 = vrot.lane.b32.xlu1 %v2844_v55, %s2542_s26 }
 0x10a   : > { %741 = vrot.lane.b32.xlu0 %v2837_v53, %s2542_s26 }
 0x10c   : > { %755 = vrot.lane.b32.xlu1 %v2837_v53, %s2543_s30 }
 0x10e   : > { %745 = vrot.lane.b32.xlu0 %v2839_v54, %s2542_s26 }
 0x110   : > { %759 = vrot.lane.b32.xlu1 %v2839_v54, %s2543_s30 }
 0x112   : > { %757 = vrot.lane.b32.xlu0 %v2844_v55, %s2543_s30 }
 0x114   : > { %771 = vrot.lane.b32.xlu1 %v2844_v55, %s2544_s4 }
 0x116   : > { %769 = vrot.lane.b32.xlu0 %v2837_v53, %s2544_s4 }
 0x118   : > { %783 = vrot.lane.b32.xlu1 %v2837_v53, %s2545_s21 }
 0x11a   : > { %v2931_v58 = vpop.permute.xlu1 %605  ;;  %773 = vrot.lane.b32.xlu0 %v2839_v54, %s2544_s4 }
 0x11c   : > { %787 = vrot.lane.b32.xlu1 %v2839_v54, %s2545_s21  ;;  %v2937_v59 = vpop.permute.xlu0 %489 }
 0x11e   : > { %v2939_v60 = vpop.permute.xlu1 %493  ;;  %785 = vrot.lane.b32.xlu0 %v2844_v55, %s2545_s21 }
 0x120   : > { %799 = vrot.lane.b32.xlu1 %v2844_v55, %s2546_s24  ;;  %v2945_v61 = vpop.permute.xlu0 %491 }
 0x122   : > { %v2947_v62 = vpop.permute.xlu1 %505  ;;  %797 = vrot.lane.b32.xlu0 %v2837_v53, %s2546_s24 }
 0x124   : > { %811 = vrot.lane.b32.xlu1 %v2829_v50, %s2540_s25  ;;  %v2953_v63 = vpop.permute.xlu0 %507 }
 0x126   : > { %v2955_v0 = vpop.permute.xlu1 %509  ;;  %801 = vrot.lane.b32.xlu0 %v2839_v54, %s2546_s24 }
 0x128   : > { %815 = vrot.lane.b32.xlu1 %v2870_v56, %s2540_s25  ;;  %v2961_v1 = vpop.permute.xlu0 %519 }
 0x12a   : > { %v2963_v2 = vpop.permute.xlu1 %521  ;;  %813 = vrot.lane.b32.xlu0 %v2874_v57, %s2540_s25  ;;  %s2556_s25 = smov 16  }
 0x12c   : > { %826 = vrot.lane.b32.xlu1 %v2874_v57, %s2541_s29  ;;  %v2969_v3 = vpop.permute.xlu0 %523 }
 0x12e   : > { %v2971_v4 = vpop.permute.xlu1 %533  ;;  %824 = vrot.lane.b32.xlu0 %v2829_v50, %s2541_s29 }
 0x130   : > { %837 = vrot.lane.b32.xlu1 %v2829_v50, %s2542_s26  ;;  %v2977_v5 = vpop.permute.xlu0 %535 }
 0x132   : > { %v2979_v6 = vpop.permute.xlu1 %537  ;;  %828 = vrot.lane.b32.xlu0 %v2870_v56, %s2541_s29  ;;  %s2557_s29 = smov 112  }
 0x134   : > { %841 = vrot.lane.b32.xlu1 %v2870_v56, %s2542_s26  ;;  %v2985_v7 = vpop.permute.xlu0 %547 }
 0x136   : > { %v2987_v8 = vpop.permute.xlu1 %549  ;;  %839 = vrot.lane.b32.xlu0 %v2874_v57, %s2542_s26  ;;  %s2558_s26 = smov 96  }
 0x138   : > { %852 = vrot.lane.b32.xlu1 %v2874_v57, %s2543_s30  ;;  %v2993_v9 = vpop.permute.xlu0 %551 }
 0x13a   : > { %v2995_v10 = vpop.permute.xlu1 %561  ;;  %850 = vrot.lane.b32.xlu0 %v2829_v50, %s2543_s30 }
 0x13c   : > { %863 = vrot.lane.b32.xlu1 %v2829_v50, %s2544_s4  ;;  %v3001_v11 = vpop.permute.xlu0 %563 }
 0x13e   : > { %v3003_v13 = vpop.permute.xlu1 %565  ;;  %854 = vrot.lane.b32.xlu0 %v2870_v56, %s2543_s30  ;;  %s2559_s30 = smov 80  }
 0x140   : > { %867 = vrot.lane.b32.xlu1 %v2870_v56, %s2544_s4  ;;  %v3009_v14 = vpop.permute.xlu0 %575 }
 0x142   : > { %v3011_v15 = vpop.permute.xlu1 %577  ;;  %865 = vrot.lane.b32.xlu0 %v2874_v57, %s2544_s4  ;;  %s2560_s4 = smov 47  }
 0x144   : > { %878 = vrot.lane.b32.xlu1 %v2874_v57, %s2545_s21  ;;  %v3017_v16 = vpop.permute.xlu0 %579 }
 0x146   : > { %v3019_v17 = vpop.permute.xlu1 %609  ;;  %876 = vrot.lane.b32.xlu0 %v2829_v50, %s2545_s21 }
 0x148   : > { %889 = vrot.lane.b32.xlu1 %v2829_v50, %s2546_s24  ;;  %v3025_v18 = vpop.permute.xlu0 %607 }
 0x14a   : > { %v3027_v19 = vpop.permute.xlu1 %620  ;;  %880 = vrot.lane.b32.xlu0 %v2870_v56, %s2545_s21  ;;  %s2561_s21 = smov 31  }
 0x14c   : > { %893 = vrot.lane.b32.xlu1 %v2870_v56, %s2546_s24  ;;  %v3033_v20 = vpop.permute.xlu0 %618 }
 0x14e   : > { %v3035_v21 = vpop.permute.xlu1 %631  ;;  %891 = vrot.lane.b32.xlu0 %v2874_v57, %s2546_s24  ;;  %s2562_s24 = smov 15  }
 0x150   : > { %921 = vrot.lane.b32.xlu1 %v2844_v55, %s2547_s6  ;;  %v3041_v22 = vpop.permute.xlu0 %622 }
 0x152   : > { %v3043_v23 = vpop.permute.xlu1 %635  ;;  %919 = vrot.lane.b32.xlu0 %v2837_v53, %s2547_s6 }
 0x154   : > { %933 = vrot.lane.b32.xlu1 %v2837_v53, %s2548_s5  ;;  %v3049_v24 = vpop.permute.xlu0 %633 }
 0x156   : > { %v3051_v25 = vpop.permute.xlu1 %646  ;;  %923 = vrot.lane.b32.xlu0 %v2839_v54, %s2547_s6 }
 0x158   : > { %937 = vrot.lane.b32.xlu1 %v2839_v54, %s2548_s5  ;;  %v3057_v26 = vpop.permute.xlu0 %644 }
 0x15a   : > { %v3059_v27 = vpop.permute.xlu1 %657  ;;  %935 = vrot.lane.b32.xlu0 %v2844_v55, %s2548_s5 }
 0x15c   : > { %949 = vrot.lane.b32.xlu1 %v2844_v55, %s2549_s20  ;;  %v3065_v28 = vpop.permute.xlu0 %648 }
 0x15e   : > { %v3067_v29 = vpop.permute.xlu1 %661  ;;  %947 = vrot.lane.b32.xlu0 %v2837_v53, %s2549_s20 }
 0x160   : > { %961 = vrot.lane.b32.xlu1 %v2837_v53, %s2550_s22  ;;  %v3073_v30 = vpop.permute.xlu0 %659 }
 0x162   : > { %v3075_v31 = vpop.permute.xlu1 %672  ;;  %951 = vrot.lane.b32.xlu0 %v2839_v54, %s2549_s20 }
 0x163   : > { %5188 = vst [vmem:[#allocation30_spill] sm:$0xff] %v3075_v31 }
 0x164   : > { %965 = vrot.lane.b32.xlu1 %v2839_v54, %s2550_s22  ;;  %v3081_v32 = vpop.permute.xlu0 %670 }
 0x165   : > { %5189 = vst [vmem:[#allocation31_spill] sm:$0xff] %v3081_v32 }
 0x166   : > { %v3083_v33 = vpop.permute.xlu1 %683  ;;  %963 = vrot.lane.b32.xlu0 %v2844_v55, %s2550_s22 }
 0x167   : > { %5190 = vst [vmem:[#allocation32_spill] sm:$0xff] %v3083_v33 }
 0x168   : > { %977 = vrot.lane.b32.xlu1 %v2844_v55, %s2551_s8  ;;  %v3089_v34 = vpop.permute.xlu0 %674 }
 0x169   : > { %5191 = vst [vmem:[#allocation33_spill] sm:$0xff] %v3089_v34 }
 0x16a   : > { %v3091_v36 = vpop.permute.xlu1 %687  ;;  %975 = vrot.lane.b32.xlu0 %v2837_v53, %s2551_s8 }
 0x16b   : > { %5192 = vst [vmem:[#allocation34_spill] sm:$0xff] %v3091_v36 }
 0x16c   : > { %989 = vrot.lane.b32.xlu1 %v2837_v53, %s2552_s9  ;;  %v3097_v37 = vpop.permute.xlu0 %685 }
 0x16d   : > { %5193 = vst [vmem:[#allocation35_spill] sm:$0xff] %v3097_v37 }
 0x16e   : > { %v3099_v38 = vpop.permute.xlu1 %715  ;;  %979 = vrot.lane.b32.xlu0 %v2839_v54, %s2551_s8 }
 0x170   : > { %993 = vrot.lane.b32.xlu1 %v2839_v54, %s2552_s9  ;;  %v3105_v39 = vpop.permute.xlu0 %713 }
 0x172   : > { %v3107_v41 = vpop.permute.xlu1 %727  ;;  %991 = vrot.lane.b32.xlu0 %v2844_v55, %s2552_s9 }
 0x174   : > { %1005 = vrot.lane.b32.xlu1 %v2844_v55, %s2553_s10  ;;  %v3113_v42 = vpop.permute.xlu0 %717 }
 0x176   : > { %v3115_v43 = vpop.permute.xlu1 %731  ;;  %1003 = vrot.lane.b32.xlu0 %v2837_v53, %s2553_s10 }
 0x178   : > { %1017 = vrot.lane.b32.xlu1 %v2829_v50, %s2547_s6  ;;  %v3121_v44 = vpop.permute.xlu0 %729 }
 0x17a   : > { %v3123_v45 = vpop.permute.xlu1 %743  ;;  %1007 = vrot.lane.b32.xlu0 %v2839_v54, %s2553_s10 }
 0x17b   : > { %5194 = vst [vmem:[#allocation36_spill] sm:$0xff] %v3123_v45 }
 0x17c   : > { %1021 = vrot.lane.b32.xlu1 %v2870_v56, %s2547_s6  ;;  %v3129_v46 = vpop.permute.xlu0 %741 }
 0x17e   : > { %v3131_v48 = vpop.permute.xlu1 %755  ;;  %1019 = vrot.lane.b32.xlu0 %v2874_v57, %s2547_s6  ;;  %s2563_s6 = smov 127  }
 0x17f   : > { %5195 = vst [vmem:[#allocation37_spill] sm:$0xff] %v3131_v48 }
 0x180   : > { %1032 = vrot.lane.b32.xlu1 %v2874_v57, %s2548_s5  ;;  %v3137_v49 = vpop.permute.xlu0 %745 }
 0x182   : > { %v3139_v52 = vpop.permute.xlu1 %759  ;;  %1030 = vrot.lane.b32.xlu0 %v2829_v50, %s2548_s5 }
 0x183   : > { %5196 = vst [vmem:[#allocation38_spill] sm:$0xff] %v3139_v52 }
 0x184   : > { %1043 = vrot.lane.b32.xlu1 %v2829_v50, %s2549_s20  ;;  %v3145_v12 = vpop.permute.xlu0 %757 }
 0x185   : > { %5197 = vst [vmem:[#allocation39_spill] sm:$0xff] %v3145_v12 }
 0x186   : > { %v3147_v40 = vpop.permute.xlu1 %771  ;;  %1034 = vrot.lane.b32.xlu0 %v2870_v56, %s2548_s5  ;;  %s2564_s5 = smov 111  }
 0x187   : > { %5198 = vst [vmem:[#allocation40_spill] sm:$0xff] %v3147_v40 }
 0x188   : > { %1047 = vrot.lane.b32.xlu1 %v2870_v56, %s2549_s20  ;;  %v3153_v35 = vpop.permute.xlu0 %769 }
 0x189   : > { %5199 = vst [vmem:[#allocation41_spill] sm:$0xff] %v3153_v35 }
 0x18a   : > { %v3155_v36 = vpop.permute.xlu1 %783  ;;  %1045 = vrot.lane.b32.xlu0 %v2874_v57, %s2549_s20  ;;  %s2565_s20 = smov 95  }
 0x18b   : > { %5200 = vst [vmem:[#allocation42_spill] sm:$0xff] %v3155_v36 }
 0x18c   : > { %1058 = vrot.lane.b32.xlu1 %v2874_v57, %s2550_s22  ;;  %v3161_v33 = vpop.permute.xlu0 %773 }
 0x18d   : > { %5201 = vst [vmem:[#allocation43_spill] sm:$0xff] %v3161_v33 }
 0x18e   : > { %v3163_v37 = vpop.permute.xlu1 %787  ;;  %1056 = vrot.lane.b32.xlu0 %v2829_v50, %s2550_s22 }
 0x18f   : > { %5202 = vst [vmem:[#allocation44_spill] sm:$0xff] %v3163_v37 }
 0x190   : > { %1069 = vrot.lane.b32.xlu1 %v2829_v50, %s2551_s8  ;;  %v3169_v34 = vpop.permute.xlu0 %785 }
 0x191   : > { %5203 = vst [vmem:[#allocation45_spill] sm:$0xff] %v3169_v34 }
 0x192   : > { %v3171_v35 = vpop.permute.xlu1 %799  ;;  %1060 = vrot.lane.b32.xlu0 %v2870_v56, %s2550_s22  ;;  %s5105_s22 = smov 79  }
 0x193   : > { %5204 = vst [vmem:[#allocation46_spill] sm:$0xff] %v3171_v35 }
 0x194   : > { %1073 = vrot.lane.b32.xlu1 %v2870_v56, %s2551_s8  ;;  %v3177_v36 = vpop.permute.xlu0 %797 }
 0x195   : > { %5205 = vst [vmem:[#allocation47_spill] sm:$0xff] %v3177_v36 }
 0x196   : > { %v3179_v33 = vpop.permute.xlu1 %811  ;;  %1071 = vrot.lane.b32.xlu0 %v2874_v57, %s2551_s8  ;;  %s3479_s8 = sld [smem:[#allocation5]] }
 0x197   : > { %5206 = vst [vmem:[#allocation48_spill] sm:$0xff] %v3179_v33 }
 0x198   : > { %1084 = vrot.lane.b32.xlu1 %v2874_v57, %s2552_s9  ;;  %v3185_v37 = vpop.permute.xlu0 %801 }
 0x199   : > { %5207 = vst [vmem:[#allocation49_spill] sm:$0xff] %v3185_v37 }
 0x19a   : > { %v3187_v34 = vpop.permute.xlu1 %815  ;;  %1082 = vrot.lane.b32.xlu0 %v2829_v50, %s2552_s9 }
 0x19b   : > { %5208 = vst [vmem:[#allocation50_spill] sm:$0xff] %v3187_v34 }
 0x19c   : > { %1095 = vrot.lane.b32.xlu1 %v2829_v50, %s2553_s10  ;;  %v3193_v35 = vpop.permute.xlu0 %813 }
 0x19d   : > { %5209 = vst [vmem:[#allocation51_spill] sm:$0xff] %v3193_v35 }
 0x19e   : > { %v3195_v36 = vpop.permute.xlu1 %826  ;;  %1086 = vrot.lane.b32.xlu0 %v2870_v56, %s2552_s9  ;;  %s3481_s9 = sld [smem:[#allocation5 + $0x7]] }
 0x19f   : > { %5210 = vst [vmem:[#allocation52_spill] sm:$0xff] %v3195_v36 }
 0x1a0   : > { %1099 = vrot.lane.b32.xlu1 %v2870_v56, %s2553_s10  ;;  %v3201_v33 = vpop.permute.xlu0 %824 }
 0x1a1   : > { %5211 = vst [vmem:[#allocation53_spill] sm:$0xff] %v3201_v33 }
 0x1a2   : > { %v3203_v37 = vpop.permute.xlu1 %837  ;;  %1097 = vrot.lane.b32.xlu0 %v2874_v57, %s2553_s10  ;;  %s3485_s10 = sld [smem:[#allocation5 + $0xe]] }
 0x1a3   : > { %5212 = vst [vmem:[#allocation54_spill] sm:$0xff] %v3203_v37 }
 0x1a4   : > { %1127 = vrot.lane.b32.xlu1 %v2844_v55, %s2554_s27  ;;  %v3209_v35 = vpop.permute.xlu0 %828 }
 0x1a5   : > { %5213 = vst [vmem:[#allocation55_spill] sm:$0xff] %v3209_v35 }
 0x1a6   : > { %v3211_v36 = vpop.permute.xlu1 %841  ;;  %1125 = vrot.lane.b32.xlu0 %v2837_v53, %s2554_s27 }
 0x1a7   : > { %5214 = vst [vmem:[#allocation56_spill] sm:$0xff] %v3211_v36 }
 0x1a8   : > { %1139 = vrot.lane.b32.xlu1 %v2837_v53, %s2555_s11  ;;  %v3217_v33 = vpop.permute.xlu0 %839 }
 0x1a9   : > { %5215 = vst [vmem:[#allocation57_spill] sm:$0xff] %v3217_v33 }
 0x1aa   : > { %v3219_v37 = vpop.permute.xlu1 %852  ;;  %1129 = vrot.lane.b32.xlu0 %v2839_v54, %s2554_s27 }
 0x1ab   : > { %5216 = vst [vmem:[#allocation58_spill] sm:$0xff] %v3219_v37 }
 0x1ac   : > { %1143 = vrot.lane.b32.xlu1 %v2839_v54, %s2555_s11  ;;  %v3225_v35 = vpop.permute.xlu0 %850 }
 0x1ad   : > { %5217 = vst [vmem:[#allocation59_spill] sm:$0xff] %v3225_v35 }
 0x1ae   : > { %v3227_v36 = vpop.permute.xlu1 %863  ;;  %1141 = vrot.lane.b32.xlu0 %v2844_v55, %s2555_s11 }
 0x1af   : > { %5218 = vst [vmem:[#allocation60_spill] sm:$0xff] %v3227_v36 }
 0x1b0   : > { %1155 = vrot.lane.b32.xlu1 %v2844_v55, %s2556_s25  ;;  %v3233_v33 = vpop.permute.xlu0 %854 }
 0x1b1   : > { %5219 = vst [vmem:[#allocation61_spill] sm:$0xff] %v3233_v33 }
 0x1b2   : > { %v3235_v37 = vpop.permute.xlu1 %867  ;;  %1153 = vrot.lane.b32.xlu0 %v2837_v53, %s2556_s25 }
 0x1b3   : > { %5220 = vst [vmem:[#allocation62_spill] sm:$0xff] %v3235_v37 }
 0x1b4   : > { %1182 = vrot.lane.b32.xlu1 %v2837_v53, %s2557_s29  ;;  %v3241_v35 = vpop.permute.xlu0 %865 }
 0x1b5   : > { %5221 = vst [vmem:[#allocation63_spill] sm:$0xff] %v3241_v35 }
 0x1b6   : > { %v3243_v36 = vpop.permute.xlu1 %878  ;;  %1157 = vrot.lane.b32.xlu0 %v2839_v54, %s2556_s25 }
 0x1b7   : > { %5222 = vst [vmem:[#allocation64_spill] sm:$0xff] %v3243_v36 }
 0x1b8   : > { %1186 = vrot.lane.b32.xlu1 %v2839_v54, %s2557_s29  ;;  %v3249_v33 = vpop.permute.xlu0 %876 }
 0x1b9   : > { %5223 = vst [vmem:[#allocation65_spill] sm:$0xff] %v3249_v33 }
 0x1ba   : > { %v3251_v37 = vpop.permute.xlu1 %889  ;;  %1184 = vrot.lane.b32.xlu0 %v2844_v55, %s2557_s29 }
 0x1bb   : > { %5224 = vst [vmem:[#allocation66_spill] sm:$0xff] %v3251_v37 }
 0x1bc   : > { %1198 = vrot.lane.b32.xlu1 %v2844_v55, %s2558_s26  ;;  %v3257_v35 = vpop.permute.xlu0 %880 }
 0x1bd   : > { %5225 = vst [vmem:[#allocation67_spill] sm:$0xff] %v3257_v35 }
 0x1be   : > { %v3259_v36 = vpop.permute.xlu1 %893  ;;  %1196 = vrot.lane.b32.xlu0 %v2837_v53, %s2558_s26 }
 0x1bf   : > { %5226 = vst [vmem:[#allocation68_spill] sm:$0xff] %v3259_v36 }
 0x1c0   : > { %1210 = vrot.lane.b32.xlu1 %v2837_v53, %s2559_s30  ;;  %v3265_v33 = vpop.permute.xlu0 %891 }
 0x1c1   : > { %5227 = vst [vmem:[#allocation69_spill] sm:$0xff] %v3265_v33 }
 0x1c2   : > { %v3267_v37 = vpop.permute.xlu1 %921  ;;  %1200 = vrot.lane.b32.xlu0 %v2839_v54, %s2558_s26 }
 0x1c3   : > { %5228 = vst [vmem:[#allocation70_spill] sm:$0xff] %v3267_v37 }
 0x1c4   : > { %1214 = vrot.lane.b32.xlu1 %v2839_v54, %s2559_s30  ;;  %v3273_v35 = vpop.permute.xlu0 %919 }
 0x1c5   : > { %5229 = vst [vmem:[#allocation71_spill] sm:$0xff] %v3273_v35 }
 0x1c6   : > { %v3275_v36 = vpop.permute.xlu1 %933  ;;  %1212 = vrot.lane.b32.xlu0 %v2844_v55, %s2559_s30 }
 0x1c7   : > { %5230 = vst [vmem:[#allocation72_spill] sm:$0xff] %v3275_v36 }
 0x1c8   : > { %1226 = vrot.lane.b32.xlu1 %v2874_v57, %s2554_s27  ;;  %v3281_v34 = vpop.permute.xlu0 %923 }
 0x1c9   : > { %5231 = vst [vmem:[#allocation73_spill] sm:$0xff] %v3281_v34 }
 0x1ca   : > { %v3283_v33 = vpop.permute.xlu1 %937  ;;  %1224 = vrot.lane.b32.xlu0 %v2829_v50, %s2554_s27 }
 0x1cb   : > { %5232 = vst [vmem:[#allocation74_spill] sm:$0xff] %v3283_v33 }
 0x1cc   : > { %1237 = vrot.lane.b32.xlu1 %v2829_v50, %s2555_s11  ;;  %v3289_v37 = vpop.permute.xlu0 %935 }
 0x1cd   : > { %5233 = vst [vmem:[#allocation75_spill] sm:$0xff] %v3289_v37 }
 0x1ce   : > { %v3291_v35 = vpop.permute.xlu1 %949  ;;  %1228 = vrot.lane.b32.xlu0 %v2870_v56, %s2554_s27  ;;  %s3487_s27 = sld [smem:[#allocation5 + $0x15]] }
 0x1cf   : > { %5234 = vst [vmem:[#allocation76_spill] sm:$0xff] %v3291_v35 }
 0x1d0   : > { %1241 = vrot.lane.b32.xlu1 %v2870_v56, %s2555_s11  ;;  %v3297_v36 = vpop.permute.xlu0 %947 }
 0x1d1   : > { %5235 = vst [vmem:[#allocation77_spill] sm:$0xff] %v3297_v36 }
 0x1d2   : > { %v3299_v34 = vpop.permute.xlu1 %961  ;;  %1239 = vrot.lane.b32.xlu0 %v2874_v57, %s2555_s11  ;;  %s3491_s11 = sld [smem:[#allocation5 + $0x1c]] }
 0x1d3   : > { %5236 = vst [vmem:[#allocation78_spill] sm:$0xff] %v3299_v34 }
 0x1d4   : > { %1252 = vrot.lane.b32.xlu1 %v2874_v57, %s2556_s25  ;;  %v3305_v33 = vpop.permute.xlu0 %951 }
 0x1d5   : > { %5237 = vst [vmem:[#allocation79_spill] sm:$0xff] %v3305_v33 }
 0x1d6   : > { %v3307_v37 = vpop.permute.xlu1 %965  ;;  %1250 = vrot.lane.b32.xlu0 %v2829_v50, %s2556_s25 }
 0x1d7   : > { %5238 = vst [vmem:[#allocation80_spill] sm:$0xff] %v3307_v37 }
 0x1d8   : > { %1278 = vrot.lane.b32.xlu1 %v2829_v50, %s2557_s29  ;;  %v3313_v35 = vpop.permute.xlu0 %963  ;;  %v556_v31 = vstv %s3491_s11  ;;  %s3602_s11 = sld [smem:[#allocation5 + $0x1d]] }
 0x1d9   : > { %5239 = vst [vmem:[#allocation81_spill] sm:$0xff] %v3313_v35 }
 0x1da   : > { %v3315_v36 = vpop.permute.xlu1 %977  ;;  %1254 = vrot.lane.b32.xlu0 %v2870_v56, %s2556_s25  ;;  %s3495_s25 = sld [smem:[#allocation5 + $0x23]] }
 0x1db   : > { %5240 = vst [vmem:[#allocation82_spill] sm:$0xff] %v3315_v36 }
 0x1dc   : > { %1282 = vrot.lane.b32.xlu1 %v2870_v56, %s2557_s29  ;;  %v3321_v34 = vpop.permute.xlu0 %975 }
 0x1dd   : > { %5241 = vst [vmem:[#allocation83_spill] sm:$0xff] %v3321_v34 }
 0x1de   : > { %v3323_v33 = vpop.permute.xlu1 %989  ;;  %1280 = vrot.lane.b32.xlu0 %v2874_v57, %s2557_s29  ;;  %s3497_s29 = sld [smem:[#allocation5 + $0x2a]] }
 0x1df   : > { %5242 = vst [vmem:[#allocation84_spill] sm:$0xff] %v3323_v33 }
 0x1e0   : > { %1293 = vrot.lane.b32.xlu1 %v2874_v57, %s2558_s26  ;;  %v3329_v37 = vpop.permute.xlu0 %979 }
 0x1e1   : > { %5243 = vst [vmem:[#allocation85_spill] sm:$0xff] %v3329_v37 }
 0x1e2   : > { %v3331_v35 = vpop.permute.xlu1 %993  ;;  %1291 = vrot.lane.b32.xlu0 %v2829_v50, %s2558_s26 }
 0x1e3   : > { %5244 = vst [vmem:[#allocation86_spill] sm:$0xff] %v3331_v35 }
 0x1e4   : > { %1304 = vrot.lane.b32.xlu1 %v2829_v50, %s2559_s30  ;;  %v3337_v36 = vpop.permute.xlu0 %991 }
 0x1e5   : > { %5245 = vst [vmem:[#allocation87_spill] sm:$0xff] %v3337_v36 }
 0x1e6   : > { %v3339_v34 = vpop.permute.xlu1 %1005  ;;  %1295 = vrot.lane.b32.xlu0 %v2870_v56, %s2558_s26  ;;  %s3504_s26 = sld [smem:[#allocation5 + $0x31]] }
 0x1e7   : > { %5246 = vst [vmem:[#allocation88_spill] sm:$0xff] %v3339_v34 }
 0x1e8   : > { %1308 = vrot.lane.b32.xlu1 %v2870_v56, %s2559_s30  ;;  %v3345_v33 = vpop.permute.xlu0 %1003 }
 0x1e9   : > { %5247 = vst [vmem:[#allocation89_spill] sm:$0xff] %v3345_v33 }
 0x1ea   : > { %v3347_v37 = vpop.permute.xlu1 %1017  ;;  %1306 = vrot.lane.b32.xlu0 %v2874_v57, %s2559_s30  ;;  %s3506_s30 = sld [smem:[#allocation5 + $0x38]] }
 0x1eb   : > { %5248 = vst [vmem:[#allocation90_spill] sm:$0xff] %v3347_v37 }
 0x1ec   : > { %1336 = vrot.lane.b32.xlu1 %v2844_v55, %s2560_s4  ;;  %v3353_v35 = vpop.permute.xlu0 %1007 }
 0x1ed   : > { %5249 = vst [vmem:[#allocation91_spill] sm:$0xff] %v3353_v35 }
 0x1ee   : > { %v3355_v34 = vpop.permute.xlu1 %1021  ;;  %1334 = vrot.lane.b32.xlu0 %v2837_v53, %s2560_s4 }
 0x1ef   : > { %5250 = vst [vmem:[#allocation92_spill] sm:$0xff] %v3355_v34 }
 0x1f0   : > { %1348 = vrot.lane.b32.xlu1 %v2837_v53, %s2561_s21  ;;  %v3361_v33 = vpop.permute.xlu0 %1019 }
 0x1f1   : > { %5251 = vst [vmem:[#allocation93_spill] sm:$0xff] %v3361_v33 }
 0x1f2   : > { %v3363_v37 = vpop.permute.xlu1 %1032  ;;  %1338 = vrot.lane.b32.xlu0 %v2839_v54, %s2560_s4 }
 0x1f3   : > { %5252 = vst [vmem:[#allocation94_spill] sm:$0xff] %v3363_v37 }
 0x1f4   : > { %1352 = vrot.lane.b32.xlu1 %v2839_v54, %s2561_s21  ;;  %v3369_v35 = vpop.permute.xlu0 %1030 }
 0x1f5   : > { %5253 = vst [vmem:[#allocation95_spill] sm:$0xff] %v3369_v35 }
 0x1f6   : > { %v3371_v34 = vpop.permute.xlu1 %1043  ;;  %1350 = vrot.lane.b32.xlu0 %v2844_v55, %s2561_s21 }
 0x1f7   : > { %5254 = vst [vmem:[#allocation96_spill] sm:$0xff] %v3371_v34 }
 0x1f8   : > { %1364 = vrot.lane.b32.xlu1 %v2844_v55, %s2562_s24  ;;  %v3377_v33 = vpop.permute.xlu0 %1034 }
 0x1f9   : > { %5255 = vst [vmem:[#allocation97_spill] sm:$0xff] %v3377_v33 }
 0x1fa   : > { %v3379_v37 = vpop.permute.xlu1 %1047  ;;  %1362 = vrot.lane.b32.xlu0 %v2837_v53, %s2562_s24 }
 0x1fb   : > { %5256 = vst [vmem:[#allocation98_spill] sm:$0xff] %v3379_v37 }
 0x1fc   : > { %1376 = vrot.lane.b32.xlu1 %v2837_v53, %s2563_s6  ;;  %v3385_v35 = vpop.permute.xlu0 %1045 }
 0x1fd   : > { %5257 = vst [vmem:[#allocation99_spill] sm:$0xff] %v3385_v35 }
 0x1fe   : > { %v3387_v34 = vpop.permute.xlu1 %1058  ;;  %1366 = vrot.lane.b32.xlu0 %v2839_v54, %s2562_s24 }
 0x1ff   : > { %5258 = vst [vmem:[#allocation100_spill] sm:$0xff] %v3387_v34 }
 0x200   : > { %1380 = vrot.lane.b32.xlu1 %v2839_v54, %s2563_s6  ;;  %v3393_v33 = vpop.permute.xlu0 %1056 }
 0x201   : > { %5259 = vst [vmem:[#allocation101_spill] sm:$0xff] %v3393_v33 }
 0x202   : > { %v3395_v37 = vpop.permute.xlu1 %1069  ;;  %1378 = vrot.lane.b32.xlu0 %v2844_v55, %s2563_s6 }
 0x203   : > { %5260 = vst [vmem:[#allocation102_spill] sm:$0xff] %v3395_v37 }
 0x204   : > { %1392 = vrot.lane.b32.xlu1 %v2844_v55, %s2564_s5  ;;  %v3401_v35 = vpop.permute.xlu0 %1060 }
 0x205   : > { %5261 = vst [vmem:[#allocation103_spill] sm:$0xff] %v3401_v35 }
 0x206   : > { %v3403_v34 = vpop.permute.xlu1 %1073  ;;  %1390 = vrot.lane.b32.xlu0 %v2837_v53, %s2564_s5 }
 0x207   : > { %5262 = vst [vmem:[#allocation104_spill] sm:$0xff] %v3403_v34 }
 0x208   : > { %1404 = vrot.lane.b32.xlu1 %v2837_v53, %s2565_s20  ;;  %v3409_v33 = vpop.permute.xlu0 %1071 }
 0x209   : > { %5263 = vst [vmem:[#allocation105_spill] sm:$0xff] %v3409_v33 }
 0x20a   : > { %v3411_v37 = vpop.permute.xlu1 %1084  ;;  %1394 = vrot.lane.b32.xlu0 %v2839_v54, %s2564_s5 }
 0x20b   : > { %5264 = vst [vmem:[#allocation106_spill] sm:$0xff] %v3411_v37 }
 0x20c   : > { %1408 = vrot.lane.b32.xlu1 %v2839_v54, %s2565_s20  ;;  %v3417_v35 = vpop.permute.xlu0 %1082 }
 0x20d   : > { %5265 = vst [vmem:[#allocation107_spill] sm:$0xff] %v3417_v35 }
 0x20e   : > { %v3419_v34 = vpop.permute.xlu1 %1095  ;;  %1406 = vrot.lane.b32.xlu0 %v2844_v55, %s2565_s20 }
 0x20f   : > { %5266 = vst [vmem:[#allocation108_spill] sm:$0xff] %v3419_v34 }
 0x210   : > { %1420 = vrot.lane.b32.xlu1 %v2844_v55, %s5105_s22  ;;  %v3425_v33 = vpop.permute.xlu0 %1086 }
 0x211   : > { %5267 = vst [vmem:[#allocation109_spill] sm:$0xff] %v3425_v33 }
 0x212   : > { %v3427_v37 = vpop.permute.xlu1 %1099  ;;  %1418 = vrot.lane.b32.xlu0 %v2837_v53, %s5105_s22 }
 0x213   : > { %5268 = vst [vmem:[#allocation110_spill] sm:$0xff] %v3427_v37 }
 0x214   : > { %1432 = vrot.lane.b32.xlu1 %v2829_v50, %s2560_s4  ;;  %v3433_v35 = vpop.permute.xlu0 %1097 }
 0x215   : > { %5269 = vst [vmem:[#allocation111_spill] sm:$0xff] %v3433_v35 }
 0x216   : > { %v3435_v34 = vpop.permute.xlu1 %1127  ;;  %1422 = vrot.lane.b32.xlu0 %v2839_v54, %s5105_s22  ;;  %s3528_s22 = sld [smem:[#allocation5 + $0x5b]] }
 0x217   : > { %5270 = vst [vmem:[#allocation112_spill] sm:$0xff] %v3435_v34 }
 0x218   : > { %1436 = vrot.lane.b32.xlu1 %v2870_v56, %s2560_s4  ;;  %v3441_v36 = vpop.permute.xlu0 %1125 }
 0x219   : > { %5271 = vst [vmem:[#allocation113_spill] sm:$0xff] %v3441_v36 }
 0x21a   : > { %v3443_v33 = vpop.permute.xlu1 %1139  ;;  %1434 = vrot.lane.b32.xlu0 %v2874_v57, %s2560_s4  ;;  %s3510_s4 = sld [smem:[#allocation5 + $0x3f]] }
 0x21b   : > { %5272 = vst [vmem:[#allocation114_spill] sm:$0xff] %v3443_v33 }
 0x21c   : > { %1447 = vrot.lane.b32.xlu1 %v2874_v57, %s2561_s21  ;;  %v3449_v37 = vpop.permute.xlu0 %1129 }
 0x21d   : > { %5273 = vst [vmem:[#allocation115_spill] sm:$0xff] %v3449_v37 }
 0x21e   : > { %v3451_v35 = vpop.permute.xlu1 %1143  ;;  %1445 = vrot.lane.b32.xlu0 %v2829_v50, %s2561_s21 }
 0x21f   : > { %5274 = vst [vmem:[#allocation116_spill] sm:$0xff] %v3451_v35 }
 0x220   : > { %1458 = vrot.lane.b32.xlu1 %v2829_v50, %s2562_s24  ;;  %v3457_v34 = vpop.permute.xlu0 %1141 }
 0x221   : > { %5275 = vst [vmem:[#allocation117_spill] sm:$0xff] %v3457_v34 }
 0x222   : > { %v3459_v36 = vpop.permute.xlu1 %1155  ;;  %1449 = vrot.lane.b32.xlu0 %v2870_v56, %s2561_s21  ;;  %s3514_s21 = sld [smem:[#allocation5 + $0x46]] }
 0x223   : > { %5276 = vst [vmem:[#allocation118_spill] sm:$0xff] %v3459_v36 }
 0x224   : > { %1462 = vrot.lane.b32.xlu1 %v2870_v56, %s2562_s24  ;;  %v3465_v33 = vpop.permute.xlu0 %1153 }
 0x225   : > { %5277 = vst [vmem:[#allocation119_spill] sm:$0xff] %v3465_v33  ;;  %v514_v33 = vstv %s3481_s9  ;;  %s5288_s9 = smov 79  }
 0x226   : > { %v3467_v37 = vpop.permute.xlu1 %1182  ;;  %1460 = vrot.lane.b32.xlu0 %v2874_v57, %s2562_s24  ;;  %s3516_s24 = sld [smem:[#allocation5 + $0x4d]] }
 0x227   : > { %5278 = vst [vmem:[#allocation120_spill] sm:$0xff] %v3467_v37 }
 0x228   : > { %1473 = vrot.lane.b32.xlu1 %v2874_v57, %s2563_s6  ;;  %v3473_v35 = vpop.permute.xlu0 %1157 }
 0x229   : > { %5279 = vst [vmem:[#allocation121_spill] sm:$0xff] %v3473_v35 }
 0x22a   : > { %v3475_v34 = vpop.permute.xlu1 %1186  ;;  %1471 = vrot.lane.b32.xlu0 %v2829_v50, %s2563_s6 }
 0x22b   : > { %5280 = vst [vmem:[#allocation122_spill] sm:$0xff] %v3475_v34  ;;  %v5283_v34 = vlaneseq }
 0x22c   : > { %1484 = vrot.lane.b32.xlu1 %v2829_v50, %s2564_s5  ;;  %v3489_v37 = vpop.permute.xlu0 %1184 }
 0x22d   : > { %5281 = vst [vmem:[#allocation123_spill] sm:$0xff] %v3489_v37  ;;  %v3502_v35 = vand.u32 127, %v5283_v34  ;;  %v500_v34 = vstv %s3479_s8  ;;  %s3568_s8 = sld [smem:[#allocation5 + $0x8]] }
 0x22e   : > { %v3493_v36 = vpop.permute.xlu1 %1198  ;;  %1475 = vrot.lane.b32.xlu0 %v2870_v56, %s2563_s6  ;;  %s3520_s6 = sld [smem:[#allocation5 + $0x54]] }
 0x22f   : > { %5282 = vst [vmem:[#allocation124_spill] sm:$0xff] %v3493_v36  ;;  %vm497_vm2 = vcmp.lt.s32.totalorder %v3502_v35, 51  ;;  %vm511_vm3 = vcmp.lt.s32.totalorder %v3502_v35, 35  ;;  %vm525_vm4 = vcmp.lt.s32.totalorder %v3502_v35, 19  ;;  %vm539_vm5 = vcmp.lt.s32.totalorder %v3502_v35, 3 }
 0x230   : > { %1488 = vrot.lane.b32.xlu1 %v2870_v56, %s2564_s5  ;;  %v3512_v36 = vpop.permute.xlu0 %1196  ;;  %v513_v32 = vsel %vm511_vm3, %v2955_v0, %v2947_v62  ;;  %vm553_vm6 = vcmp.lt.s32.totalorder %v3502_v35, 115  ;;  %vm567_vm7 = vcmp.lt.s32.totalorder %v3502_v35, 99  ;;  %v512_v52 = vsel %vm511_vm3, %v2947_v62, %v2953_v63 }
 0x231   : > { %5284 = vst [vmem:[#allocation125_spill] sm:$0xff] %v3512_v36  ;;  %v542_v36 = vstv %s3487_s27  ;;  %vm581_vm8 = vcmp.lt.s32.totalorder %v3502_v35, 83  ;;  %v499_v0 = vsel %vm497_vm2, %v2939_v60, %v2937_v59  ;;  %v527_v62 = vsel %vm525_vm4, %v2969_v3, %v2961_v1  ;;  %s3593_s27 = sld [smem:[#allocation5 + $0x16]] }
 0x232   : > { %v3518_v37 = vpop.permute.xlu1 %1210  ;;  %1486 = vrot.lane.b32.xlu0 %v2874_v57, %s2564_s5  ;;  %s3554_s5 = sld [smem:[#allocation5 + $0x1]]  ;;  %v526_v60 = vsel %vm525_vm4, %v2961_v1, %v2963_v2  ;;  %v639_v3 = vstv %s3510_s4  ;;  %v516_v63 = vmul.f32 %v514_v33, %v512_v52  ;;  %v501_v1 = vmul.f32 %v500_v34, %v499_v0  ;;  %s5126_s4 = smov 14  }
 0x233   : > { %5285 = vst [vmem:[#allocation126_spill] sm:$0xff] %v3518_v37  ;;  %v528_v37 = vstv %s3485_s10  ;;  %s3581_s10 = sld [smem:[#allocation5 + $0xf]]  ;;  %v691_v0 = vstv %s3528_s22  ;;  %vm733_vm9 = vcmp.lt.s32.totalorder %v3502_v35, 34  ;;  %vm719_vm10 = vcmp.lt.s32.totalorder %v3502_v35, 50  ;;  %s4007_s22 = sld [smem:[#allocation5 + $0xa]] }
 0x234   : > { %1499 = vrot.lane.b32.xlu1 %v2874_v57, %s2565_s20  ;;  %v3536_v40 = vpop.permute.xlu0 %1200  ;;  %v529_v2 = vmul.f32 %v528_v37, %v527_v62  ;;  %v678_v52 = vstv %s3520_s6  ;;  %vm747_vm11 = vcmp.lt.s32.totalorder %v3502_v35, 18  ;;  %vm761_vm12 = vcmp.lt.s32.totalorder %v3502_v35, 2  ;;  %s3953_s6 = sld [smem:[#allocation5 + $0x4f]] }
 0x235   : > { %5286 = vst [vmem:[#allocation127_spill] sm:$0xff] %v3536_v40  ;;  %v498_v40 = vsel %vm497_vm2, %v2937_v59, %v2945_v61  ;;  %v530_v61 = vmul.f32 %v528_v37, %v526_v60  ;;  %v555_v59 = vsel %vm553_vm6, %v2985_v7, %v2987_v8  ;;  %vm775_vm13 = vcmp.lt.s32.totalorder %v3502_v35, 114 }
 0x236   : > { %v3545_v12 = vpop.permute.xlu1 %1214  ;;  %1497 = vrot.lane.b32.xlu0 %v2829_v50, %s2565_s20  ;;  %v557_v60 = vmul.f32 %v556_v31, %v555_v59  ;;  %v583_v59 = vsel %vm581_vm8, %v3009_v14, %v3011_v15  ;;  %v582_v14 = vsel %vm581_vm8, %v3011_v15, %v3017_v16  ;;  %v611_v16 = vsel %vm497_vm2, %v2931_v58, %v3025_v18 }
 0x237   : > { %5287 = vst [vmem:[#allocation128_spill] sm:$0xff] %v3545_v12  ;;  %v515_v12 = vmul.f32 %v514_v33, %v513_v32  ;;  %v3591_v32 = vld [vmem:[#allocation9] ss:$8 sm:$0x7]  ;;  %v540_v33 = vsel %vm539_vm5, %v2971_v4, %v2977_v5  ;;  %vm789_vm14 = vcmp.lt.s32.totalorder %v3502_v35, 98  ;;  %vm803_vm15 = vcmp.lt.s32.totalorder %v3502_v35, 82 }
 0x238   : > { %1510 = vrot.lane.b32.xlu1 %v2829_v50, %s5288_s9  ;;  %v3583_v48 = vpop.permute.xlu0 %1212  ;;  %v541_v50 = vsel %vm539_vm5, %v2979_v6, %v2971_v4  ;;  %5289 = vst [vmem:[#allocation129_spill] sm:$0xff] %v3591_v32  ;;  %v502_v6 = vmul.f32 %v500_v34, %v498_v40  ;;  %v554_v40 = vsel %vm553_vm6, %v2987_v8, %v2993_v9  ;;  %vm939_vm0 = vcmp.lt.s32.totalorder %v3502_v35, 33  ;;  %v5371_v32 = vld [vmem:[#allocation81_spill] sm:$0xff] }
 0x239   : > { %v517_v4 = vadd.f32 %v515_v12, %v501_v1  ;;  %v543_v5 = vmul.f32 %v542_v36, %v541_v50  ;;  %v544_v62 = vmul.f32 %v542_v36, %v540_v33  ;;  %v569_v12 = vsel %vm567_vm7, %v2995_v10, %v3001_v11 }
 0x23a   : > { %v3595_v45 = vpop.permute.xlu1 %1226  ;;  %1501 = vrot.lane.b32.xlu0 %v2870_v56, %s2565_s20  ;;  %s3621_s20 = sld [smem:[#allocation5 + $0x2b]]  ;;  %v518_v34 = vadd.f32 %v516_v63, %v502_v6  ;;  %v568_v36 = vsel %vm567_vm7, %v3001_v11, %v3003_v13  ;;  %v722_v63 = vstv %s3554_s5  ;;  %v558_v1 = vmul.f32 %v556_v31, %v554_v40 }
 0x23b   : > { %v531_v9 = vadd.f32 %v529_v2, %v517_v4  ;;  %v736_v11 = vstv %s3568_s8  ;;  %v5290_v31 = vstv %s3495_s25  ;;  %v750_v2 = vstv %s3581_s10  ;;  %s3698_s25 = sld [smem:[#allocation5 + $0x2]]  ;;  %s3903_s5 = sld [smem:[#allocation5 + $0x33]] }
 0x23c   : > { %1514 = vrot.lane.b32.xlu1 %v2870_v56, %s5288_s9  ;;  %v3623_v7 = vpop.permute.xlu0 %1224  ;;  %v532_v10 = vadd.f32 %v530_v61, %v518_v34  ;;  %v571_v61 = vmul.f32 %v5290_v31, %v569_v12  ;;  %v5291_v4 = vmov %v5290_v31  ;;  %v764_v34 = vstv %s3593_s27  ;;  %s3914_s8 = sld [smem:[#allocation5 + $0x3a]]  ;;  %s3916_s10 = sld [smem:[#allocation5 + $0x41]] }
 0x23d   : > { %v545_v13 = vadd.f32 %v543_v5, %v531_v9  ;;  %v572_v40 = vmul.f32 %v5291_v4, %v568_v36  ;;  %v612_v5 = vsel %vm497_vm2, %v3019_v17, %v2931_v58  ;;  %v5292_v31 = vstv %s3497_s29  ;;  %s5120_s29 = smov 30   ;;  %s5131_s27 = smov 110  }
 0x23e   : > { %v3635_v8 = vpop.permute.xlu1 %1237  ;;  %1512 = vrot.lane.b32.xlu0 %v2874_v57, %s5288_s9  ;;  %s3667_s9 = sld [smem:[#allocation5 + $0x5c]]  ;;  %v546_v6 = vadd.f32 %v544_v62, %v532_v10  ;;  %v585_v15 = vmul.f32 %v5292_v31, %v583_v59  ;;  %v778_v62 = vstv %s3602_s11  ;;  %v5293_v10 = vmov %v5292_v31  ;;  %s3930_s11 = sld [smem:[#allocation5 + $0x18]] }
 0x23f   : > { %v559_v9 = vadd.f32 %v557_v60, %v545_v13  ;;  %v586_v17 = vmul.f32 %v5293_v10, %v582_v14  ;;  %v625_v60 = vsel %vm511_vm3, %v3041_v22, %v3033_v20  ;;  %v792_v58 = vstv %s3611_s0  ;;  %s3943_s0 = sld [smem:[#allocation5 + $0x48]] }
 0x240   : > { %1542 = vrot.lane.b32.xlu1 %v2844_v55, %s5118_s13  ;;  %v3669_v33 = vpop.permute.xlu0 %1228  ;;  %v560_v36 = vadd.f32 %v558_v1, %v546_v6  ;;  %v5294_v1 = vstv %s3504_s26  ;;  %v624_v59 = vsel %vm511_vm3, %v3033_v20, %v3027_v19  ;;  %v806_v13 = vstv %s3621_s20  ;;  %s3731_s26 = sld [smem:[#allocation5 + $0x17]]  ;;  %s3967_s20 = sld [smem:[#allocation5 + $0x5d]] }
 0x241   : > { %v573_v18 = vadd.f32 %v571_v61, %v559_v9  ;;  %v614_v22 = vmul.f32 %v5294_v1, %v612_v5  ;;  %v5295_v4 = vmov %v5294_v1  ;;  %v819_v61 = vstv %s3631_s1  ;;  %s3988_s1 = sld [smem:[#allocation5 + $0x3]] }
 0x242   : > { %v3678_v12 = vpop.permute.xlu1 %1241  ;;  %1540 = vrot.lane.b32.xlu0 %v2837_v53, %s5118_s13  ;;  %s3711_s13 = sld [smem:[#allocation5 + $0x10]]  ;;  %v574_v6 = vadd.f32 %v572_v40, %v560_v36  ;;  %v615_v31 = vmul.f32 %v5295_v4, %v611_v16  ;;  %v832_v9 = vstv %s3633_s2  ;;  %v5296_v19 = vstv %s3506_s30  ;;  %v3729_v16 = vld [vmem:[#allocation9 + $0x1] ss:$8 sm:$0x7]  ;;  %s3778_s30 = sld [smem:[#allocation5 + $0x1e]] }
 0x243   : > { %v587_v10 = vadd.f32 %v585_v15, %v573_v18  ;;  %v627_v20 = vmul.f32 %v5296_v19, %v625_v60  ;;  %v638_v40 = vsel %vm525_vm4, %v3043_v23, %v3035_v21  ;;  %v845_v36 = vstv %s3642_s28  ;;  %5297 = vst [vmem:[#allocation130_spill] sm:$0xff] %v3729_v16  ;;  %s4039_s2 = sld [smem:[#allocation5 + $0x1f]]  ;;  %s4041_s28 = sld [smem:[#allocation5 + $0x26]] }
 0x244   : > { %1554 = vrot.lane.b32.xlu1 %v2837_v53, %s5120_s29  ;;  %v3713_v14 = vpop.permute.xlu0 %1239  ;;  %s5298_s29 = smov 46   ;;  %v588_v1 = vadd.f32 %v586_v17, %v574_v6  ;;  %v5299_v4 = vmov %v5296_v19  ;;  %v637_v60 = vsel %vm525_vm4, %v3035_v21, %v3049_v24  ;;  %v858_v23 = vstv %s3644_s16  ;;  %s4099_s16 = sld [smem:[#allocation5 + $0x34]] }
 0x245   : > { %v628_v15 = vmul.f32 %v5299_v4, %v624_v59  ;;  %v616_v18 = vadd.f32 %v614_v22, %v587_v10  ;;  %v871_v19 = vstv %s3654_s19  ;;  %v5134_v50 = vstv %s3656_s14  ;;  %s4127_s19 = sld [smem:[#allocation5 + $0x49]] }
 0x246   : > { %v3720_v5 = vpop.permute.xlu1 %1252  ;;  %1544 = vrot.lane.b32.xlu0 %v2839_v54, %s5298_s29  ;;  %v617_v59 = vadd.f32 %v615_v31, %v588_v1  ;;  %v640_v6 = vmul.f32 %v639_v3, %v638_v40  ;;  %v650_v21 = vsel %vm539_vm5, %v3057_v26, %v3051_v25  ;;  %v641_v4 = vmul.f32 %v639_v3, %v637_v60  ;;  %v5309_v60 = vld [vmem:[#allocation39_spill] sm:$0xff] }
 0x247   : > { %v629_v10 = vadd.f32 %v627_v20, %v616_v18  ;;  %v651_v31 = vsel %vm539_vm5, %v3065_v28, %v3057_v26  ;;  %v735_v25 = vsel %vm733_vm9, %v3115_v43, %v3107_v41  ;;  %v5133_v1 = vstv %s3700_s17  ;;  %v5363_v20 = vld [vmem:[#allocation80_spill] sm:$0xff] }
 0x248   : > { %1558 = vrot.lane.b32.xlu1 %v2839_v54, %s5300_s23  ;;  %v3748_v17 = vpop.permute.xlu0 %1250  ;;  %v630_v40 = vadd.f32 %v628_v15, %v617_v59  ;;  %v5301_v26 = vstv %s3514_s21  ;;  %v721_v43 = vsel %vm719_vm10, %v3113_v42, %v3105_v39  ;;  %v749_v15 = vsel %vm747_vm11, %v3137_v49, %v3129_v46  ;;  %s3828_s21 = sld [smem:[#allocation5 + $0x25]] }
 0x249   : > { %v654_v28 = vmul.f32 %v5301_v26, %v650_v21  ;;  %v5302_v59 = vmov %v5301_v26  ;;  %v664_v21 = vsel %vm553_vm6, %v3059_v27, %v3073_v30  ;;  %v737_v26 = vmul.f32 %v736_v11, %v735_v25  ;;  %v5304_v25 = vld [vmem:[#allocation36_spill] sm:$0xff] }
 0x24a   : > { %v3759_v22 = vpop.permute.xlu1 %1278  ;;  %1556 = vrot.lane.b32.xlu0 %v2844_v55, %s5300_s23  ;;  %v653_v3 = vmul.f32 %v5302_v59, %v651_v31  ;;  %v734_v42 = vsel %vm733_vm9, %v3107_v41, %v3121_v44  ;;  %v642_v24 = vadd.f32 %v640_v6, %v629_v10  ;;  %v643_v37 = vadd.f32 %v641_v4, %v630_v40  ;;  %v5306_v4 = vld [vmem:[#allocation37_spill] sm:$0xff]  ;;  %v5307_v40 = vld [vmem:[#allocation38_spill] sm:$0xff] }
 0x24b   : > { %v663_v31 = vsel %vm553_vm6, %v3073_v30, %v3067_v29  ;;  %v720_v41 = vsel %vm719_vm10, %v3105_v39, %v3099_v38  ;;  %v723_v44 = vmul.f32 %v722_v63, %v721_v43  ;;  %v748_v6 = vsel %vm747_vm11, %v3129_v46, %v5304_v25 }
 0x24c   : > { %1570 = vrot.lane.b32.xlu1 %v2844_v55, %s5126_s4  ;;  %v3793_v18 = vpop.permute.xlu0 %1254  ;;  %v751_v29 = vmul.f32 %v750_v2, %v749_v15  ;;  %v656_v30 = vadd.f32 %v654_v28, %v643_v37  ;;  %v5305_v10 = vstv %s3516_s24  ;;  %v738_v39 = vmul.f32 %v736_v11, %v734_v42  ;;  %v5311_v11 = vld [vmem:[#allocation30_spill] sm:$0xff]  ;;  %s3879_s24 = sld [smem:[#allocation5 + $0x2c]] }
 0x24d   : > { %v666_v38 = vmul.f32 %v5305_v10, %v664_v21  ;;  %v763_v46 = vsel %vm761_vm12, %v5307_v40, %v5306_v4  ;;  %v655_v15 = vadd.f32 %v653_v3, %v642_v24  ;;  %v5308_v59 = vmov %v5305_v10  ;;  %v5312_v21 = vld [vmem:[#allocation31_spill] sm:$0xff]  ;;  %v5313_v3 = vld [vmem:[#allocation40_spill] sm:$0xff] }
 0x24e   : > { %v3807_v49 = vpop.permute.xlu1 %1282  ;;  %1568 = vrot.lane.b32.xlu0 %v2837_v53, %s5126_s4  ;;  %v667_v25 = vmul.f32 %v5308_v59, %v663_v31  ;;  %v739_v27 = vadd.f32 %v737_v26, %v723_v44  ;;  %v762_v37 = vsel %vm761_vm12, %v5306_v4, %v5309_v60  ;;  %v677_v42 = vsel %vm567_vm7, %v5312_v21, %v5311_v11  ;;  %v5314_v31 = vld [vmem:[#allocation41_spill] sm:$0xff]  ;;  %v5315_v4 = vld [vmem:[#allocation43_spill] sm:$0xff]  ;;  %v5317_v21 = vld [vmem:[#allocation42_spill] sm:$0xff] }
 0x24f   : > { %5303 = vst [vmem:[#allocation131_spill] sm:$0xff] %v3807_v49  ;;  %v724_v10 = vmul.f32 %v722_v63, %v720_v41  ;;  %v752_v24 = vmul.f32 %v750_v2, %v748_v6  ;;  %v777_v26 = vsel %vm775_vm13, %v5314_v31, %v5313_v3  ;;  %v765_v44 = vmul.f32 %v764_v34, %v763_v46  ;;  %v5316_v59 = vld [vmem:[#allocation45_spill] sm:$0xff] }
 0x250   : > { %1582 = vrot.lane.b32.xlu1 %v2837_v53, %s5124_s12  ;;  %v3840_v43 = vpop.permute.xlu0 %1280  ;;  %v753_v60 = vadd.f32 %v751_v29, %v739_v27  ;;  %v776_v63 = vsel %vm775_vm13, %v5313_v3, %v5315_v4  ;;  %v668_v2 = vadd.f32 %v666_v38, %v655_v15  ;;  %v766_v40 = vmul.f32 %v764_v34, %v762_v37  ;;  %v5319_v38 = vld [vmem:[#allocation44_spill] sm:$0xff]  ;;  %v5321_v15 = vld [vmem:[#allocation33_spill] sm:$0xff] }
 0x251   : > { %v740_v6 = vadd.f32 %v738_v39, %v724_v10  ;;  %v791_v27 = vsel %vm789_vm14, %v5317_v21, %v5316_v59  ;;  %v669_v46 = vadd.f32 %v667_v25, %v656_v30  ;;  %v679_v3 = vmul.f32 %v678_v52, %v677_v42  ;;  %v5322_v25 = vld [vmem:[#allocation46_spill] sm:$0xff]  ;;  %v5323_v42 = vld [vmem:[#allocation47_spill] sm:$0xff] }
 0x252   : > { %v3848_v28 = vpop.permute.xlu1 %1293  ;;  %1572 = vrot.lane.b32.xlu0 %v2839_v54, %s5126_s4  ;;  %v779_v31 = vmul.f32 %v778_v62, %v777_v26  ;;  %v790_v34 = vsel %vm789_vm14, %v5316_v59, %v5319_v38  ;;  %v676_v37 = vsel %vm567_vm7, %v5311_v11, %v5321_v15  ;;  %v780_v30 = vmul.f32 %v778_v62, %v776_v63  ;;  %v5324_v11 = vld [vmem:[#allocation49_spill] sm:$0xff]  ;;  %v5325_v63 = vld [vmem:[#allocation35_spill] sm:$0xff]  ;;  %v5328_v38 = vld [vmem:[#allocation50_spill] sm:$0xff]  ;;  %s5128_s4 = smov 94  }
 0x253   : > { %5310 = vst [vmem:[#allocation36_spill] sm:$0xff] %v3848_v28  ;;  %v754_v10 = vadd.f32 %v752_v24, %v740_v6  ;;  %v805_v26 = vsel %vm803_vm15, %v5323_v42, %v5322_v25  ;;  %v767_v4 = vadd.f32 %v765_v44, %v753_v60  ;;  %v793_v59 = vmul.f32 %v792_v58, %v791_v27  ;;  %v5326_v6 = vld [vmem:[#allocation32_spill] sm:$0xff] }
 0x254   : > { %1586 = vrot.lane.b32.xlu1 %v2839_v54, %s5124_s12  ;;  %v3881_v29 = vpop.permute.xlu0 %1291  ;;  %v804_v62 = vsel %vm803_vm15, %v5322_v25, %v5324_v11  ;;  %v690_v60 = vsel %vm581_vm8, %v5326_v6, %v5325_v63  ;;  %v794_v21 = vmul.f32 %v792_v58, %v790_v34  ;;  %v5327_v27 = vld [vmem:[#allocation48_spill] sm:$0xff]  ;;  %v680_v42 = vmul.f32 %v678_v52, %v676_v37  ;;  %v5330_v6 = vld [vmem:[#allocation51_spill] sm:$0xff] }
 0x255   : > { %5318 = vst [vmem:[#allocation37_spill] sm:$0xff] %v3881_v29  ;;  %v768_v44 = vadd.f32 %v766_v40, %v754_v10  ;;  %v818_v15 = vsel %vm719_vm10, %v5328_v38, %v5327_v27  ;;  %v781_v11 = vadd.f32 %v779_v31, %v767_v4  ;;  %v807_v24 = vmul.f32 %v806_v13, %v805_v26  ;;  %v5332_v31 = vld [vmem:[#allocation53_spill] sm:$0xff]  ;;  %v5333_v37 = vld [vmem:[#allocation55_spill] sm:$0xff]  ;;  %v5334_v4 = vld [vmem:[#allocation34_spill] sm:$0xff] }
 0x256   : > { %v3891_v39 = vpop.permute.xlu1 %1304  ;;  %1584 = vrot.lane.b32.xlu0 %v2844_v55, %s5124_s12  ;;  %v817_v58 = vsel %vm719_vm10, %v5327_v27, %v5330_v6  ;;  %v681_v34 = vadd.f32 %v679_v3, %v668_v2  ;;  %v808_v52 = vmul.f32 %v806_v13, %v804_v62  ;;  %v831_v26 = vsel %vm733_vm9, %v5333_v37, %v5332_v31  ;;  %s3955_s12 = sld [smem:[#allocation5 + $0x56]]  ;;  %v5335_v27 = vld [vmem:[#allocation52_spill] sm:$0xff]  ;;  %v5337_v6 = vld [vmem:[#allocation54_spill] sm:$0xff] }
 0x257   : > { %5320 = vst [vmem:[#allocation38_spill] sm:$0xff] %v3891_v39  ;;  %v782_v10 = vadd.f32 %v780_v30, %v768_v44  ;;  %v689_v2 = vsel %vm581_vm8, %v5325_v63, %v5334_v4  ;;  %v692_v13 = vmul.f32 %v691_v0, %v690_v60  ;;  %v795_v3 = vadd.f32 %v793_v59, %v781_v11  ;;  %v5338_v37 = vld [vmem:[#allocation56_spill] sm:$0xff] }
 0x258   : > { %1598 = vrot.lane.b32.xlu1 %v2844_v55, %s5131_s27  ;;  %v3932_v25 = vpop.permute.xlu0 %1295  ;;  %v820_v30 = vmul.f32 %v819_v61, %v818_v15  ;;  %v821_v44 = vmul.f32 %v819_v61, %v817_v58  ;;  %v830_v63 = vsel %vm733_vm9, %v5332_v31, %v5335_v27  ;;  %v682_v38 = vadd.f32 %v680_v42, %v669_v46  ;;  %v5339_v42 = vld [vmem:[#allocation57_spill] sm:$0xff]  ;;  %v5343_v27 = vld [vmem:[#allocation59_spill] sm:$0xff] }
 0x259   : > { %5329 = vst [vmem:[#allocation39_spill] sm:$0xff] %v3932_v25  ;;  %v796_v62 = vadd.f32 %v794_v21, %v782_v10  ;;  %v809_v15 = vadd.f32 %v807_v24, %v795_v3  ;;  %v833_v11 = vmul.f32 %v832_v9, %v831_v26  ;;  %v844_v21 = vsel %vm747_vm11, %v5338_v37, %v5337_v6  ;;  %v5355_v10 = vld [vmem:[#allocation73_spill] sm:$0xff]  ;;  %v5389_v25 = vld [vmem:[#allocation92_spill] sm:$0xff] }
 0x25a   : > { %v3945_v40 = vpop.permute.xlu1 %1308  ;;  %1596 = vrot.lane.b32.xlu0 %v2837_v53, %s5131_s27  ;;  %vm925_vm2 = vcmp.lt.s32.totalorder %v3502_v35, 49  ;;  %vm953_vm3 = vcmp.lt.s32.totalorder %v3502_v35, 17  ;;  %v693_v46 = vmul.f32 %v691_v0, %v689_v2  ;;  %v843_v58 = vsel %vm747_vm11, %v5337_v6, %v5339_v42  ;;  %v4030_v6 = vld [vmem:[#allocation9 + $0x2] ss:$8 sm:$0x7] }
 0x25b   : > { %5331 = vst [vmem:[#allocation30_spill] sm:$0xff] %v3945_v40  ;;  %v810_v24 = vadd.f32 %v808_v52, %v796_v62  ;;  %v4001_v31 = vadd.f32 %v692_v13, %v681_v34  ;;  %v822_v26 = vadd.f32 %v820_v30, %v809_v15  ;;  %v834_v4 = vmul.f32 %v832_v9, %v830_v63  ;;  %v5342_v62 = vld [vmem:[#allocation58_spill] sm:$0xff]  ;;  %v5344_v15 = vld [vmem:[#allocation61_spill] sm:$0xff]  ;;  %v5354_v0 = vld [vmem:[#allocation71_spill] sm:$0xff] }
 0x25c   : > { %1610 = vrot.lane.b32.xlu1 %v2837_v53, %s5128_s4  ;;  %v3978_v59 = vpop.permute.xlu0 %1306  ;;  %vm967_vm4 = vcmp.lt.s32.totalorder %v3502_v35, 1  ;;  %s4009_s4 = sld [smem:[#allocation5 + $0x11]]  ;;  %v846_v34 = vmul.f32 %v845_v36, %v844_v21  ;;  %v1167_v13 = vstv %s3930_s11  ;;  %v847_v30 = vmul.f32 %v845_v36, %v843_v58  ;;  %5345 = vst [vmem:[#allocation41_spill] sm:$0xff] %v4030_v6  ;;  %v5347_v58 = vld [vmem:[#allocation63_spill] sm:$0xff]  ;;  %s5144_s11 = smov 78   ;;  %v5352_v36 = vld [vmem:[#allocation64_spill] sm:$0xff] }
 0x25d   : > { %5336 = vst [vmem:[#allocation31_spill] sm:$0xff] %v3978_v59  ;;  %5340 = vst [vmem:[#allocation40_spill] sm:$0xff] %v4001_v31  ;;  %v823_v52 = vadd.f32 %v821_v44, %v810_v24  ;;  %v835_v9 = vadd.f32 %v833_v11, %v822_v26  ;;  %v856_v63 = vsel %vm761_vm12, %v5343_v27, %v5342_v62  ;;  %vm981_vm5 = vcmp.lt.s32.totalorder %v3502_v35, 113  ;;  %v5348_v26 = vld [vmem:[#allocation60_spill] sm:$0xff]  ;;  %v5385_v59 = vld [vmem:[#allocation86_spill] sm:$0xff] }
 0x25e   : > { %v3990_v61 = vpop.permute.xlu1 %1336  ;;  %1600 = vrot.lane.b32.xlu0 %v2839_v54, %s5131_s27  ;;  %v857_v44 = vsel %vm761_vm12, %v5344_v15, %v5343_v27  ;;  %v4034_v11 = vadd.f32 %v693_v46, %v682_v38  ;;  %v870_v62 = vsel %vm775_vm13, %v5348_v26, %v5347_v58  ;;  %vm995_vm6 = vcmp.lt.s32.totalorder %v3502_v35, 97  ;;  %v2363_v46 = vld [vmem:[#allocation4] ss:$2 sm:$0x7]  ;;  %v5351_v38 = vld [vmem:[#allocation74_spill] sm:$0xff]  ;;  %s4067_s27 = sld [smem:[#allocation5 + $0x2d]] }
 0x25f   : > { %v836_v42 = vadd.f32 %v834_v4, %v823_v52  ;;  %v4051_v27 = vmul.f32 %v2363_v46, %v1167_v13  ;;  %v860_v15 = vmul.f32 %v858_v23, %v856_v63  ;;  %v859_v4 = vmul.f32 %v858_v23, %v857_v44  ;;  %v5349_v52 = vld [vmem:[#allocation62_spill] sm:$0xff]  ;;  %v5350_v24 = vld [vmem:[#allocation72_spill] sm:$0xff] }
 0x260   : > { %1614 = vrot.lane.b32.xlu1 %v2839_v54, %s5341_s3  ;;  %v4017_v3 = vpop.permute.xlu0 %1334  ;;  %5346 = vst [vmem:[#allocation43_spill] sm:$0xff] %v4034_v11  ;;  %v869_v26 = vsel %vm775_vm13, %v5347_v58, %v5349_v52  ;;  %v941_v13 = vsel %vm939_vm0, %v5351_v38, %v5350_v24  ;;  %v848_v63 = vadd.f32 %v846_v34, %v835_v9  ;;  %vm5153_vm7 = vcmp.lt.s32.totalorder %v3502_v35, 81  ;;  %v5353_v38 = vld [vmem:[#allocation65_spill] sm:$0xff]  ;;  %v5388_v40 = vld [vmem:[#allocation90_spill] sm:$0xff] }
 0x261   : > { %v849_v23 = vadd.f32 %v847_v30, %v836_v42  ;;  %v872_v21 = vmul.f32 %v871_v19, %v870_v62  ;;  %v883_v2 = vsel %vm789_vm14, %v5353_v38, %v5352_v36  ;;  %v927_v34 = vsel %vm925_vm2, %v5355_v10, %v5354_v0  ;;  %v5356_v9 = vld [vmem:[#allocation77_spill] sm:$0xff]  ;;  %v5357_v30 = vld [vmem:[#allocation79_spill] sm:$0xff] }
 0x262   : > { %v4032_v37 = vpop.permute.xlu1 %1348  ;;  %1612 = vrot.lane.b32.xlu0 %v2844_v55, %s5341_s3  ;;  %v955_v42 = vsel %vm953_vm3, %v5357_v30, %v5356_v9  ;;  %v873_v62 = vmul.f32 %v871_v19, %v869_v26  ;;  %v943_v44 = vmul.f32 %v5133_v1, %v941_v13  ;;  %v5358_v10 = vld [vmem:[#allocation29_spill] sm:$0xff]  ;;  %v861_v41 = vadd.f32 %v859_v4, %v848_v63  ;;  %v5360_v38 = vld [vmem:[#allocation75_spill] sm:$0xff] }
 0x263   : > { %v862_v60 = vadd.f32 %v860_v15, %v849_v23  ;;  %v885_v26 = vmul.f32 %v5134_v50, %v883_v2  ;;  %v5359_v13 = vstv %s3698_s25  ;;  %v940_v1 = vsel %vm939_vm0, %v5350_v24, %v5360_v38  ;;  %v5362_v23 = vld [vmem:[#allocation78_spill] sm:$0xff]  ;;  %s4211_s25 = sld [smem:[#allocation5 + $0x50]] }
 0x264   : > { %1626 = vrot.lane.b32.xlu1 %v2844_v55, %s5144_s11  ;;  %v4069_v46 = vpop.permute.xlu0 %1338  ;;  %v929_v58 = vmul.f32 %v5359_v13, %v927_v34  ;;  %v5361_v11 = vstv %s3711_s13  ;;  %v874_v63 = vadd.f32 %v872_v21, %v861_v41  ;;  %v969_v30 = vsel %vm967_vm4, %v5363_v20, %v5362_v23  ;;  %v5364_v34 = vld [vmem:[#allocation70_spill] sm:$0xff]  ;;  %v5365_v21 = vld [vmem:[#allocation76_spill] sm:$0xff] }
 0x265   : > { %v957_v15 = vmul.f32 %v5361_v11, %v955_v42  ;;  %v875_v24 = vadd.f32 %v873_v62, %v862_v60  ;;  %v926_v11 = vsel %vm925_vm2, %v5354_v0, %v5364_v34  ;;  %v954_v20 = vsel %vm953_vm3, %v5356_v9, %v5365_v21  ;;  %v5366_v42 = vld [vmem:[#allocation67_spill] sm:$0xff]  ;;  %v5368_v38 = vld [vmem:[#allocation82_spill] sm:$0xff] }
 0x266   : > { %v4075_v52 = vpop.permute.xlu1 %1352  ;;  %1624 = vrot.lane.b32.xlu0 %v2837_v53, %s5144_s11  ;;  %v945_v41 = vadd.f32 %v943_v44, %v929_v58  ;;  %v882_v60 = vsel %vm789_vm14, %v5352_v36, %v5366_v42  ;;  %v5367_v62 = vstv %s3700_s17  ;;  %v5369_v44 = vld [vmem:[#allocation83_spill] sm:$0xff]  ;;  %v887_v34 = vadd.f32 %v885_v26, %v874_v63  ;;  %v5372_v42 = vld [vmem:[#allocation69_spill] sm:$0xff]  ;;  %v5376_v63 = vld [vmem:[#allocation84_spill] sm:$0xff]  ;;  %s4174_s17 = sld [smem:[#allocation5 + $0x3b]] }
 0x267   : > { %v944_v0 = vmul.f32 %v5367_v62, %v940_v1  ;;  %v983_v58 = vsel %vm981_vm5, %v5369_v44, %v5368_v38  ;;  %v5370_v50 = vstv %s3731_s26  ;;  %v968_v36 = vsel %vm967_vm4, %v5362_v23, %v5371_v32  ;;  %v5373_v62 = vld [vmem:[#allocation66_spill] sm:$0xff] }
 0x268   : > { %1638 = vrot.lane.b32.xlu1 %v5358_v10, %s5298_s29  ;;  %v4107_v19 = vpop.permute.xlu0 %1350  ;;  %v959_v21 = vadd.f32 %v957_v15, %v945_v41  ;;  %v971_v2 = vmul.f32 %v5370_v50, %v969_v30  ;;  %v896_v44 = vsel %vm803_vm15, %v5373_v62, %v5372_v42  ;;  %v930_v31 = vmul.f32 %v5359_v13, %v926_v11  ;;  %v5375_v15 = vld [vmem:[#allocation87_spill] sm:$0xff]  ;;  %v5379_v62 = vld [vmem:[#allocation85_spill] sm:$0xff] }
 0x269   : > { %v5374_v6 = vstv %s3711_s13  ;;  %v997_v50 = vsel %vm995_vm6, %v5376_v63, %v5375_v15  ;;  %v5377_v32 = vstv %s3656_s14  ;;  %v5378_v23 = vstv %s3778_s30  ;;  %s5146_s13 = smov 29   ;;  %s4199_s14 = sld [smem:[#allocation5 + $0x42]] }
 0x26a   : > { %v4119_v4 = vpop.permute.xlu1 %1364  ;;  %1628 = vrot.lane.b32.xlu0 %v2839_v54, %s5144_s11  ;;  %v958_v26 = vmul.f32 %v5374_v6, %v954_v20  ;;  %v886_v30 = vmul.f32 %v5377_v32, %v882_v60  ;;  %v985_v41 = vmul.f32 %v5378_v23, %v983_v58  ;;  %v982_v6 = vsel %vm981_vm5, %v5368_v38, %v5379_v62  ;;  %v5380_v20 = vld [vmem:[#allocation68_spill] sm:$0xff]  ;;  %v5383_v23 = vld [vmem:[#allocation89_spill] sm:$0xff]  ;;  %s4224_s11 = sld [smem:[#allocation5 + $0x5e]] }
 0x26b   : > { %v895_v13 = vsel %vm803_vm15, %v5372_v42, %v5380_v20  ;;  %v946_v60 = vadd.f32 %v944_v0, %v930_v31  ;;  %v5381_v63 = vstv %s3731_s26  ;;  %v5382_v32 = vld [vmem:[#allocation88_spill] sm:$0xff]  ;;  %v5384_v11 = vstv %s3667_s9  ;;  %s4222_s26 = sld [smem:[#allocation5 + $0x57]]  ;;  %s4247_s9 = sld [smem:[#allocation5 + $0xb]] }
 0x26c   : > { %1748 = vrot.lane.b32.xlu1 %v2844_v55, %s5148_s18  ;;  %v4152_v9 = vpop.permute.xlu0 %1362  ;;  %v972_v58 = vmul.f32 %v5381_v63, %v968_v36  ;;  %v1011_v38 = vsel %vm5153_vm7, %v5383_v23, %v5382_v32  ;;  %v898_v16 = vmul.f32 %v5384_v11, %v896_v44  ;;  %v973_v39 = vadd.f32 %v971_v2, %v959_v21 }
 0x26d   : > { %v996_v31 = vsel %vm995_vm6, %v5375_v15, %v5385_v59  ;;  %v5386_v0 = vstv %s3828_s21  ;;  %v960_v20 = vadd.f32 %v958_v26, %v946_v60  ;;  %v5387_v63 = vstv %s3778_s30  ;;  %s4237_s30 = sld [smem:[#allocation5 + $0x4]]  ;;  %s4259_s21 = sld [smem:[#allocation5 + $0x12]] }
 0x26e   : > { %v4160_v1 = vpop.permute.xlu1 %1376  ;;  %1746 = vrot.lane.b32.xlu0 %v2837_v53, %s5148_s18  ;;  %v999_v36 = vmul.f32 %v5386_v0, %v997_v50  ;;  %v986_v23 = vmul.f32 %v5387_v63, %v982_v6  ;;  %v1024_v2 = vsel %vm925_vm2, %v5389_v25, %v5388_v40  ;;  %v1263_v21 = vstv %s4127_s19  ;;  %v5392_v6 = vld [vmem:[#allocation91_spill] sm:$0xff]  ;;  %s4261_s19 = sld [smem:[#allocation5 + $0x19]] }
 0x26f   : > { %v5390_v59 = vmov %v5384_v11  ;;  %v987_v26 = vadd.f32 %v985_v41, %v973_v39  ;;  %v5391_v15 = vstv %s3879_s24  ;;  %v1010_v11 = vsel %vm5153_vm7, %v5382_v32, %v5392_v6  ;;  %v5393_v39 = vld [vmem:[#allocation95_spill] sm:$0xff]  ;;  %v5394_v41 = vld [vmem:[#allocation97_spill] sm:$0xff] }
 0x270   : > { %1760 = vrot.lane.b32.xlu1 %v2837_v53, %s5146_s13  ;;  %v4201_v62 = vpop.permute.xlu0 %1366  ;;  %v899_v44 = vmul.f32 %v5390_v59, %v895_v13  ;;  %v1013_v50 = vmul.f32 %v5391_v15, %v1011_v38  ;;  %vm1145_vm8 = vcmp.lt.s32.totalorder %v3502_v35, 32  ;;  %v888_v25 = vadd.f32 %v886_v30, %v875_v24  ;;  %v5396_v6 = vld [vmem:[#allocation93_spill] sm:$0xff] }
 0x271   : > { %v974_v60 = vadd.f32 %v972_v58, %v960_v20  ;;  %v1000_v13 = vmul.f32 %v5386_v0, %v996_v31  ;;  %v1037_v38 = vsel %vm939_vm0, %v5394_v41, %v5393_v39  ;;  %v1001_v63 = vadd.f32 %v999_v36, %v987_v26  ;;  %v2364_v30 = vld [vmem:[#allocation4 + $0x1] ss:$2 sm:$0x7]  ;;  %v5401_v41 = vld [vmem:[#allocation94_spill] sm:$0xff] }
 0x272   : > { %v4213_v42 = vpop.permute.xlu1 %1380  ;;  %1750 = vrot.lane.b32.xlu0 %v2839_v54, %s5148_s18  ;;  %v5395_v59 = vstv %s3903_s5  ;;  %v1023_v24 = vsel %vm925_vm2, %v5388_v40, %v5396_v6  ;;  %v4257_v58 = vmul.f32 %v2364_v30, %v1263_v21  ;;  %v4265_v20 = vadd.f32 %v898_v16, %v887_v34  ;;  %s4302_s5 = sld [smem:[#allocation5 + $0x27]]  ;;  %s4310_s18 = sld [smem:[#allocation5 + $0x2e]]  ;;  %v5415_v0 = vld [vmem:[#allocation113_spill] sm:$0xff]  ;;  %v5421_v30 = vld [vmem:[#allocation112_spill] sm:$0xff] }
 0x273   : > { %v1026_v15 = vmul.f32 %v5395_v59, %v1024_v2  ;;  %v988_v36 = vadd.f32 %v986_v23, %v974_v60  ;;  %v5399_v2 = vstv %s3879_s24  ;;  %vm1131_vm9 = vcmp.lt.s32.totalorder %v3502_v35, 48  ;;  %s2576_s24 = smov 13   ;;  %v5405_v60 = vld [vmem:[#allocation98_spill] sm:$0xff] }
 0x274   : > { %1764 = vrot.lane.b32.xlu1 %v2839_v54, %s5146_s13  ;;  %v4249_v32 = vpop.permute.xlu0 %1378  ;;  %5397 = vst [vmem:[#allocation45_spill] sm:$0xff] %v4257_v58  ;;  %5398 = vst [vmem:[#allocation42_spill] sm:$0xff] %v4265_v20  ;;  %v1014_v26 = vmul.f32 %v5399_v2, %v1010_v11  ;;  %v4273_v40 = vadd.f32 %v899_v44, %v888_v25  ;;  %v1015_v21 = vadd.f32 %v1013_v50, %v1001_v63  ;;  %v5404_v25 = vld [vmem:[#allocation96_spill] sm:$0xff]  ;;  %v5424_v58 = vld [vmem:[#allocation118_spill] sm:$0xff] }
 0x275   : > { %v1036_v16 = vsel %vm939_vm0, %v5393_v39, %v5401_v41  ;;  %v5402_v34 = vstv %s3914_s8  ;;  %vm1159_vm10 = vcmp.lt.s32.totalorder %v3502_v35, 16  ;;  %v1002_v44 = vadd.f32 %v1000_v13, %v988_v36  ;;  %s4326_s8 = sld [smem:[#allocation5 + $0x35]] }
 0x276   : > { %v4263_v31 = vpop.permute.xlu1 %1392  ;;  %1762 = vrot.lane.b32.xlu0 %v2844_v55, %s5146_s13  ;;  %5400 = vst [vmem:[#allocation44_spill] sm:$0xff] %v4273_v40  ;;  %v1039_v23 = vmul.f32 %v5402_v34, %v1037_v38  ;;  %s4284_s13 = sld [smem:[#allocation5 + $0x20]]  ;;  %v5403_v50 = vmov %v5395_v59  ;;  %v1050_v39 = vsel %vm953_vm3, %v5405_v60, %v5404_v25  ;;  %v1028_v59 = vadd.f32 %v1026_v15, %v1015_v21 }
 0x277   : > { %v1027_v11 = vmul.f32 %v5403_v50, %v1023_v24  ;;  %v1016_v24 = vadd.f32 %v1014_v26, %v1002_v44  ;;  %v5406_v2 = vmov %v5402_v34  ;;  %v5407_v21 = vstv %s3916_s10  ;;  %v5411_v50 = vld [vmem:[#allocation114_spill] sm:$0xff]  ;;  %v5412_v34 = vld [vmem:[#allocation116_spill] sm:$0xff] }
 0x278   : > { %1776 = vrot.lane.b32.xlu1 %v2844_v55, %s2576_s24  ;;  %v4293_v63 = vpop.permute.xlu0 %1390  ;;  %v1040_v41 = vmul.f32 %v5406_v2, %v1036_v16  ;;  %v1041_v15 = vadd.f32 %v1039_v23, %v1028_v59  ;;  %v1052_v60 = vmul.f32 %v5407_v21, %v1050_v39  ;;  %vm1340_vm11 = vcmp.lt.s32.totalorder %v3502_v35, 47  ;;  %v5408_v16 = vld [vmem:[#allocation99_spill] sm:$0xff]  ;;  %v5410_v21 = vld [vmem:[#allocation101_spill] sm:$0xff] }
 0x279   : > { %v1029_v26 = vadd.f32 %v1027_v11, %v1016_v24  ;;  %v1049_v44 = vsel %vm953_vm3, %v5404_v25, %v5408_v16  ;;  %vm1354_vm12 = vcmp.lt.s32.totalorder %v3502_v35, 31  ;;  %v1357_v2 = vstv %s4247_s9  ;;  %v5409_v25 = vld [vmem:[#allocation100_spill] sm:$0xff]  ;;  %s4347_s9 = sld [smem:[#allocation5 + $0x3c]]  ;;  %v5416_v11 = vld [vmem:[#allocation115_spill] sm:$0xff] }
 0x27a   : > { %v4300_v36 = vpop.permute.xlu1 %1404  ;;  %1774 = vrot.lane.b32.xlu0 %v2837_v53, %s2576_s24  ;;  %vm1368_vm13 = vcmp.lt.s32.totalorder %v3502_v35, 15  ;;  %vm1382_vm14 = vcmp.lt.s32.totalorder %v3502_v35, 127  ;;  %v1062_v16 = vsel %vm967_vm4, %v5410_v21, %v5409_v25  ;;  %v1147_v13 = vsel %vm1145_vm8, %v5412_v34, %v5411_v50  ;;  %v5414_v25 = vld [vmem:[#allocation103_spill] sm:$0xff] }
 0x27b   : > { %v4334_v24 = vadd.f32 %v1040_v41, %v1029_v26  ;;  %vm1396_vm15 = vcmp.lt.s32.totalorder %v3502_v35, 111  ;;  %v4349_v41 = vadd.f32 %v1052_v60, %v1041_v15  ;;  %v5413_v26 = vstv %s3916_s10  ;;  %v5417_v60 = vld [vmem:[#allocation117_spill] sm:$0xff]  ;;  %s4378_s10 = sld [smem:[#allocation5 + $0x43]] }
 0x27c   : > { %1788 = vrot.lane.b32.xlu1 %v2837_v53, %s2577_s15  ;;  %v4324_v23 = vpop.permute.xlu0 %1394  ;;  %v4353_v6 = vmul.f32 %v5413_v26, %v1049_v44  ;;  %v1063_v34 = vsel %vm967_vm4, %v5414_v25, %v5410_v21  ;;  %vm1188_vm0 = vcmp.lt.s32.totalorder %v3502_v35, 112  ;;  %v1133_v15 = vsel %vm1131_vm9, %v5416_v11, %v5415_v0  ;;  %v5418_v26 = vld [vmem:[#allocation119_spill] sm:$0xff]  ;;  %v5419_v21 = vld [vmem:[#allocation121_spill] sm:$0xff] }
 0x27d   : > { %v1146_v44 = vsel %vm1145_vm8, %v5411_v50, %v5417_v60  ;;  %v1161_v25 = vsel %vm1159_vm10, %v5419_v21, %v5418_v26  ;;  %vm1410_vm2 = vcmp.lt.s32.totalorder %v3502_v35, 95  ;;  %v5420_v11 = vstv %s3943_s0  ;;  %s2578_s0 = smov 109  }
 0x27e   : > { %v4332_v59 = vpop.permute.xlu1 %1408  ;;  %1778 = vrot.lane.b32.xlu0 %v2839_v54, %s2576_s24  ;;  %v4382_v39 = vmul.f32 %v5420_v11, %v1062_v16  ;;  %v1132_v50 = vsel %vm1131_vm9, %v5415_v0, %v5421_v30  ;;  %v5422_v60 = vstv %s4007_s22  ;;  %vm1202_vm3 = vcmp.lt.s32.totalorder %v3502_v35, 96  ;;  %s5515_s22 = smov 126  }
 0x27f   : > { %v1149_v40 = vmul.f32 %v5422_v60, %v1147_v13  ;;  %v5423_v29 = vmov %v5420_v11  ;;  %v1160_v16 = vsel %vm1159_vm10, %v5418_v26, %v5424_v58  ;;  %vm1424_vm4 = vcmp.lt.s32.totalorder %v3502_v35, 79  ;;  %v5428_v58 = vld [vmem:[#allocation105_spill] sm:$0xff] }
 0x280   : > { %1792 = vrot.lane.b32.xlu1 %v2839_v54, %s2577_s15  ;;  %v4376_v38 = vpop.permute.xlu0 %1406  ;;  %v4396_v28 = vmul.f32 %v5423_v29, %v1063_v34  ;;  %v5425_v30 = vstv %s3988_s1  ;;  %v5426_v11 = vmov %v5422_v60  ;;  %v5427_v21 = vstv %s4009_s4  ;;  %v5429_v34 = vld [vmem:[#allocation102_spill] sm:$0xff]  ;;  %s4564_s1 = sld [smem:[#allocation5 + $0x4a]] }
 0x281   : > { %v1135_v13 = vmul.f32 %v5425_v30, %v1133_v15  ;;  %v1150_v60 = vmul.f32 %v5426_v11, %v1146_v44  ;;  %v1163_v49 = vmul.f32 %v5427_v21, %v1161_v25  ;;  %v1356_v29 = vsel %vm1354_vm12, %v4075_v52, %v4032_v37 }
 0x282   : > { %v4392_v20 = vpop.permute.xlu1 %1420  ;;  %1790 = vrot.lane.b32.xlu0 %v2844_v55, %s2577_s15  ;;  %v4422_v26 = vsel %vm981_vm5, %v5429_v34, %v5428_v58  ;;  %v5430_v15 = vmov %v5425_v30  ;;  %v1355_v25 = vsel %vm1354_vm12, %v4032_v37, %v4107_v19  ;;  %v1440_v52 = vstv %s4326_s8  ;;  %s4925_s8 = sld [smem:[#allocation5 + $0x30]] }
 0x283   : > { %v1136_v44 = vmul.f32 %v5430_v15, %v1132_v50  ;;  %v1151_v30 = vadd.f32 %v1149_v40, %v1135_v13  ;;  %v5431_v11 = vstv %s4009_s4  ;;  %vm1216_vm7 = vcmp.lt.s32.totalorder %v3502_v35, 80  ;;  %s2579_s4 = smov 93  }
 0x284   : > { %1804 = vrot.lane.b32.xlu1 %v2844_v55, %s2578_s0  ;;  %v1419_v21 = vpop.permute.xlu0 %1418  ;;  %v1164_v0 = vmul.f32 %v5431_v11, %v1160_v16  ;;  %v1342_v34 = vsel %vm1340_vm11, %v4069_v46, %v4017_v3  ;;  %v1370_v50 = vsel %vm1368_vm13, %v4201_v62, %v4152_v9  ;;  %v1341_v19 = vsel %vm1340_vm11, %v4017_v3, %v3990_v61 }
 0x285   : > { %v1358_v40 = vmul.f32 %v1357_v2, %v1356_v29  ;;  %v1369_v16 = vsel %vm1368_vm13, %v4152_v9, %v4119_v4  ;;  %v1152_v62 = vadd.f32 %v1150_v60, %v1136_v44  ;;  %v1165_v13 = vadd.f32 %v1163_v49, %v1151_v30 }
 0x286   : > { %v1433_v37 = vpop.permute.xlu1 %1432  ;;  %1802 = vrot.lane.b32.xlu0 %v2837_v53, %s2578_s0  ;;  %v1359_v15 = vmul.f32 %v1357_v2, %v1355_v25  ;;  %v1384_v61 = vsel %vm1382_vm14, %v4160_v1, %v4249_v32  ;;  %v5432_v3 = vstv %s4237_s30  ;;  %v5433_v9 = vstv %s4259_s21  ;;  %s2134_s30 = sld [smem:[#allocation5 + $0x14]]  ;;  %s2141_s21 = sld [smem:[#allocation5 + $0x1b]] }
 0x287   : > { %v1344_v4 = vmul.f32 %v5432_v3, %v1342_v34  ;;  %v1372_v29 = vmul.f32 %v5433_v9, %v1370_v50  ;;  %v1383_v49 = vsel %vm1382_vm14, %v4249_v32, %v4213_v42  ;;  %v1166_v44 = vadd.f32 %v1164_v0, %v1152_v62 }
 0x288   : > { %1816 = vrot.lane.b32.xlu1 %v2837_v53, %s2579_s4  ;;  %v1423_v2 = vpop.permute.xlu0 %1422  ;;  %v5434_v25 = vmov %v5432_v3  ;;  %v5435_v1 = vmov %v5433_v9  ;;  %v1398_v34 = vsel %vm1396_vm15, %v4293_v63, %v4263_v31  ;;  %v5436_v3 = vld [vmem:[#allocation123_spill] sm:$0xff]  ;;  %v5437_v9 = vld [vmem:[#allocation120_spill] sm:$0xff]  ;;  %v5438_v60 = vstv %s4261_s19  ;;  %s2148_s19 = sld [smem:[#allocation5 + $0x22]] }
 0x289   : > { %v1345_v30 = vmul.f32 %v5434_v25, %v1341_v19  ;;  %v1373_v11 = vmul.f32 %v5435_v1, %v1369_v16  ;;  %v1190_v42 = vsel %vm1188_vm0, %v5437_v9, %v5436_v3  ;;  %v1360_v32 = vadd.f32 %v1358_v40, %v1344_v4 }
 0x28a   : > { %v1437_v50 = vpop.permute.xlu1 %1436  ;;  %v1386_v0 = vmul.f32 %v5438_v60, %v1384_v61  ;;  %v1397_v19 = vsel %vm1396_vm15, %v4263_v31, %v4324_v23  ;;  %1806 = vrot.lane.b32.xlu0 %v2839_v54, %s2578_s0  ;;  %v5439_v63 = vrot.slane %v4051_v27, %v2825_v47  ;;  %v5440_v25 = vmov %v5438_v60  ;;  %v5441_v31 = vld [vmem:[#allocation124_spill] sm:$0xff]  ;;  %v5442_v23 = vld [vmem:[#allocation125_spill] sm:$0xff] }
 0x28b   : > { %v1361_v62 = vadd.f32 %v1359_v15, %v1345_v30  ;;  %v1387_v1 = vmul.f32 %v5440_v25, %v1383_v49  ;;  %v1412_v40 = vsel %vm1410_vm2, %v4300_v36, %v4376_v38  ;;  %v1204_v61 = vsel %vm1202_vm3, %v5442_v23, %v5441_v31 }
 0x28c   : > { %v1180_v16 = vadd.f32 %v5439_v63, %v1165_v13  ;;  %1820 = vrot.lane.b32.xlu1 %v2839_v54, %s2579_s4  ;;  %v1374_v4 = vadd.f32 %v1372_v29, %v1360_v32  ;;  %v5443_v13 = vstv %s4284_s13  ;;  %v1411_v49 = vsel %vm1410_vm2, %v4376_v38, %v4332_v59  ;;  %v1435_v60 = vpop.permute.xlu0 %1434  ;;  %v5446_v32 = vld [vmem:[#allocation122_spill] sm:$0xff]  ;;  %s4831_s13 = sld [smem:[#allocation5 + $0x21]] }
 0x28d   : > { %v1400_v15 = vmul.f32 %v5443_v13, %v1398_v34  ;;  %v5444_v36 = vstv %s4039_s2  ;;  %v1375_v9 = vadd.f32 %v1373_v11, %v1361_v62  ;;  %v5445_v63 = vmov %v5443_v13 }
 0x28e   : > { %v1192_v30 = vmul.f32 %v5444_v36, %v1190_v42  ;;  %v1401_v25 = vmul.f32 %v5445_v63, %v1397_v19  ;;  %v1426_v23 = vsel %vm1424_vm4, %v1419_v21, %v4392_v20  ;;  %v1448_v29 = vpop.permute.xlu1 %1447  ;;  %v1189_v34 = vsel %vm1188_vm0, %v5436_v3, %v5446_v32  ;;  %1818 = vrot.lane.b32.xlu0 %v2844_v55, %s2579_s4 }
 0x28f   : > { %v1388_v13 = vadd.f32 %v1386_v0, %v1374_v4  ;;  %v5447_v46 = vstv %s4302_s5  ;;  %v1425_v59 = vsel %vm1424_vm4, %v4392_v20, %v1423_v2  ;;  %v5448_v11 = vstv %s4041_s28  ;;  %v5451_v2 = vld [vmem:[#allocation126_spill] sm:$0xff]  ;;  %s2168_s5 = sld [smem:[#allocation5 + $0x36]] }
 0x290   : > { %v1414_v38 = vmul.f32 %v5447_v46, %v1412_v40  ;;  %v1206_v21 = vmul.f32 %v5448_v11, %v1204_v61  ;;  %v1389_v42 = vadd.f32 %v1387_v1, %v1375_v9  ;;  %v5449_v19 = vmov %v5447_v46  ;;  %1642 = vrot.lane.b32.xlu1 %v2870_v56, %s5298_s29  ;;  %v1446_v4 = vpop.permute.xlu0 %1445 }
 0x291   : > { %v1415_v62 = vmul.f32 %v5449_v19, %v1411_v49  ;;  %v1439_v3 = vsel %vm1340_vm11, %v1437_v50, %v1433_v37  ;;  %v5450_v46 = vrot.slane %v4051_v27, %v2832_v51  ;;  %v1218_v0 = vsel %vm1216_vm7, %v5451_v2, %v3583_v48 }
 0x292   : > { %v1402_v1 = vadd.f32 %v1400_v15, %v1388_v13  ;;  %v5452_v40 = vstv %s4310_s18  ;;  %v1194_v49 = vadd.f32 %v1192_v30, %v1180_v16  ;;  %v1403_v36 = vadd.f32 %v1401_v25, %v1389_v42  ;;  %v1459_v32 = vpop.permute.xlu1 %1458  ;;  %1640 = vrot.lane.b32.xlu0 %v2874_v57, %s5298_s29  ;;  %s2580_s18 = smov 77   ;;  %v5457_v13 = vld [vmem:[#allocation128_spill] sm:$0xff]  ;;  %s4629_s29 = sld [smem:[#allocation5 + $0x51]] }
 0x293   : > { %v1181_v20 = vadd.f32 %v5450_v46, %v1166_v44  ;;  %v1428_v61 = vmul.f32 %v5452_v40, %v1426_v23  ;;  %v5453_v50 = vmov %v5452_v40  ;;  %v1438_v63 = vsel %vm1340_vm11, %v1433_v37, %v1435_v60 }
 0x294   : > { %v1429_v9 = vmul.f32 %v5453_v50, %v1425_v59  ;;  %v5454_v27 = vstv %s4039_s2  ;;  %v1231_v11 = vsel %vm1131_vm9, %v3669_v33, %v3623_v7  ;;  %v1416_v15 = vadd.f32 %v1414_v38, %v1402_v1  ;;  %1832 = vrot.lane.b32.xlu1 %v2844_v55, %s2580_s18  ;;  %v5456_v33 = vld [vmem:[#allocation127_spill] sm:$0xff]  ;;  %s4780_s2 = sld [smem:[#allocation5 + $0xc]] }
 0x295   : > { %v1193_v44 = vmul.f32 %v5454_v27, %v1189_v34  ;;  %v1441_v23 = vmul.f32 %v1440_v52, %v1439_v3  ;;  %v1208_v16 = vadd.f32 %v1206_v21, %v1194_v49  ;;  %v5455_v30 = vstv %s4067_s27  ;;  %v1450_v21 = vpop.permute.xlu0 %1449  ;;  %s5476_s27 = smov 45  }
 0x296   : > { %v1220_v25 = vmul.f32 %v5455_v30, %v1218_v0  ;;  %v1417_v37 = vadd.f32 %v1415_v62, %v1403_v36  ;;  %v1451_v60 = vsel %vm1354_vm12, %v1446_v4, %v1448_v29  ;;  %v1203_v34 = vsel %vm1202_vm3, %v5441_v31, %v5456_v33  ;;  %v1463_v3 = vpop.permute.xlu1 %1462  ;;  %1830 = vrot.lane.b32.xlu0 %v2837_v53, %s2580_s18  ;;  %v5466_v33 = vld [vmem:[#allocation104_spill] sm:$0xff] }
 0x297   : > { %v1217_v38 = vsel %vm1216_vm7, %v3583_v48, %v5457_v13  ;;  %v1430_v59 = vadd.f32 %v1428_v61, %v1416_v15  ;;  %v1442_v29 = vmul.f32 %v1440_v52, %v1438_v63  ;;  %v5458_v42 = vstv %s4099_s16  ;;  %s5517_s16 = smov 110  }
 0x298   : > { %v1233_v55 = vmul.f32 %v5458_v42, %v1231_v11  ;;  %v1244_v19 = vsel %vm1145_vm8, %v3678_v12, %v3635_v8  ;;  %v1431_v31 = vadd.f32 %v1429_v9, %v1417_v37  ;;  %v1452_v62 = vsel %vm1354_vm12, %v1450_v21, %v1446_v4  ;;  %1651 = vrot.lane.b32.xlu1 %v5358_v10, %s5300_s23 }
 0x299   : > { %v1443_v46 = vadd.f32 %v1441_v23, %v1430_v59  ;;  %v5459_v48 = vstv %s4347_s9  ;;  %v1465_v1 = vsel %vm1368_vm13, %v1463_v3, %v1459_v32  ;;  %v1195_v40 = vadd.f32 %v1193_v44, %v1181_v20  ;;  %v1461_v20 = vpop.permute.xlu0 %1460  ;;  %s2175_s9 = sld [smem:[#allocation5 + $0x3d]] }
 0x29a   : > { %v1455_v2 = vmul.f32 %v5459_v48, %v1451_v60  ;;  %v5460_v0 = vmov %v5459_v48  ;;  %v5461_v61 = vstv %s4041_s28  ;;  %v1222_v49 = vadd.f32 %v1220_v25, %v1208_v16  ;;  %1834 = vrot.lane.b32.xlu0 %v2839_v54, %s2580_s18  ;;  %s4790_s28 = sld [smem:[#allocation5 + $0x5]] }
 0x29b   : > { %v1454_v52 = vmul.f32 %v5460_v0, %v1452_v62  ;;  %v1207_v12 = vmul.f32 %v5461_v61, %v1203_v34  ;;  %v5462_v36 = vstv %s4378_s10  ;;  %v5463_v50 = vmov %v5455_v30  ;;  %v1474_v30 = vpop.permute.xlu1 %1473  ;;  %v5473_v0 = vld [vmem:[#allocation107_spill] sm:$0xff]  ;;  %s2169_s10 = sld [smem:[#allocation5 + $0x37]] }
 0x29c   : > { %v1467_v4 = vmul.f32 %v5462_v36, %v1465_v1  ;;  %v1221_v9 = vmul.f32 %v5463_v50, %v1217_v38  ;;  %v1230_v63 = vsel %vm1131_vm9, %v3623_v7, %v3595_v45  ;;  %v1444_v27 = vadd.f32 %v1442_v29, %v1431_v31  ;;  %1655 = vrot.lane.b32.xlu1 %v2870_v56, %s5300_s23  ;;  %v5478_v50 = vld [vmem:[#allocation108_spill] sm:$0xff] }
 0x29d   : > { %v1456_v53 = vadd.f32 %v1454_v52, %v1443_v46  ;;  %v1235_v44 = vadd.f32 %v1233_v55, %v1222_v49  ;;  %v5464_v11 = vstv %s4174_s17  ;;  %v1257_v23 = vsel %vm1159_vm10, %v3793_v18, %v3748_v17  ;;  %v1472_v21 = vpop.permute.xlu0 %1471  ;;  %s2140_s17 = sld [smem:[#allocation5 + $0x1a]] }
 0x29e   : > { %v1246_v15 = vmul.f32 %v5464_v11, %v1244_v19  ;;  %v1464_v16 = vsel %vm1368_vm13, %v1459_v32, %v1461_v20  ;;  %v1243_v45 = vsel %vm1145_vm8, %v3635_v8, %v3713_v14  ;;  %v1457_v25 = vadd.f32 %v1455_v2, %v1444_v27  ;;  %1653 = vrot.lane.b32.xlu0 %v2874_v57, %s5300_s23  ;;  %v5472_v2 = vld [vmem:[#allocation106_spill] sm:$0xff]  ;;  %s5485_s23 = smov 14  }
 0x29f   : > { %v1469_v7 = vadd.f32 %v1467_v4, %v1456_v53  ;;  %v5465_v37 = vmov %v5462_v36  ;;  %v1075_v18 = vsel %vm981_vm5, %v5428_v58, %v5466_v33  ;;  %v1209_v32 = vadd.f32 %v1207_v12, %v1195_v40  ;;  %v5477_v4 = vld [vmem:[#allocation111_spill] sm:$0xff] }
 0x2a0   : > { %v1468_v60 = vmul.f32 %v5465_v37, %v1464_v16  ;;  %v5467_v34 = vmov %v5458_v42  ;;  %v1479_v8 = vstv %s4564_s1  ;;  %v5468_v14 = vstv %s3953_s6  ;;  %1846 = vrot.lane.b32.xlu1 %v2874_v57, %s5476_s27  ;;  %s4664_s6 = sld [smem:[#allocation5 + $0x58]]  ;;  %s2183_s1 = sld [smem:[#allocation5 + $0x45]] }
 0x2a1   : > { %v1234_v13 = vmul.f32 %v5467_v34, %v1230_v63  ;;  %v1078_v38 = vmul.f32 %v5468_v14, %v4422_v26  ;;  %v1256_v54 = vsel %vm1159_vm10, %v3748_v17, %v3720_v5  ;;  %v5469_v59 = vstv %s4199_s14  ;;  %v1485_v26 = vpop.permute.xlu1 %1484  ;;  %v1476_v36 = vpop.permute.xlu0 %1475  ;;  %s2154_s14 = sld [smem:[#allocation5 + $0x28]] }
 0x2a2   : > { %v1259_v58 = vmul.f32 %v5469_v59, %v1257_v23  ;;  %v1470_v29 = vadd.f32 %v1468_v60, %v1457_v25  ;;  %v1055_v42 = vadd.f32 %v4353_v6, %v4334_v24  ;;  %v1223_v55 = vadd.f32 %v1221_v9, %v1209_v32  ;;  %v5474_v24 = vld [vmem:[#allocation109_spill] sm:$0xff]  ;;  %1844 = vrot.lane.b32.xlu0 %v5358_v10, %s5476_s27  ;;  %v5484_v25 = vld [vmem:[#allocation131_spill] sm:$0xff] }
 0x2a3   : > { %v5470_v19 = vmov %v5464_v11  ;;  %v1478_v62 = vsel %vm1382_vm14, %v1472_v21, %v1474_v30  ;;  %v1067_v3 = vadd.f32 %v4396_v28, %v4349_v41  ;;  %v5471_v46 = vmov %v5468_v14 }
 0x2a4   : > { %v1247_v31 = vmul.f32 %v5470_v19, %v1243_v45  ;;  %v1079_v5 = vmul.f32 %v5471_v46, %v1075_v18  ;;  %v1248_v17 = vadd.f32 %v1246_v15, %v1235_v44  ;;  %v1480_v48 = vmul.f32 %v1479_v8, %v1478_v62  ;;  %v5482_v45 = vld [vmem:[#allocation110_spill] sm:$0xff]  ;;  %1664 = vrot.lane.b32.xlu1 %v5358_v10, %s5485_s23  ;;  %v5487_v18 = vld [vmem:[#allocation45_spill] sm:$0xff] }
 0x2a5   : > { %v1089_v6 = vsel %vm995_vm6, %v5473_v0, %v5472_v2  ;;  %v1088_v52 = vsel %vm995_vm6, %v5472_v2, %v5474_v24  ;;  %v1236_v1 = vadd.f32 %v1234_v13, %v1223_v55  ;;  %v5475_v28 = vmov %v5469_v59  ;;  %v1489_v53 = vpop.permute.xlu1 %1488  ;;  %v5491_v59 = vld [vmem:[#allocation37_spill] sm:$0xff]  ;;  %v5496_v2 = vld [vmem:[#allocation30_spill] sm:$0xff]  ;;  %v5497_v0 = vld [vmem:[#allocation31_spill] sm:$0xff] }
 0x2a6   : > { %v1260_v41 = vmul.f32 %v5475_v28, %v1256_v54  ;;  %v1068_v40 = vadd.f32 %v4382_v39, %v1055_v42  ;;  %v1080_v61 = vadd.f32 %v1078_v38, %v1067_v3  ;;  %v1261_v12 = vadd.f32 %v1259_v58, %v1248_v17  ;;  %v1487_v38 = vpop.permute.xlu0 %1486  ;;  %v5490_v54 = vld [vmem:[#allocation36_spill] sm:$0xff]  ;;  %v5492_v58 = vld [vmem:[#allocation39_spill] sm:$0xff]  ;;  %1848 = vrot.lane.b32.xlu0 %v2870_v56, %s5476_s27  ;;  %s2190_s27 = sld [smem:[#allocation5 + $0x4c]] }
 0x2a7   : > { %v1482_v49 = vadd.f32 %v1480_v48, %v1469_v7  ;;  %vm5479_vm5 = vcmp.lt.s32.totalorder %v3502_v35, 81  ;;  %v1249_v63 = vadd.f32 %v1247_v31, %v1236_v1  ;;  %v1285_v27 = vsel %vm1188_vm0, %v3759_v22, %v3840_v43 }
 0x2a8   : > { %v1102_v9 = vsel %vm5479_vm5, %v5478_v50, %v5477_v4  ;;  %v1477_v39 = vsel %vm1382_vm14, %v1474_v30, %v1476_v36  ;;  %v1081_v20 = vadd.f32 %v1079_v5, %v1068_v40  ;;  %v5480_v44 = vstv %s3955_s12  ;;  %vm5483_vm6 = vmmov %vm5479_vm5  ;;  %1668 = vrot.lane.b32.xlu1 %v2870_v56, %s5485_s23  ;;  %s4733_s12 = sld [smem:[#allocation5 + $0x5f]] }
 0x2a9   : > { %v1091_v11 = vmul.f32 %v5480_v44, %v1089_v6  ;;  %v5481_v15 = vmov %v5480_v44  ;;  %v1481_v16 = vmul.f32 %v1479_v8, %v1477_v39  ;;  %v1101_v7 = vsel %vm5483_vm6, %v5477_v4, %v5482_v45  ;;  %v1500_v55 = vpop.permute.xlu1 %1499  ;;  %v1124_v44 = vld [vmem:[#allocation9 + $0x3] ss:$8 sm:$0x7] }
 0x2aa   : > { %v1092_v23 = vmul.f32 %v5481_v15, %v1088_v52  ;;  %v1262_v22 = vadd.f32 %v1260_v41, %v1249_v63  ;;  %v1284_v30 = vsel %vm1188_vm0, %v3840_v43, %v5484_v25  ;;  %v1492_v37 = vstv %s4629_s29  ;;  %v1498_v4 = vpop.permute.xlu0 %1497  ;;  %1666 = vrot.lane.b32.xlu0 %v2874_v57, %s5485_s23  ;;  %v5504_v25 = vld [vmem:[#allocation130_spill] sm:$0xff]  ;;  %s2196_s29 = sld [smem:[#allocation5 + $0x52]]  ;;  %s2197_s23 = sld [smem:[#allocation5 + $0x53]] }
 0x2ab   : > { %v5486_v60 = vstv %s3967_s20  ;;  %v5488_v32 = vrot.slane %v5487_v18, %v2825_v47  ;;  %v5489_v13 = vstv %s4211_s25  ;;  %v1483_v14 = vadd.f32 %v1481_v16, %v1470_v29  ;;  %s5509_s20 = smov 29   ;;  %s2127_s25 = sld [smem:[#allocation5 + $0xd]] }
 0x2ac   : > { %v1104_v33 = vmul.f32 %v5486_v60, %v1102_v9  ;;  %v1287_v8 = vmul.f32 %v5489_v13, %v1285_v27  ;;  %v1298_v43 = vsel %vm1202_vm3, %v5491_v59, %v5490_v54  ;;  %v1297_v21 = vsel %vm1202_vm3, %v5490_v54, %v5492_v58  ;;  %1859 = vrot.lane.b32.xlu1 %v2874_v57, %s5509_s20  ;;  %v5511_v54 = vld [vmem:[#allocation129_spill] sm:$0xff]  ;;  %v5513_v58 = vld [vmem:[#allocation43_spill] sm:$0xff] }
 0x2ad   : > { %v1276_v34 = vadd.f32 %v5488_v32, %v1261_v12  ;;  %v1490_v42 = vsel %vm1396_vm15, %v1487_v38, %v1489_v53  ;;  %v1491_v29 = vsel %vm1396_vm15, %v1485_v26, %v1487_v38  ;;  %v5493_v19 = vmov %v5486_v60  ;;  %v5498_v26 = vld [vmem:[#allocation38_spill] sm:$0xff]  ;;  %v1511_v39 = vpop.permute.xlu1 %1510  ;;  %v5510_v38 = vld [vmem:[#allocation40_spill] sm:$0xff] }
 0x2ae   : > { %v1105_v31 = vmul.f32 %v5493_v19, %v1101_v7  ;;  %v5494_v62 = vmov %v5489_v13  ;;  %v1493_v46 = vmul.f32 %v1492_v37, %v1491_v29  ;;  %v1494_v5 = vmul.f32 %v1492_v37, %v1490_v42  ;;  %v5508_v37 = vld [vmem:[#allocation41_spill] sm:$0xff]  ;;  %1857 = vrot.lane.b32.xlu0 %v5358_v10, %s5509_s20 }
 0x2af   : > { %v1288_v3 = vmul.f32 %v5494_v62, %v1284_v30  ;;  %v5495_v17 = vrot.slane %v5487_v18, %v2832_v51  ;;  %v1310_v6 = vsel %vm1216_vm7, %v5497_v0, %v5496_v2  ;;  %v1311_v24 = vsel %vm1216_vm7, %v5498_v26, %v5497_v0 }
 0x2b0   : > { %v1505_v52 = vstv %s4664_s6  ;;  %v5499_v1 = vstv %s4222_s26  ;;  %v1495_v12 = vadd.f32 %v1493_v46, %v1482_v49  ;;  %v1496_v36 = vadd.f32 %v1494_v5, %v1483_v14  ;;  %v5503_v49 = vld [vmem:[#allocation42_spill] sm:$0xff]  ;;  %v1502_v14 = vpop.permute.xlu0 %1501  ;;  %1677 = vrot.lane.b32.xlu1 %v5358_v10, %s5515_s22  ;;  %s2120_s26 = sld [smem:[#allocation5 + $0x6]]  ;;  %s2203_s6 = sld [smem:[#allocation5 + $0x59]] }
 0x2b1   : > { %v1277_v48 = vadd.f32 %v5495_v17, %v1262_v22  ;;  %v1300_v28 = vmul.f32 %v5499_v1, %v1298_v43  ;;  %v5500_v41 = vmov %v5499_v1  ;;  %v1093_v50 = vadd.f32 %v1091_v11, %v1080_v61  ;;  %v5506_v11 = vld [vmem:[#allocation44_spill] sm:$0xff]  ;;  %v1515_v19 = vpop.permute.xlu1 %1514 }
 0x2b2   : > { %v1301_v40 = vmul.f32 %v5500_v41, %v1297_v21  ;;  %v1094_v9 = vadd.f32 %v1092_v23, %v1081_v20  ;;  %v1289_v63 = vadd.f32 %v1287_v8, %v1276_v34  ;;  %v1504_v27 = vsel %vm1410_vm2, %v1498_v4, %v1500_v55  ;;  %1861 = vrot.lane.b32.xlu0 %v2870_v56, %s5509_s20  ;;  %s4983_s20 = sld [smem:[#allocation5 + $0x5a]] }
 0x2b3   : > { %v1290_v53 = vadd.f32 %v1288_v3, %v1277_v48  ;;  %v5501_v15 = vstv %s4224_s11  ;;  %v1506_v22 = vmul.f32 %v1505_v52, %v1504_v27  ;;  %v5505_v61 = vrot.slane %v5504_v25, %v2825_v47  ;;  %s4801_s11 = sld [smem:[#allocation5 + $0x13]] }
 0x2b4   : > { %v1313_v16 = vmul.f32 %v5501_v15, %v1311_v24  ;;  %v5502_v45 = vmov %v5501_v15  ;;  %v5507_v23 = vrot.slane %v5504_v25, %v2832_v51  ;;  %v1116_v60 = vrot.slane %v5508_v37, %v2832_v51  ;;  %v1513_v1 = vpop.permute.xlu0 %1512  ;;  %1681 = vrot.lane.b32.xlu1 %v2870_v56, %s5515_s22 }
 0x2b5   : > { %v1314_v7 = vmul.f32 %v5502_v45, %v1310_v6  ;;  %v913_v20 = vmul.f32 %v5505_v61, %v5503_v49  ;;  %v1106_v18 = vadd.f32 %v1104_v33, %v1093_v50  ;;  %v1107_v32 = vadd.f32 %v1105_v31, %v1094_v9  ;;  %v1333_v31 = vld [vmem:[#allocation9 + $0x4] ss:$8 sm:$0x7] }
 0x2b6   : > { %v914_v30 = vmul.f32 %v5507_v23, %v5506_v11  ;;  %v1302_v34 = vadd.f32 %v1300_v28, %v1289_v63  ;;  %v1303_v13 = vadd.f32 %v1301_v40, %v1290_v53  ;;  %v1508_v8 = vadd.f32 %v1506_v22, %v1495_v12  ;;  %v1543_v40 = vpop.permute.xlu1 %1542  ;;  %1679 = vrot.lane.b32.xlu0 %v2874_v57, %s5515_s22  ;;  %s2211_s22 = sld [smem:[#allocation5 + $0x61]] }
 0x2b7   : > { %v5512_v59 = vrot.slane %v5511_v54, %v2825_v47  ;;  %v5514_v21 = vrot.slane %v5511_v54, %v2832_v51  ;;  %v1321_v33 = vrot.slane %v1124_v44, %v2825_v47  ;;  %v1503_v29 = vsel %vm1410_vm2, %v1500_v55, %v1502_v14 }
 0x2b8   : > { %v1325_v62 = vrot.slane %v1124_v44, %v2832_v51  ;;  %v1315_v3 = vadd.f32 %v1313_v16, %v1302_v34  ;;  %v1316_v46 = vadd.f32 %v1314_v7, %v1303_v13  ;;  %v1507_v5 = vmul.f32 %v1505_v52, %v1503_v29  ;;  %v1541_v53 = vpop.permute.xlu0 %1540  ;;  %1872 = vrot.lane.b32.xlu1 %v2874_v57, %s2576_s24 }
 0x2b9   : > { %v707_v43 = vmul.f32 %v5512_v59, %v5510_v38  ;;  %v708_v42 = vmul.f32 %v5514_v21, %v5513_v58  ;;  %v1518_v2 = vstv %s4733_s12  ;;  %v5516_v0 = vrot.slane %v5508_v37, %v2825_v47  ;;  %s2210_s12 = sld [smem:[#allocation5 + $0x60]] }
 0x2ba   : > { %v1120_v6 = vmul.f32 %v1116_v60, %v1107_v32  ;;  %v1509_v26 = vadd.f32 %v1507_v5, %v1496_v36  ;;  %v1527_v24 = vrot.slane %v1333_v31, %v2825_v47  ;;  %v1531_v52 = vrot.slane %v1333_v31, %v2832_v51  ;;  %v1555_v15 = vpop.permute.xlu1 %1554  ;;  %1870 = vrot.lane.b32.xlu0 %v5358_v10, %s2576_s24 }
 0x2bb   : > { %v915_v17 = vadd.f32 %v913_v20, %v707_v43  ;;  %v916_v48 = vadd.f32 %v914_v30, %v708_v42  ;;  %v1119_v55 = vmul.f32 %v5516_v0, %v1106_v18  ;;  %v1516_v28 = vsel %vm1424_vm4, %v1513_v1, %v1515_v19 }
 0x2bc   : > { %v1517_v41 = vsel %vm1424_vm4, %v1511_v39, %v1513_v1  ;;  %vm1546_vm7 = vcmp.lt.s32.totalorder %v3502_v35, 46  ;;  %v1328_v12 = vmul.f32 %v1321_v33, %v1315_v3  ;;  %v1329_v4 = vmul.f32 %v1325_v62, %v1316_v46  ;;  %v1545_v61 = vpop.permute.xlu0 %1544  ;;  %1690 = vrot.lane.b32.xlu1 %v5358_v10, %s5517_s16 }
 0x2bd   : > { %v1519_v50 = vmul.f32 %v1518_v2, %v1517_v41  ;;  %v1520_v36 = vmul.f32 %v1518_v2, %v1516_v28  ;;  %v1121_v9 = vadd.f32 %v1119_v55, %v915_v17  ;;  %v1122_v63 = vadd.f32 %v1120_v6, %v916_v48 }
 0x2be   : > { %v1547_v44 = vsel %vm1546_vm7, %v1541_v53, %v1543_v40  ;;  %vm1560_vm8 = vcmp.lt.s32.totalorder %v3502_v35, 30  ;;  %v1563_v20 = vstv %s4780_s2  ;;  %v1548_v11 = vsel %vm1546_vm7, %v1545_v61, %v1541_v53  ;;  %v1559_v23 = vpop.permute.xlu1 %1558  ;;  %1874 = vrot.lane.b32.xlu0 %v2870_v56, %s2576_s24  ;;  %s2155_s24 = sld [smem:[#allocation5 + $0x29]]  ;;  %s5519_s2 = sld [smem:[#allocation20_spill]] }
 0x2bf   : > { %v1521_v27 = vadd.f32 %v1519_v50, %v1508_v8  ;;  %v1522_v39 = vadd.f32 %v1520_v36, %v1509_v26  ;;  %v1330_v16 = vadd.f32 %v1328_v12, %v1121_v9  ;;  %v1331_v45 = vadd.f32 %v1329_v4, %v1122_v63 }
 0x2c0   : > { %v1549_v30 = vstv %s4790_s28  ;;  %v1562_v37 = vsel %vm1560_vm8, %v1559_v23, %v1555_v15  ;;  %v1557_v32 = vpop.permute.xlu0 %1556  ;;  %vm1574_vm9 = vcmp.lt.s32.totalorder %v3502_v35, 14  ;;  %v1577_v54 = vstv %s4801_s11  ;;  %1694 = vrot.lane.b32.xlu1 %v2870_v56, %s5517_s16  ;;  %s2114_s11 = sshll.u32 %s2793_s7, 1 }
 0x2c1   : > { %v1534_v7 = vmul.f32 %v1527_v24, %v1521_v27  ;;  %v1535_v22 = vmul.f32 %v1531_v52, %v1522_v39  ;;  %v1550_v60 = vmul.f32 %v1549_v30, %v1548_v11  ;;  %v1564_v18 = vmul.f32 %v1563_v20, %v1562_v37 }
 0x2c2   : > { %v1561_v13 = vsel %vm1560_vm8, %v1555_v15, %v1557_v32  ;;  %v1571_v8 = vpop.permute.xlu1 %1570  ;;  %v1551_v14 = vmul.f32 %v1549_v30, %v1547_v44  ;;  %1692 = vrot.lane.b32.xlu0 %v2874_v57, %s5517_s16  ;;  %vm1588_vm10 = vcmp.lt.s32.totalorder %v3502_v35, 126  ;;  %v1591_v3 = vstv %s2140_s17  ;;  %s227_s17 = scalar_lea.vmem [#allocation12], %s2114_s11 }
 0x2c3   : > { %v4803_v49 = vadd.f32 %v1534_v7, %v1330_v16  ;;  %v4805_v25 = vadd.f32 %v1535_v22, %v1331_v45  ;;  %v1566_v34 = vadd.f32 %v1564_v18, %v1550_v60  ;;  %v1565_v38 = vmul.f32 %v1563_v20, %v1561_v13 }
 0x2c4   : > { %v1569_v43 = vpop.permute.xlu0 %1568  ;;  %1885 = vrot.lane.b32.xlu1 %v2874_v57, %s2577_s15  ;;  %vm1602_vm11 = vcmp.lt.s32.totalorder %v3502_v35, 110  ;;  %v1605_v6 = vstv %s4831_s13  ;;  %vm1616_vm12 = vcmp.lt.s32.totalorder %v3502_v35, 94  ;;  %v1619_v9 = vstv %s2154_s14  ;;  %s2220_s16 = sshll.u32 %s5519_s2, 5  ;;  %s1996_s13 = sshll.u32 %s227_s17, 4  ;;  %s5015_s13 = int_to_ptr.vmem [resolvable:$true] %s1996_s13 }
 0x2c5   : > { %v1567_v59 = vadd.f32 %v1565_v38, %v1551_v14  ;;  %v1575_v58 = vsel %vm1574_vm9, %v1569_v43, %v1571_v8  ;;  %vm1630_vm13 = vcmp.lt.s32.totalorder %v3502_v35, 78  ;;  %vm1752_vm14 = vcmp.lt.s32.totalorder %v3502_v35, 45 }
 0x2c6   : > { %v1583_v21 = vpop.permute.xlu1 %1582  ;;  %v1579_v42 = vmul.f32 %v1577_v54, %v1575_v58  ;;  %1883 = vrot.lane.b32.xlu0 %v5358_v10, %s2577_s15  ;;  %vm1766_vm15 = vcmp.lt.s32.totalorder %v3502_v35, 29  ;;  %vm1780_vm0 = vcmp.lt.s32.totalorder %v3502_v35, 13  ;;  %vm1794_vm2 = vcmp.lt.s32.totalorder %v3502_v35, 125 }
 0x2c7   : > { %vm1808_vm3 = vcmp.lt.s32.totalorder %v3502_v35, 109  ;;  %vm1822_vm4 = vcmp.lt.s32.totalorder %v3502_v35, 93  ;;  %vm1836_vm5 = vcmp.lt.s32.totalorder %v3502_v35, 77 }
 0x2c8   : > { %v1581_v33 = vadd.f32 %v1579_v42, %v1567_v59  ;;  %v1573_v29 = vpop.permute.xlu0 %1572  ;;  %1703 = vrot.lane.b32.xlu1 %v5358_v10, %s5341_s3 }
 0x2c9   : > { %v1576_v19 = vsel %vm1574_vm9, %v1573_v29, %v1569_v43  ;;  %v1755_v43 = vstv %s2120_s26  ;;  %s1982_s26 = scalar_lea.sflag [#allocation7], %s2793_s7 }
 0x2ca   : > { %v1587_v31 = vpop.permute.xlu1 %1586  ;;  %v1578_v62 = vmul.f32 %v1577_v54, %v1576_v19  ;;  %1887 = vrot.lane.b32.xlu0 %v2870_v56, %s2577_s15  ;;  %s4856_s15 = sld [smem:[#allocation5 + $0x2f]]  ;;  %v1769_v54 = vstv %s2127_s25 }
 0x2cc   : > { %v1580_v46 = vadd.f32 %v1578_v62, %v1566_v34  ;;  %v1585_v5 = vpop.permute.xlu0 %1584  ;;  %1707 = vrot.lane.b32.xlu1 %v2870_v56, %s5341_s3 }
 0x2cd   : > { %v1589_v17 = vsel %vm1588_vm10, %v1585_v5, %v1587_v31  ;;  %v1590_v48 = vsel %vm1588_vm10, %v1583_v21, %v1585_v5 }
 0x2ce   : > { %v1599_v2 = vpop.permute.xlu1 %1598  ;;  %v1592_v0 = vmul.f32 %v1591_v3, %v1590_v48  ;;  %v1593_v55 = vmul.f32 %v1591_v3, %v1589_v17  ;;  %1705 = vrot.lane.b32.xlu0 %v2874_v57, %s5341_s3  ;;  %s5518_s3 = smov 78   ;;  %v1783_v3 = vstv %s2134_s30  ;;  %s2436_s30 = scalar_lea.vmem %s5015_s13, 32 }
 0x2cf   : > { %p2437_p1 = scmp.ne.s32.totalorder %s5015_s13, %s2436_s30 }
 0x2d0   : > { %v1594_v26 = vadd.f32 %v1592_v0, %v1580_v46  ;;  %v1595_v24 = vadd.f32 %v1593_v55, %v1581_v33  ;;  %v1597_v1 = vpop.permute.xlu0 %1596  ;;  %1898 = vrot.lane.b32.xlu1 %v2874_v57, %s2578_s0  ;;  %v1633_v45 = vstv %s4856_s15 }
 0x2d1   : > { %v1604_v52 = vsel %vm1602_vm11, %v1597_v1, %v1599_v2  ;;  %p2438_p4 = pnand %p2437_p1, %p2736_p8 }
 0x2d2   : > { %v1611_v28 = vpop.permute.xlu1 %1610  ;;  %v1606_v41 = vmul.f32 %v1605_v6, %v1604_v52  ;;  %1896 = vrot.lane.b32.xlu0 %v5358_v10, %s2578_s0 }
 0x2d3   : > { %p2439_p6 = pneg %p2438_p4 }
 0x2d4   : > { %v1608_v40 = vadd.f32 %v1606_v41, %v1594_v26  ;;  %v1601_v12 = vpop.permute.xlu0 %1600  ;;  %1716 = vrot.lane.b32.xlu1 %v5358_v10, %s5518_s3 }
 0x2d5   : > { %v1603_v4 = vsel %vm1602_vm11, %v1599_v2, %v1601_v12 }
 0x2d6   : > { %v1615_v50 = vpop.permute.xlu1 %1614  ;;  %v1607_v36 = vmul.f32 %v1605_v6, %v1603_v4  ;;  %1900 = vrot.lane.b32.xlu0 %v2870_v56, %s2578_s0  ;;  %s2182_s0 = sld [smem:[#allocation5 + $0x44]] }
 0x2d8   : > { %v1609_v63 = vadd.f32 %v1607_v36, %v1595_v24  ;;  %v1613_v27 = vpop.permute.xlu0 %1612  ;;  %1720 = vrot.lane.b32.xlu1 %v2870_v56, %s5518_s3  ;;  %v1797_v24 = vstv %s2141_s21  ;;  %s2581_s21 = smov [#allocation12]  }
 0x2d9   : > { %v1617_v39 = vsel %vm1616_vm12, %v1613_v27, %v1615_v50  ;;  %v1618_v53 = vsel %vm1616_vm12, %v1611_v28, %v1613_v27  ;;  %v1811_v50 = vstv %s2148_s19  ;;  %s2440_s19 = sshll.u32 %s2581_s21, 4  ;;  %s2441_s19 = int_to_ptr.vmem [resolvable:$false] %s2440_s19 }
 0x2da   : > { %v1627_v44 = vpop.permute.xlu1 %1626  ;;  %v1620_v15 = vmul.f32 %v1619_v9, %v1618_v53  ;;  %v1621_v16 = vmul.f32 %v1619_v9, %v1617_v39  ;;  %1718 = vrot.lane.b32.xlu0 %v2874_v57, %s5518_s3  ;;  %s5522_s3 = sld [smem:[#allocation135_spill]]  ;;  %p2443_p9 = scmp.lt.s32.totalorder %s5015_s13, %s2441_s19 }
 0x2dc   : > { %v1622_v7 = vadd.f32 %v1620_v15, %v1608_v40  ;;  %v1623_v22 = vadd.f32 %v1621_v16, %v1609_v63  ;;  %v1625_v61 = vpop.permute.xlu0 %1624  ;;  %1911 = vrot.lane.b32.xlu1 %v2874_v57, %s2579_s4 }
 0x2dd   : > { %v1632_v20 = vsel %vm1630_vm13, %v1625_v61, %v1627_v44 }
 0x2de   : > { %v4877_v11 = vpop.permute.xlu1 %1638  ;;  %v1634_v23 = vmul.f32 %v1633_v45, %v1632_v20  ;;  %1909 = vrot.lane.b32.xlu0 %v5358_v10, %s2579_s4 }
 0x2e0   : > { %v4883_v30 = vadd.f32 %v1634_v23, %v1622_v7  ;;  %v1629_v37 = vpop.permute.xlu0 %1628  ;;  %1922 = vrot.lane.b32.xlu1 %v5358_v10, %s2580_s18  ;;  %v1646_v23 = vstv %s2168_s5  ;;  %s5013_s25 = scalar_lea.hbm %s5522_s3, %s2220_s16 }
 0x2e1   : > { %v1631_v60 = vsel %vm1630_vm13, %v1627_v44, %v1629_v37 }
 0x2e2   : > { %v1749_v18 = vpop.permute.xlu1 %1748  ;;  %v1635_v32 = vmul.f32 %v1633_v45, %v1631_v60  ;;  %1913 = vrot.lane.b32.xlu0 %v2870_v56, %s2579_s4  ;;  %s2176_s4 = sld [smem:[#allocation5 + $0x3e]] }
 0x2e4   : > { %v4892_v34 = vadd.f32 %v1635_v32, %v1623_v22  ;;  %v1747_v13 = vpop.permute.xlu0 %1746  ;;  %1926 = vrot.lane.b32.xlu1 %v2870_v56, %s2580_s18  ;;  %v1825_v22 = vstv %s2155_s24  ;;  %s2442_s24 = scalar_lea.vmem %s2441_s19, 64 }
 0x2e5   : > { %v1753_v8 = vsel %vm1752_vm14, %v1747_v13, %v1749_v18  ;;  %p2444_p0 = scmp.lt.s32.totalorder %s2442_s24, %s2436_s30 }
 0x2e6   : > { %v1761_v14 = vpop.permute.xlu1 %1760  ;;  %1924 = vrot.lane.b32.xlu0 %v2874_v57, %s2580_s18  ;;  %v1757_v31 = vmul.f32 %v1755_v43, %v1753_v8  ;;  %s2189_s18 = sld [smem:[#allocation5 + $0x4b]] }
 0x2e7   : > { %p2445_p11 = por %p2444_p0, %p2443_p9 }
 0x2e8   : > { %v1751_v38 = vpop.permute.xlu0 %1750 }
 0x2e9   : > { %v1754_v10 = vsel %vm1752_vm14, %v1751_v38, %v1747_v13  ;;  %p2446_p5 = pnand %p2445_p11, %p2439_p6 }
 0x2ea   : > { %v1765_v59 = vpop.permute.xlu1 %1764  ;;  %v1756_v21 = vmul.f32 %v1755_v43, %v1754_v10 }
 0x2eb   : > { %v1768_v58 = vsel %vm1766_vm15, %v1765_v59, %v1761_v14 }
 0x2ec   : > { %v1770_v42 = vmul.f32 %v1769_v54, %v1768_v58  ;;  %v1763_v33 = vpop.permute.xlu0 %1762 }
 0x2ed   : > { %v1767_v29 = vsel %vm1766_vm15, %v1761_v14, %v1763_v33 }
 0x2ee   : > { %v1772_v56 = vadd.f32 %v1770_v42, %v1756_v21  ;;  %v1777_v19 = vpop.permute.xlu1 %1776  ;;  %v1771_v62 = vmul.f32 %v1769_v54, %v1767_v29  ;;  %v1839_v42 = vstv %s4925_s8 }
 0x2f0   : > { %v1773_v46 = vadd.f32 %v1771_v62, %v1757_v31  ;;  %v1775_v5 = vpop.permute.xlu0 %1774 }
 0x2f1   : > { %v1781_v17 = vsel %vm1780_vm0, %v1775_v5, %v1777_v19 }
 0x2f2   : > { %v1789_v57 = vpop.permute.xlu1 %1788  ;;  %v1785_v48 = vmul.f32 %v1783_v3, %v1781_v17 }
 0x2f4   : > { %v1787_v2 = vadd.f32 %v1785_v48, %v1773_v46  ;;  %v1779_v0 = vpop.permute.xlu0 %1778 }
 0x2f5   : > { %v1782_v55 = vsel %vm1780_vm0, %v1779_v0, %v1775_v5 }
 0x2f6   : > { %v1793_v6 = vpop.permute.xlu1 %1792  ;;  %v1784_v26 = vmul.f32 %v1783_v3, %v1782_v55  ;;  %v1659_v3 = vstv %s2175_s9 }
 0x2f8   : > { %v1786_v1 = vadd.f32 %v1784_v26, %v1772_v56  ;;  %v1791_v52 = vpop.permute.xlu0 %1790  ;;  %v1852_v26 = vstv %s2169_s10 }
 0x2f9   : > { %v1795_v28 = vsel %vm1794_vm2, %v1791_v52, %v1793_v6  ;;  %v1796_v41 = vsel %vm1794_vm2, %v1789_v57, %v1791_v52 }
 0x2fa   : > { %v1805_v40 = vpop.permute.xlu1 %1804  ;;  %v1798_v12 = vmul.f32 %v1797_v24, %v1796_v41  ;;  %v1799_v4 = vmul.f32 %v1797_v24, %v1795_v28 }
 0x2fc   : > { %v1800_v36 = vadd.f32 %v1798_v12, %v1786_v1  ;;  %v1801_v9 = vadd.f32 %v1799_v4, %v1787_v2  ;;  %v1803_v63 = vpop.permute.xlu0 %1802  ;;  %v1672_v4 = vstv %s2182_s0 }
 0x2fd   : > { %v1810_v27 = vsel %vm1808_vm3, %v1803_v63, %v1805_v40 }
 0x2fe   : > { %v1817_v39 = vpop.permute.xlu1 %1816  ;;  %v1812_v53 = vmul.f32 %v1811_v50, %v1810_v27 }
 0x300   : > { %v1814_v44 = vadd.f32 %v1812_v53, %v1800_v36  ;;  %v1807_v15 = vpop.permute.xlu0 %1806 }
 0x301   : > { %v1809_v16 = vsel %vm1808_vm3, %v1805_v40, %v1807_v15 }
 0x302   : > { %v1821_v45 = vpop.permute.xlu1 %1820  ;;  %v1813_v7 = vmul.f32 %v1811_v50, %v1809_v16 }
 0x304   : > { %v1815_v61 = vadd.f32 %v1813_v7, %v1801_v9  ;;  %v1819_v20 = vpop.permute.xlu0 %1818  ;;  %v1865_v7 = vstv %s2176_s4 }
 0x305   : > { %v1823_v37 = vsel %vm1822_vm4, %v1819_v20, %v1821_v45  ;;  %v1824_v60 = vsel %vm1822_vm4, %v1817_v39, %v1819_v20 }
 0x306   : > { %v1643_v18 = vpop.permute.xlu1 %1642  ;;  %v1826_v32 = vmul.f32 %v1825_v22, %v1824_v60  ;;  %v1827_v13 = vmul.f32 %v1825_v22, %v1823_v37 }
 0x307   : > { %v1645_v8 = vsel %vm1546_vm7, %v1643_v18, %v4877_v11 }
 0x308   : > { %v1647_v14 = vmul.f32 %v1646_v23, %v1645_v8  ;;  %v1828_v38 = vadd.f32 %v1826_v32, %v1814_v44  ;;  %v1829_v54 = vadd.f32 %v1827_v13, %v1815_v61  ;;  %v1641_v10 = vpop.permute.xlu0 %1640 }
 0x309   : > { %v1644_v43 = vsel %vm1546_vm7, %v4877_v11, %v1641_v10 }
 0x30a   : > { %v1649_v59 = vadd.f32 %v1647_v14, %v4883_v30  ;;  %v1833_v58 = vpop.permute.xlu1 %1832  ;;  %v1648_v21 = vmul.f32 %v1646_v23, %v1644_v43  ;;  %v1685_v14 = vstv %s2189_s18 }
 0x30c   : > { %v1650_v33 = vadd.f32 %v1648_v21, %v4892_v34  ;;  %v1831_v56 = vpop.permute.xlu0 %1830 }
 0x30d   : > { %v1838_v29 = vsel %vm1836_vm5, %v1831_v56, %v1833_v58 }
 0x30e   : > { %v1652_v19 = vpop.permute.xlu1 %1651  ;;  %v1840_v31 = vmul.f32 %v1839_v42, %v1838_v29 }
 0x310   : > { %v1842_v62 = vadd.f32 %v1840_v31, %v1828_v38  ;;  %v1835_v30 = vpop.permute.xlu0 %1834 }
 0x311   : > { %v1837_v11 = vsel %vm1836_vm5, %v1833_v58, %v1835_v30 }
 0x312   : > { %v1656_v46 = vpop.permute.xlu1 %1655  ;;  %v1841_v5 = vmul.f32 %v1839_v42, %v1837_v11  ;;  %v1878_v42 = vstv %s2183_s1 }
 0x313   : > { %v1658_v17 = vsel %vm1560_vm8, %v1656_v46, %v1652_v19 }
 0x314   : > { %v1660_v57 = vmul.f32 %v1659_v3, %v1658_v17  ;;  %v1843_v34 = vadd.f32 %v1841_v5, %v1829_v54  ;;  %v1654_v48 = vpop.permute.xlu0 %1653  ;;  %v1698_v17 = vstv %s2196_s29 }
 0x315   : > { %v1657_v0 = vsel %vm1560_vm8, %v1652_v19, %v1654_v48 }
 0x316   : > { %v1662_v2 = vadd.f32 %v1660_v57, %v1649_v59  ;;  %v1847_v55 = vpop.permute.xlu1 %1846  ;;  %v1661_v6 = vmul.f32 %v1659_v3, %v1657_v0 }
 0x318   : > { %v1663_v24 = vadd.f32 %v1661_v6, %v1650_v33  ;;  %v1845_v1 = vpop.permute.xlu0 %1844 }
 0x319   : > { %v1850_v52 = vsel %vm1752_vm14, %v1845_v1, %v1847_v55 }
 0x31a   : > { %v1665_v28 = vpop.permute.xlu1 %1664  ;;  %v1854_v41 = vmul.f32 %v1852_v26, %v1850_v52 }
 0x31c   : > { %v1856_v40 = vadd.f32 %v1854_v41, %v1843_v34  ;;  %v1849_v12 = vpop.permute.xlu0 %1848 }
 0x31d   : > { %v1851_v50 = vsel %vm1752_vm14, %v1849_v12, %v1845_v1 }
 0x31e   : > { %v1669_v36 = vpop.permute.xlu1 %1668  ;;  %v1853_v9 = vmul.f32 %v1852_v26, %v1851_v50  ;;  %v1891_v26 = vstv %s2190_s27 }
 0x31f   : > { %v1671_v63 = vsel %vm1574_vm9, %v1669_v36, %v1665_v28 }
 0x320   : > { %v1673_v27 = vmul.f32 %v1672_v4, %v1671_v63  ;;  %v1855_v39 = vadd.f32 %v1853_v9, %v1842_v62  ;;  %v1667_v53 = vpop.permute.xlu0 %1666  ;;  %v1711_v63 = vstv %s2203_s6 }
 0x321   : > { %v1670_v15 = vsel %vm1574_vm9, %v1665_v28, %v1667_v53 }
 0x322   : > { %v1675_v44 = vadd.f32 %v1673_v27, %v1662_v2  ;;  %v1860_v16 = vpop.permute.xlu1 %1859  ;;  %v1674_v45 = vmul.f32 %v1672_v4, %v1670_v15 }
 0x324   : > { %v1676_v22 = vadd.f32 %v1674_v45, %v1663_v24  ;;  %v1858_v61 = vpop.permute.xlu0 %1857 }
 0x325   : > { %v1863_v20 = vsel %vm1766_vm15, %v1858_v61, %v1860_v16 }
 0x326   : > { %v1678_v23 = vpop.permute.xlu1 %1677  ;;  %v1867_v37 = vmul.f32 %v1865_v7, %v1863_v20 }
 0x328   : > { %v1869_v60 = vadd.f32 %v1867_v37, %v1856_v40  ;;  %v1862_v18 = vpop.permute.xlu0 %1861 }
 0x329   : > { %v1864_v32 = vsel %vm1766_vm15, %v1862_v18, %v1858_v61 }
 0x32a   : > { %v1682_v13 = vpop.permute.xlu1 %1681  ;;  %v1866_v8 = vmul.f32 %v1865_v7, %v1864_v32  ;;  %v1904_v7 = vstv %s2197_s23 }
 0x32c   : > { %v1868_v38 = vadd.f32 %v1866_v8, %v1855_v39  ;;  %v1680_v54 = vpop.permute.xlu0 %1679 }
 0x32d   : > { %v1683_v10 = vsel %vm1588_vm10, %v1680_v54, %v1682_v13  ;;  %v1684_v59 = vsel %vm1588_vm10, %v1678_v23, %v1680_v54  ;;  %v1724_v54 = vstv %s2210_s12 }
 0x32e   : > { %v1873_v43 = vpop.permute.xlu1 %1872  ;;  %v1686_v58 = vmul.f32 %v1685_v14, %v1684_v59  ;;  %v1687_v21 = vmul.f32 %v1685_v14, %v1683_v10 }
 0x330   : > { %v1688_v33 = vadd.f32 %v1686_v58, %v1675_v44  ;;  %v1689_v56 = vadd.f32 %v1687_v21, %v1676_v22  ;;  %v1871_v29 = vpop.permute.xlu0 %1870 }
 0x331   : > { %v1876_v19 = vsel %vm1780_vm0, %v1871_v29, %v1873_v43 }
 0x332   : > { %v1691_v31 = vpop.permute.xlu1 %1690  ;;  %v1880_v62 = vmul.f32 %v1878_v42, %v1876_v19  ;;  %v1917_v19 = vstv %s4983_s20 }
 0x334   : > { %v1882_v30 = vadd.f32 %v1880_v62, %v1869_v60  ;;  %v1875_v3 = vpop.permute.xlu0 %1874 }
 0x335   : > { %v1877_v11 = vsel %vm1780_vm0, %v1875_v3, %v1871_v29 }
 0x336   : > { %v1695_v46 = vpop.permute.xlu1 %1694  ;;  %v1879_v5 = vmul.f32 %v1878_v42, %v1877_v11 }
 0x338   : > { %v1881_v57 = vadd.f32 %v1879_v5, %v1868_v38  ;;  %v1693_v34 = vpop.permute.xlu0 %1692  ;;  %v1539_v38 = vld [vmem:[#allocation9 + $0x5] ss:$8 sm:$0x7] }
 0x339   : > { %v1696_v48 = vsel %vm1602_vm11, %v1693_v34, %v1695_v46  ;;  %v1697_v2 = vsel %vm1602_vm11, %v1691_v31, %v1693_v34  ;;  %v1733_v42 = vrot.slane %v1539_v38, %v2825_v47 }
 0x33a   : > { %v1886_v0 = vpop.permute.xlu1 %1885  ;;  %v1699_v55 = vmul.f32 %v1698_v17, %v1697_v2  ;;  %v1700_v6 = vmul.f32 %v1698_v17, %v1696_v48 }
 0x33c   : > { %v1701_v24 = vadd.f32 %v1699_v55, %v1688_v33  ;;  %v1702_v1 = vadd.f32 %v1700_v6, %v1689_v56  ;;  %v1884_v52 = vpop.permute.xlu0 %1883  ;;  %v1737_v33 = vrot.slane %v1539_v38, %v2832_v51 }
 0x33d   : > { %v1890_v28 = vsel %vm1794_vm2, %v1884_v52, %v1886_v0 }
 0x33e   : > { %v1704_v41 = vpop.permute.xlu1 %1703  ;;  %v1892_v40 = vmul.f32 %v1891_v26, %v1890_v28 }
 0x340   : > { %v1894_v12 = vadd.f32 %v1892_v40, %v1881_v57  ;;  %v1888_v4 = vpop.permute.xlu0 %1887 }
 0x341   : > { %v1889_v50 = vsel %vm1794_vm2, %v1886_v0, %v1888_v4 }
 0x342   : > { %v1708_v36 = vpop.permute.xlu1 %1707  ;;  %v1893_v9 = vmul.f32 %v1891_v26, %v1889_v50  ;;  %v1745_v26 = vld [vmem:[#allocation9 + $0x6] ss:$8 sm:$0x7] }
 0x344   : > { %v1895_v27 = vadd.f32 %v1893_v9, %v1882_v30  ;;  %v1706_v39 = vpop.permute.xlu0 %1705 }
 0x345   : > { %v1709_v53 = vsel %vm1616_vm12, %v1706_v39, %v1708_v36  ;;  %v1710_v44 = vsel %vm1616_vm12, %v1704_v41, %v1706_v39 }
 0x346   : > { %v1899_v15 = vpop.permute.xlu1 %1898  ;;  %v1712_v16 = vmul.f32 %v1711_v63, %v1710_v44  ;;  %v1713_v45 = vmul.f32 %v1711_v63, %v1709_v53 }
 0x348   : > { %v1714_v22 = vadd.f32 %v1712_v16, %v1701_v24  ;;  %v1715_v61 = vadd.f32 %v1713_v45, %v1702_v1  ;;  %v1897_v20 = vpop.permute.xlu0 %1896  ;;  %v1930_v24 = vstv %s2211_s22 }
 0x349   : > { %v1903_v23 = vsel %vm1808_vm3, %v1897_v20, %v1899_v15 }
 0x34a   : > { %v1717_v37 = vpop.permute.xlu1 %1716  ;;  %v1905_v60 = vmul.f32 %v1904_v7, %v1903_v23 }
 0x34c   : > { %v1907_v18 = vadd.f32 %v1905_v60, %v1894_v12  ;;  %v1901_v32 = vpop.permute.xlu0 %1900 }
 0x34d   : > { %v1902_v13 = vsel %vm1808_vm3, %v1899_v15, %v1901_v32 }
 0x34e   : > { %v1721_v8 = vpop.permute.xlu1 %1720  ;;  %v1906_v14 = vmul.f32 %v1904_v7, %v1902_v13  ;;  %v5521_v7 = vld [vmem:[#allocation27_spill] sm:$0xff] }
 0x350   : > { %v1908_v10 = vadd.f32 %v1906_v14, %v1895_v27  ;;  %v1719_v59 = vpop.permute.xlu0 %1718 }
 0x351   : > { %v1722_v43 = vsel %vm1630_vm13, %v1719_v59, %v1721_v8  ;;  %v1723_v58 = vsel %vm1630_vm13, %v1717_v37, %v1719_v59 }
 0x352   : > { %v1912_v21 = vpop.permute.xlu1 %1911  ;;  %v1725_v56 = vmul.f32 %v1724_v54, %v1723_v58  ;;  %v1726_v29 = vmul.f32 %v1724_v54, %v1722_v43 }
 0x354   : > { %v1727_v31 = vadd.f32 %v1725_v56, %v1714_v22  ;;  %v1728_v62 = vadd.f32 %v1726_v29, %v1715_v61  ;;  %v1910_v30 = vpop.permute.xlu0 %1909 }
 0x355   : > { %v1916_v3 = vsel %vm1822_vm4, %v1910_v30, %v1912_v21 }
 0x356   : > { %v1923_v11 = vpop.permute.xlu1 %1922  ;;  %v1740_v46 = vmul.f32 %v1733_v42, %v1727_v31  ;;  %v1741_v5 = vmul.f32 %v1737_v33, %v1728_v62  ;;  %v1918_v17 = vmul.f32 %v1917_v19, %v1916_v3 }
 0x358   : > { %v1742_v57 = vadd.f32 %v1740_v46, %v4803_v49  ;;  %v1743_v34 = vadd.f32 %v1741_v5, %v4805_v25  ;;  %v1920_v48 = vadd.f32 %v1918_v17, %v1907_v18  ;;  %v1914_v2 = vpop.permute.xlu0 %1913  ;;  %v1939_v49 = vrot.slane %v1745_v26, %v2825_v47 }
 0x359   : > { %v1915_v0 = vsel %vm1822_vm4, %v1912_v21, %v1914_v2  ;;  %v1943_v25 = vrot.slane %v1745_v26, %v2832_v51 }
 0x35a   : > { %v1919_v55 = vmul.f32 %v1917_v19, %v1915_v0  ;;  %v1927_v6 = vpop.permute.xlu1 %1926 }
 0x35c   : > { %v1921_v1 = vadd.f32 %v1919_v55, %v1908_v10  ;;  %v1925_v52 = vpop.permute.xlu0 %1924 }
 0x35d   : > { %v1928_v28 = vsel %vm1836_vm5, %v1925_v52, %v1927_v6  ;;  %v1929_v41 = vsel %vm1836_vm5, %v1923_v11, %v1925_v52 }
 0x35e   : > { %v1931_v40 = vmul.f32 %v1930_v24, %v1929_v41  ;;  %v1932_v12 = vmul.f32 %v1930_v24, %v1928_v28 }
 0x360   : > { %v1933_v4 = vadd.f32 %v1931_v40, %v1920_v48  ;;  %v1934_v50 = vadd.f32 %v1932_v12, %v1921_v1 }
 0x362   : > { %v1946_v36 = vmul.f32 %v1939_v49, %v1933_v4  ;;  %v1947_v9 = vmul.f32 %v1943_v25, %v1934_v50 }
 0x364   : > { %v1948_v63 = vadd.f32 %v1946_v36, %v1742_v57  ;;  %v1949_v27 = vadd.f32 %v1947_v9, %v1743_v34 }
 0x366   : > { %v2212_v39 = vmul.f32 -1.442695, %v1948_v63  ;;  %v2213_v53 = vmul.f32 -1.442695, %v1949_v27 }
 0x368   : > { %2355 = vpow2.f32 %v2212_v39 }
 0x369   : > { %2357 = vpow2.f32 %v2213_v53 }
 0x372   : > { %v2356_v35 = vpop.eup %2355 }
 0x373   : > { %v2358_v44 = vpop.eup %2357  ;;  %v1956_v15 = vadd.f32 1.0, %v2356_v35 }
 0x374   : > { %v1957_v47 = vadd.f32 1.0, %v2358_v44 }
 0x375   : > { %2359 = vrcp.f32 %v1956_v15 }
 0x376   : > { %2361 = vrcp.f32 %v1957_v47 }
 0x37f   : > { %v2360_v51 = vpop.eup %2359 }
 0x380   : > { %v2362_v16 = vpop.eup %2361 }
 0x381   : > { %v1964_v45 = vcombine.low %v2360_v51, %v2362_v16 }
 0x383   : > { %v1971_v22 = vrot.slane %v1964_v45, %v5521_v7 }
 0x385   : > { %v1978_v61 = vrot.slane %v1971_v22, %v5521_v7 }
 0x387   : > { %1980 = vst.msk [vmem:[%s227_s17] sm:$0x3] %vm2809_vm1, %v1978_v61 }
 0x388   : > { %2449 = shalt.err (!%p2446_p5)
}
 0x389   : > { %s2450_s7 = scalar_lea.hbm %s5013_s25, 32  ;;  %s2454_s9 = scalar_lea.hbm %s5522_s3, 64 }
 0x38a   : > { %p2451_p10 = scmp.ne.s32.totalorder %s5013_s25, %s2450_s7  ;;  %p2455_p7 = scmp.lt.u32.totalorder %s5013_s25, %s5522_s3 }
 0x38b   : > { %p2456_p12 = scmp.lt.u32.totalorder %s2454_s9, %s2450_s7  ;;  %p2458_p1 = scmp.lt.u32.totalorder %s2450_s7, %s5013_s25 }
 0x38c   : > { %p2452_p13 = pnand %p2451_p10, %p2736_p8 }
 0x38d   : > { %p2457_p2 = por %p2456_p12, %p2455_p7 }
 0x38e   : > { %p2453_p3 = pneg %p2452_p13 }
 0x38f   : > { %p2459_p4 = por %p2458_p1, %p2457_p2 }
 0x391   : > { %p2460_p6 = pnand %p2459_p4, %p2453_p3 }
 0x393   : > { %2463 = shalt.err (!%p2460_p6)
}
 0x394   : > { %2231 = dma.vmem_to_hbm [thread:$0]  (%p2736_p8), %s5015_s13, 32, %s5013_s25, %s1982_s26  }
 0x395 PF: > { %s5524_s4 = sld [smem:[#allocation17_spill]]  ;;  %s5525_s18 = sld [smem:[#allocation23_spill]] }
 0x396   : > { %s5526_s1 = sld [smem:[#allocation22_spill]] }
 0x39b   : > { %s2008_s29 = sand.u32 1, %s5524_s4   ;;  %p5527_p9 = scmp.ne.s32.totalorder %s5525_s18, 0 }
 0x39c   : > { %p5528_p0 = scmp.ge.s32.totalorder %s5526_s1, 2  ;;  %s2009_s27 = scalar_lea.sflag [#allocation7], %s2008_s29 }
 0x39e   : > { %p2245_p11 = pnand %p5528_p0, %p5527_p9 }
 0x3a0   : > { %2501 = dma.done.wait (!%p2245_p11), %s2009_s27, 32  }
 0x3a1   : > { %2503 = vsyncadd (!%p2245_p11), %s2009_s27, 4294967264  ;;  %s21_s17 = sadd.s32 1, %s5526_s1   ;;  %s5529_s12 = sld [smem:[#allocation18_spill]] }
 0x3a2   : > { %p18_p5 = scmp.ge.s32.totalorder %s21_s17, 4   ;;  %s5530_s13 = sld [smem:[#allocation19_spill]] }
 0x3a3   : > { %s5531_s14 = sld [smem:[#allocation26_spill]]  ;;  %s5532_s15 = sld [smem:[#allocation21_spill]] }
 0x3a4   : > { %s5533_s16 = sld [smem:[#allocation24_spill]]  ;;  %20 = sbr.rel (!%p18_p5) target bundleno = 13 (0xd), region = 107 }
 0x3ab   :  { %2014 = vsyncpa [#allocation6], 1 }
 0x3ac   :  { %2016 = vsyncpa [#allocation6 + $0x1], 1 }
 0x3ad   :  { %2017 = vsyncpa [#allocation11], 1 }
 0x3ae   :  { %2019 = vsyncpa [#allocation11 + $0x1], 1 }
 0x3af   :  { %2020 = vsyncpa [#allocation7], 1 }
 0x3b0   :  { %2022 = vsyncpa [#allocation7 + $0x1], 1 }
 0x3b1   :  { %2023 = vsyncpa [#allocation8], 1 }
 0x3b2   :  { %2025 = vsyncpa [#allocation8 + $0x1], 1 }

</bundles_post_ra>
